<compile_context>
chip_gen: v5e
topology: v5e:2x2
jax: 0.10.0
libtpu: 0.0.40
codegen_flags: <defaults>
</compile_context>

<pallas_src>
import functools

import numpy as np
import jax
import jax.numpy as jnp
from jax import lax
from jax.experimental import pallas as pl
from jax.experimental.pallas import tpu as pltpu


def _round_up(x, m=128):
    return (x + m - 1) // m * m


# Spatial plumbing fixed by the module: 4x4 -> 8x8 -> 16x16 -> 32x32.
# ConvTranspose2d(k=3, s=2, p=1, op=1) == stride-1 VALID 3x3 conv over an input
# that is zero-dilated (interior=1) and padded (lo=1, hi=2): padded side = 2H+2.
_W1P, _L1 = 10, 100        # layer-1 padded pitch / flat length  (4  -> 10)
_W2P, _L2 = 18, 324        # layer-2                             (8  -> 18)
_W3P, _L3 = 34, 1156       # layer-3                             (16 -> 34)
_XP1_W = _round_up(_L1 + 2 * _W1P + 2)     # 128  (incl. zero halo for taps)
_XP2_W = _round_up(_L2 + 2 * _W2P + 2)     # 384
_XP3_W = _round_up(_L3 + 2 * _W3P + 2)     # 1280
_OUT_W = _L3                               # per-row output slab width


# ----------------------------------------------------------------------------
# Host-side 0/1 scatter constants
# ----------------------------------------------------------------------------
def _block_mask(c0):
    """(c0, c0*16) block-diagonal selector: row c keeps cols [c*16,(c+1)*16)."""
    return jnp.asarray(np.kron(np.eye(c0, dtype=np.float32),
                               np.ones((1, 16), np.float32)))


def _scatter_fc(c0):
    """(c0*16, XP1_W): dense 4x4 (row-major, tiled per channel) -> padded 10x10.

    Column (2y+1)*10+(2x+1) receives dense pixel (y,x); all other columns
    (padding + halo) are all-zero, so one matmul writes the whole slab."""
    s = np.zeros((c0 * 16, _XP1_W), np.float32)
    for y in range(4):
        for x in range(4):
            s[np.arange(c0) * 16 + y * 4 + x,
              (2 * y + 1) * _W1P + (2 * x + 1)] = 1.0
    return jnp.asarray(s)


def _scatter_conv(h, pitch_in, pitch_out, n_rows, width):
    """(n_rows, width) 0/1 scatter: valid h x h conv outputs (living at flat
    position y*pitch_in + x) -> next layer's dilated+padded input at
    (2y+1)*pitch_out + (2x+1).  Garbage rows / padding+halo cols are zero."""
    s = np.zeros((n_rows, width), np.float32)
    for y in range(h):
        for x in range(h):
            s[y * pitch_in + x, (2 * y + 1) * pitch_out + (2 * x + 1)] = 1.0
    return jnp.asarray(s)


# ----------------------------------------------------------------------------
# The fused kernel (one grid step == one batch element)
# ----------------------------------------------------------------------------
def _decoder_kernel(z_ref, w1_ref, b1_ref, w2_ref, b2_ref,
                    dsel_ref, s1_ref, wc1_ref, bc1_ref,
                    s2_ref, wc2_ref, bc2_ref,
                    s3_ref, wc3_ref, bc3_ref,
                    o_ref,
                    xp1, xp2, xp3):
    f32 = jnp.float32

    def conv3x3(xp_ref, w_ref, b_ref, pitch, length):
        # "wide" valid 3x3 conv on the flat padded input: each tap is a plain
        # lane slice; 9 consecutive accumulating dots (MRB-friendly on v7x).
        cout = w_ref.shape[2]
        acc = jnp.zeros((cout, length), f32)
        for dy in range(3):
            for dx in range(3):
                off = dy * pitch + dx
                acc = acc + jnp.dot(w_ref[dy, dx],
                                    xp_ref[:, off:off + length],
                                    preferred_element_type=f32)
        return acc + b_ref[...]

    # ---- fully connected stack (features lane-dense) -----------------------
    zn = z_ref[0]                                              # (1, latent)
    h1 = jnp.maximum(jnp.dot(zn, w1_ref[...],
                             preferred_element_type=f32) + b1_ref[...], 0.0)
    h2 = jnp.maximum(jnp.dot(h1, w2_ref[...],
                             preferred_element_type=f32) + b2_ref[...], 0.0)

    # ---- fc2 -> padded conv-1 input in ONE matmul ---------------------------
    # (block-diag selector * broadcast h2) @ S1  ==  torch .view(c0,4,4) then
    # stride-2 dilation + padding; writes the full slab (padding/halo = 0).
    xp1[...] = jnp.dot(dsel_ref[...] * h2, s1_ref[...],
                       preferred_element_type=f32)             # (c0, 128)

    # ---- deconv1: 4x4 -> 8x8 (ReLU), scatter to padded 18x18 ---------------
    a1 = jnp.maximum(conv3x3(xp1, wc1_ref, bc1_ref, _W1P, _L1), 0.0)
    xp2[...] = jnp.dot(a1, s2_ref[...], preferred_element_type=f32)

    # ---- deconv2: 8x8 -> 16x16 (ReLU), scatter to padded 34x34 -------------
    a2 = jnp.maximum(conv3x3(xp2, wc2_ref, bc2_ref, _W2P, _L2), 0.0)
    xp3[...] = jnp.dot(a2, s3_ref[...], preferred_element_type=f32)

    # ---- deconv3: 16x16 -> 32x32 (Sigmoid), one lane-dense output store ----
    a3 = conv3x3(xp3, wc3_ref, bc3_ref, _W3P, _L3)             # (1, 1156)
    o_ref[...] = jax.nn.sigmoid(a3)[None]                      # (1, 1, 1156)


# ----------------------------------------------------------------------------
# Host-side wrapper
# ----------------------------------------------------------------------------
def _convt_weight(w_t):
    # torch ConvTranspose2d weight (Cin, Cout, 3, 3) -> (3, 3, Cout, Cin),
    # spatially flipped, so a forward conv on the dilated input reproduces it.
    return jnp.transpose(jnp.flip(w_t, axis=(2, 3)), (2, 3, 1, 0))


def decoder_forward(z, params, d_size):
    B, latent = z.shape
    c0, c1, c2 = d_size * 4, d_size * 2, d_size

    w1 = params["fc1_w"]
    b1 = params["fc1_b"].reshape(1, -1)
    w2 = params["fc2_w"]
    b2 = params["fc2_b"].reshape(1, -1)
    wc1 = _convt_weight(params["dc1_w"]); bc1 = params["dc1_b"].reshape(-1, 1)
    wc2 = _convt_weight(params["dc2_w"]); bc2 = params["dc2_b"].reshape(-1, 1)
    wc3 = _convt_weight(params["dc3_w"]); bc3 = params["dc3_b"].reshape(-1, 1)

    dsel = _block_mask(c0)                               # (c0, c0*16)
    s1 = _scatter_fc(c0)                                 # (c0*16, 128)
    s2 = _scatter_conv(8, _W1P, _W2P, _L1, _XP2_W)       # (100, 384)
    s3 = _scatter_conv(16, _W2P, _W3P, _L2, _XP3_W)      # (324, 1280)

    z3 = z.reshape(B, 1, latent)
    operands = (z3, w1, b1, w2, b2, dsel, s1, wc1, bc1, s2, wc2, bc2,
                s3, wc3, bc3)

    def resident_spec(x):
        nd = x.ndim
        return pl.BlockSpec(x.shape, lambda n: (0,) * nd)   # stays in VMEM

    in_specs = [pl.BlockSpec((1, 1, latent), lambda n: (n, 0, 0))] + \
               [resident_spec(x) for x in operands[1:]]

    out = pl.pallas_call(
        _decoder_kernel,
        grid=(B,),
        out_shape=jax.ShapeDtypeStruct((B, 1, _OUT_W), jnp.float32),
        in_specs=in_specs,
        out_specs=pl.BlockSpec((1, 1, _OUT_W), lambda n: (n, 0, 0)),
        scratch_shapes=[
            pltpu.VMEM((c0, _XP1_W), jnp.float32),   # padded conv-1 input
            pltpu.VMEM((c1, _XP2_W), jnp.float32),   # padded conv-2 input
            pltpu.VMEM((c2, _XP3_W), jnp.float32),   # padded conv-3 input
        ],
        compiler_params=pltpu.CompilerParams(
            dimension_semantics=("parallel",)),
    )(*operands)

    # Free XLA epilogue: keep the 32 valid rows (34-wide pitch), trim the 2
    # garbage columns per row, restore NCHW (B, 1, 32, 32).
    return (out.reshape(B, _OUT_W)[:, :32 * _W3P]
               .reshape(B, 32, _W3P)[:, :, :32]
               .reshape(B, 1, 32, 32))


# ----------------------------------------------------------------------------
# Pure-JAX reference and parameter init (PyTorch-equivalent semantics)
# ----------------------------------------------------------------------------
def decoder_reference(z, params, d_size):
    x = jax.nn.relu(z @ params["fc1_w"] + params["fc1_b"])
    x = jax.nn.relu(x @ params["fc2_w"] + params["fc2_b"])
    B = z.shape[0]
    x = x.reshape(B, d_size * 4, 4, 4)
    for i, act in ((1, "relu"), (2, "relu"), (3, "sigmoid")):
        w_t = params[f"dc{i}_w"]                                 # (Cin,Cout,3,3)
        w_oihw = jnp.flip(jnp.transpose(w_t, (1, 0, 2, 3)), axis=(2, 3))
        x = lax.conv_general_dilated(
            x, w_oihw, window_strides=(1, 1),
            padding=[(1, 2), (1, 2)], lhs_dilation=(2, 2),
            dimension_numbers=("NCHW", "OIHW", "NCHW"))
        x = x + params[f"dc{i}_b"].reshape(1, -1, 1, 1)
        x = jax.nn.relu(x) if act == "relu" else jax.nn.sigmoid(x)
    return x


def init_params(key, latent_dim, d_size):
    def dense(k, fan_in, fan_out):
        s = 1.0 / jnp.sqrt(jnp.float32(fan_in))
        kw, kb = jax.random.split(k)
        return (jax.random.uniform(kw, (fan_in, fan_out), jnp.float32, -s, s),
                jax.random.uniform(kb, (fan_out,), jnp.float32, -s, s))

    def deconv(k, cin, cout):
        s = 1.0 / jnp.sqrt(jnp.float32(cin * 9))
        kw, kb = jax.random.split(k)
        return (jax.random.uniform(kw, (cin, cout, 3, 3), jnp.float32, -s, s),
                jax.random.uniform(kb, (cout,), jnp.float32, -s, s))

    k1, k2, k3, k4, k5 = jax.random.split(key, 5)
    c0 = d_size * 4
    p = {}
    p["fc1_w"], p["fc1_b"] = dense(k1, latent_dim, 256)
    p["fc2_w"], p["fc2_b"] = dense(k2, 256, c0 * 4 * 4)
    p["dc1_w"], p["dc1_b"] = deconv(k3, c0, d_size * 2)
    p["dc2_w"], p["dc2_b"] = deconv(k4, d_size * 2, d_size)
    p["dc3_w"], p["dc3_b"] = deconv(k5, d_size, 1)
    return p


if __name__ == "__main__":
    latent_dim, d_size, batch = 32, 8, 2
    key = jax.random.PRNGKey(0)
    kp, kz = jax.random.split(key)
    params = init_params(kp, latent_dim, d_size)
    z = jax.random.normal(kz, (batch, latent_dim), jnp.float32)

    fwd = jax.jit(functools.partial(decoder_forward, d_size=d_size))
    out = jax.block_until_ready(fwd(z, params))
    assert out.shape == (batch, 1, 32, 32), out.shape

    ref = jax.block_until_ready(decoder_reference(z, params, d_size))
    err = float(jnp.max(jnp.abs(out - ref)))
    assert err < 5e-4, err

    print("KERNEL_OK")
</pallas_src>

<mosaic_0001>
module attributes {stable_mosaic.version = 11 : i64} {
  func.func @_decoder_kernel(%arg0: i32, %arg1: memref<1x1x32xf32, #tpu.memory_space<vmem>>, %arg2: memref<32x256xf32, #tpu.memory_space<vmem>>, %arg3: memref<1x256xf32, #tpu.memory_space<vmem>>, %arg4: memref<256x512xf32, #tpu.memory_space<vmem>>, %arg5: memref<1x512xf32, #tpu.memory_space<vmem>>, %arg6: memref<32x512xf32, #tpu.memory_space<vmem>>, %arg7: memref<512x128xf32, #tpu.memory_space<vmem>>, %arg8: memref<3x3x16x32xf32, #tpu.memory_space<vmem>>, %arg9: memref<16x1xf32, #tpu.memory_space<vmem>>, %arg10: memref<100x384xf32, #tpu.memory_space<vmem>>, %arg11: memref<3x3x8x16xf32, #tpu.memory_space<vmem>>, %arg12: memref<8x1xf32, #tpu.memory_space<vmem>>, %arg13: memref<324x1280xf32, #tpu.memory_space<vmem>>, %arg14: memref<3x3x1x8xf32, #tpu.memory_space<vmem>>, %arg15: memref<1x1xf32, #tpu.memory_space<vmem>>, %arg16: memref<1x1x1156xf32, #tpu.memory_space<vmem>>, %arg17: memref<32x128xf32, #tpu.memory_space<vmem>>, %arg18: memref<16x384xf32, #tpu.memory_space<vmem>>, %arg19: memref<8x1280xf32, #tpu.memory_space<vmem>>) attributes {dimension_semantics = [#tpu.dimension_semantics<parallel>], iteration_bounds = array<i64: 2>, scalar_prefetch = 0 : i64, scratch_operands = 3 : i64, tpu.core_type = #tpu.core_type<tc>, window_params = [{transform_indices = @transform_0, window_bounds = array<i64: 1, 1, 32>}, {pipeline_mode = #tpu.pipeline_mode<synchronous>, transform_indices = @transform_1, window_bounds = array<i64: 32, 256>}, {pipeline_mode = #tpu.pipeline_mode<synchronous>, transform_indices = @transform_2, window_bounds = array<i64: 1, 256>}, {pipeline_mode = #tpu.pipeline_mode<synchronous>, transform_indices = @transform_3, window_bounds = array<i64: 256, 512>}, {pipeline_mode = #tpu.pipeline_mode<synchronous>, transform_indices = @transform_4, window_bounds = array<i64: 1, 512>}, {pipeline_mode = #tpu.pipeline_mode<synchronous>, transform_indices = @transform_5, window_bounds = array<i64: 32, 512>}, {pipeline_mode = #tpu.pipeline_mode<synchronous>, transform_indices = @transform_6, window_bounds = array<i64: 512, 128>}, {pipeline_mode = #tpu.pipeline_mode<synchronous>, transform_indices = @transform_7, window_bounds = array<i64: 3, 3, 16, 32>}, {pipeline_mode = #tpu.pipeline_mode<synchronous>, transform_indices = @transform_8, window_bounds = array<i64: 16, 1>}, {pipeline_mode = #tpu.pipeline_mode<synchronous>, transform_indices = @transform_9, window_bounds = array<i64: 100, 384>}, {pipeline_mode = #tpu.pipeline_mode<synchronous>, transform_indices = @transform_10, window_bounds = array<i64: 3, 3, 8, 16>}, {pipeline_mode = #tpu.pipeline_mode<synchronous>, transform_indices = @transform_11, window_bounds = array<i64: 8, 1>}, {pipeline_mode = #tpu.pipeline_mode<synchronous>, transform_indices = @transform_12, window_bounds = array<i64: 324, 1280>}, {pipeline_mode = #tpu.pipeline_mode<synchronous>, transform_indices = @transform_13, window_bounds = array<i64: 3, 3, 1, 8>}, {pipeline_mode = #tpu.pipeline_mode<synchronous>, transform_indices = @transform_14, window_bounds = array<i64: 1, 1>}, {transform_indices = @transform_15, window_bounds = array<i64: 1, 1, 1156>}]} {
    %c0 = arith.constant 0 : index
    %c0_0 = arith.constant 0 : index
    %c0_1 = arith.constant 0 : index
    %0 = vector.load %arg1[%c0, %c0_0, %c0_1] : memref<1x1x32xf32, #tpu.memory_space<vmem>>, vector<1x1x32xf32>
    %1 = vector.shape_cast %0 : vector<1x1x32xf32> to vector<1x32xf32>
    %c0_2 = arith.constant 0 : index
    %c0_3 = arith.constant 0 : index
    %2 = vector.load %arg2[%c0_2, %c0_3] : memref<32x256xf32, #tpu.memory_space<vmem>>, vector<32x256xf32>
    %cst = arith.constant dense<0.000000e+00> : vector<1x256xf32>
    %3 = tpu.matmul %1, %2, %cst {dimension_numbers = #tpu.dot_dimension_numbers<[1], [0], [0], [1], [0, 0, 1, 1], [], []>} : vector<1x32xf32>, vector<32x256xf32>, vector<1x256xf32> -> vector<1x256xf32>
    %c0_4 = arith.constant 0 : index
    %c0_5 = arith.constant 0 : index
    %4 = vector.load %arg3[%c0_4, %c0_5] : memref<1x256xf32, #tpu.memory_space<vmem>>, vector<1x256xf32>
    %5 = arith.addf %3, %4 : vector<1x256xf32>
    %cst_6 = arith.constant 0.000000e+00 : f32
    %6 = vector.broadcast %cst_6 : f32 to vector<1x256xf32>
    %7 = arith.maximumf %5, %6 : vector<1x256xf32>
    %c0_7 = arith.constant 0 : index
    %c0_8 = arith.constant 0 : index
    %8 = vector.load %arg4[%c0_7, %c0_8] : memref<256x512xf32, #tpu.memory_space<vmem>>, vector<256x512xf32>
    %cst_9 = arith.constant dense<0.000000e+00> : vector<1x512xf32>
    %9 = tpu.matmul %7, %8, %cst_9 {dimension_numbers = #tpu.dot_dimension_numbers<[1], [0], [0], [1], [0, 0, 1, 1], [], []>} : vector<1x256xf32>, vector<256x512xf32>, vector<1x512xf32> -> vector<1x512xf32>
    %c0_10 = arith.constant 0 : index
    %c0_11 = arith.constant 0 : index
    %10 = vector.load %arg5[%c0_10, %c0_11] : memref<1x512xf32, #tpu.memory_space<vmem>>, vector<1x512xf32>
    %11 = arith.addf %9, %10 : vector<1x512xf32>
    %cst_12 = arith.constant 0.000000e+00 : f32
    %12 = vector.broadcast %cst_12 : f32 to vector<1x512xf32>
    %13 = arith.maximumf %11, %12 : vector<1x512xf32>
    %c0_13 = arith.constant 0 : index
    %c0_14 = arith.constant 0 : index
    %14 = vector.load %arg6[%c0_13, %c0_14] : memref<32x512xf32, #tpu.memory_space<vmem>>, vector<32x512xf32>
    %15 = vector.broadcast %13 : vector<1x512xf32> to vector<32x512xf32>
    %16 = arith.mulf %14, %15 : vector<32x512xf32>
    %c0_15 = arith.constant 0 : index
    %c0_16 = arith.constant 0 : index
    %17 = vector.load %arg7[%c0_15, %c0_16] : memref<512x128xf32, #tpu.memory_space<vmem>>, vector<512x128xf32>
    %cst_17 = arith.constant dense<0.000000e+00> : vector<32x128xf32>
    %18 = tpu.matmul %16, %17, %cst_17 {dimension_numbers = #tpu.dot_dimension_numbers<[1], [0], [0], [1], [0, 0, 1, 1], [], []>} : vector<32x512xf32>, vector<512x128xf32>, vector<32x128xf32> -> vector<32x128xf32>
    %c0_18 = arith.constant 0 : index
    %c0_19 = arith.constant 0 : index
    %19 = vector.load %arg17[%c0_18, %c0_19] : memref<32x128xf32, #tpu.memory_space<vmem>>, vector<32x128xf32>
    tpu.vector_store %arg17[%c0_18, %c0_19], %18 {strides = array<i32>} : memref<32x128xf32, #tpu.memory_space<vmem>>, vector<32x128xf32>,
    %cst_20 = arith.constant 0.000000e+00 : f32
    %20 = vector.broadcast %cst_20 : f32 to vector<16x100xf32>
    %c0_21 = arith.constant 0 : index
    %c0_22 = arith.constant 0 : index
    %c0_23 = arith.constant 0 : index
    %c0_24 = arith.constant 0 : index
    %21 = vector.load %arg8[%c0_21, %c0_22, %c0_23, %c0_24] : memref<3x3x16x32xf32, #tpu.memory_space<vmem>>, vector<1x1x16x32xf32>
    %22 = vector.shape_cast %21 : vector<1x1x16x32xf32> to vector<16x32xf32>
    %c0_25 = arith.constant 0 : index
    %c0_26 = arith.constant 0 : index
    %23 = vector.load %arg17[%c0_25, %c0_26] : memref<32x128xf32, #tpu.memory_space<vmem>>, vector<32x100xf32>
    %cst_27 = arith.constant dense<0.000000e+00> : vector<16x100xf32>
    %24 = tpu.matmul %22, %23, %cst_27 {dimension_numbers = #tpu.dot_dimension_numbers<[1], [0], [0], [1], [0, 0, 1, 1], [], []>} : vector<16x32xf32>, vector<32x100xf32>, vector<16x100xf32> -> vector<16x100xf32>
    %25 = arith.addf %20, %24 : vector<16x100xf32>
    %c0_28 = arith.constant 0 : index
    %c1 = arith.constant 1 : index
    %c0_29 = arith.constant 0 : index
    %c0_30 = arith.constant 0 : index
    %26 = vector.load %arg8[%c0_28, %c1, %c0_29, %c0_30] : memref<3x3x16x32xf32, #tpu.memory_space<vmem>>, vector<1x1x16x32xf32>
    %27 = vector.shape_cast %26 : vector<1x1x16x32xf32> to vector<16x32xf32>
    %c0_31 = arith.constant 0 : index
    %c1_32 = arith.constant 1 : index
    %28 = vector.load %arg17[%c0_31, %c1_32] : memref<32x128xf32, #tpu.memory_space<vmem>>, vector<32x100xf32>
    %cst_33 = arith.constant dense<0.000000e+00> : vector<16x100xf32>
    %29 = tpu.matmul %27, %28, %cst_33 {dimension_numbers = #tpu.dot_dimension_numbers<[1], [0], [0], [1], [0, 0, 1, 1], [], []>} : vector<16x32xf32>, vector<32x100xf32>, vector<16x100xf32> -> vector<16x100xf32>
    %30 = arith.addf %25, %29 : vector<16x100xf32>
    %c0_34 = arith.constant 0 : index
    %c2 = arith.constant 2 : index
    %c0_35 = arith.constant 0 : index
    %c0_36 = arith.constant 0 : index
    %31 = vector.load %arg8[%c0_34, %c2, %c0_35, %c0_36] : memref<3x3x16x32xf32, #tpu.memory_space<vmem>>, vector<1x1x16x32xf32>
    %32 = vector.shape_cast %31 : vector<1x1x16x32xf32> to vector<16x32xf32>
    %c0_37 = arith.constant 0 : index
    %c2_38 = arith.constant 2 : index
    %33 = vector.load %arg17[%c0_37, %c2_38] : memref<32x128xf32, #tpu.memory_space<vmem>>, vector<32x100xf32>
    %cst_39 = arith.constant dense<0.000000e+00> : vector<16x100xf32>
    %34 = tpu.matmul %32, %33, %cst_39 {dimension_numbers = #tpu.dot_dimension_numbers<[1], [0], [0], [1], [0, 0, 1, 1], [], []>} : vector<16x32xf32>, vector<32x100xf32>, vector<16x100xf32> -> vector<16x100xf32>
    %35 = arith.addf %30, %34 : vector<16x100xf32>
    %c1_40 = arith.constant 1 : index
    %c0_41 = arith.constant 0 : index
    %c0_42 = arith.constant 0 : index
    %c0_43 = arith.constant 0 : index
    %36 = vector.load %arg8[%c1_40, %c0_41, %c0_42, %c0_43] : memref<3x3x16x32xf32, #tpu.memory_space<vmem>>, vector<1x1x16x32xf32>
    %37 = vector.shape_cast %36 : vector<1x1x16x32xf32> to vector<16x32xf32>
    %c0_44 = arith.constant 0 : index
    %c10 = arith.constant 10 : index
    %38 = vector.load %arg17[%c0_44, %c10] : memref<32x128xf32, #tpu.memory_space<vmem>>, vector<32x100xf32>
    %cst_45 = arith.constant dense<0.000000e+00> : vector<16x100xf32>
    %39 = tpu.matmul %37, %38, %cst_45 {dimension_numbers = #tpu.dot_dimension_numbers<[1], [0], [0], [1], [0, 0, 1, 1], [], []>} : vector<16x32xf32>, vector<32x100xf32>, vector<16x100xf32> -> vector<16x100xf32>
    %40 = arith.addf %35, %39 : vector<16x100xf32>
    %c1_46 = arith.constant 1 : index
    %c1_47 = arith.constant 1 : index
    %c0_48 = arith.constant 0 : index
    %c0_49 = arith.constant 0 : index
    %41 = vector.load %arg8[%c1_46, %c1_47, %c0_48, %c0_49] : memref<3x3x16x32xf32, #tpu.memory_space<vmem>>, vector<1x1x16x32xf32>
    %42 = vector.shape_cast %41 : vector<1x1x16x32xf32> to vector<16x32xf32>
    %c0_50 = arith.constant 0 : index
    %c11 = arith.constant 11 : index
    %43 = vector.load %arg17[%c0_50, %c11] : memref<32x128xf32, #tpu.memory_space<vmem>>, vector<32x100xf32>
    %cst_51 = arith.constant dense<0.000000e+00> : vector<16x100xf32>
    %44 = tpu.matmul %42, %43, %cst_51 {dimension_numbers = #tpu.dot_dimension_numbers<[1], [0], [0], [1], [0, 0, 1, 1], [], []>} : vector<16x32xf32>, vector<32x100xf32>, vector<16x100xf32> -> vector<16x100xf32>
    %45 = arith.addf %40, %44 : vector<16x100xf32>
    %c1_52 = arith.constant 1 : index
    %c2_53 = arith.constant 2 : index
    %c0_54 = arith.constant 0 : index
    %c0_55 = arith.constant 0 : index
    %46 = vector.load %arg8[%c1_52, %c2_53, %c0_54, %c0_55] : memref<3x3x16x32xf32, #tpu.memory_space<vmem>>, vector<1x1x16x32xf32>
    %47 = vector.shape_cast %46 : vector<1x1x16x32xf32> to vector<16x32xf32>
    %c0_56 = arith.constant 0 : index
    %c12 = arith.constant 12 : index
    %48 = vector.load %arg17[%c0_56, %c12] : memref<32x128xf32, #tpu.memory_space<vmem>>, vector<32x100xf32>
    %cst_57 = arith.constant dense<0.000000e+00> : vector<16x100xf32>
    %49 = tpu.matmul %47, %48, %cst_57 {dimension_numbers = #tpu.dot_dimension_numbers<[1], [0], [0], [1], [0, 0, 1, 1], [], []>} : vector<16x32xf32>, vector<32x100xf32>, vector<16x100xf32> -> vector<16x100xf32>
    %50 = arith.addf %45, %49 : vector<16x100xf32>
    %c2_58 = arith.constant 2 : index
    %c0_59 = arith.constant 0 : index
    %c0_60 = arith.constant 0 : index
    %c0_61 = arith.constant 0 : index
    %51 = vector.load %arg8[%c2_58, %c0_59, %c0_60, %c0_61] : memref<3x3x16x32xf32, #tpu.memory_space<vmem>>, vector<1x1x16x32xf32>
    %52 = vector.shape_cast %51 : vector<1x1x16x32xf32> to vector<16x32xf32>
    %c0_62 = arith.constant 0 : index
    %c20 = arith.constant 20 : index
    %53 = vector.load %arg17[%c0_62, %c20] : memref<32x128xf32, #tpu.memory_space<vmem>>, vector<32x100xf32>
    %cst_63 = arith.constant dense<0.000000e+00> : vector<16x100xf32>
    %54 = tpu.matmul %52, %53, %cst_63 {dimension_numbers = #tpu.dot_dimension_numbers<[1], [0], [0], [1], [0, 0, 1, 1], [], []>} : vector<16x32xf32>, vector<32x100xf32>, vector<16x100xf32> -> vector<16x100xf32>
    %55 = arith.addf %50, %54 : vector<16x100xf32>
    %c2_64 = arith.constant 2 : index
    %c1_65 = arith.constant 1 : index
    %c0_66 = arith.constant 0 : index
    %c0_67 = arith.constant 0 : index
    %56 = vector.load %arg8[%c2_64, %c1_65, %c0_66, %c0_67] : memref<3x3x16x32xf32, #tpu.memory_space<vmem>>, vector<1x1x16x32xf32>
    %57 = vector.shape_cast %56 : vector<1x1x16x32xf32> to vector<16x32xf32>
    %c0_68 = arith.constant 0 : index
    %c21 = arith.constant 21 : index
    %58 = vector.load %arg17[%c0_68, %c21] : memref<32x128xf32, #tpu.memory_space<vmem>>, vector<32x100xf32>
    %cst_69 = arith.constant dense<0.000000e+00> : vector<16x100xf32>
    %59 = tpu.matmul %57, %58, %cst_69 {dimension_numbers = #tpu.dot_dimension_numbers<[1], [0], [0], [1], [0, 0, 1, 1], [], []>} : vector<16x32xf32>, vector<32x100xf32>, vector<16x100xf32> -> vector<16x100xf32>
    %60 = arith.addf %55, %59 : vector<16x100xf32>
    %c2_70 = arith.constant 2 : index
    %c2_71 = arith.constant 2 : index
    %c0_72 = arith.constant 0 : index
    %c0_73 = arith.constant 0 : index
    %61 = vector.load %arg8[%c2_70, %c2_71, %c0_72, %c0_73] : memref<3x3x16x32xf32, #tpu.memory_space<vmem>>, vector<1x1x16x32xf32>
    %62 = vector.shape_cast %61 : vector<1x1x16x32xf32> to vector<16x32xf32>
    %c0_74 = arith.constant 0 : index
    %c22 = arith.constant 22 : index
    %63 = vector.load %arg17[%c0_74, %c22] : memref<32x128xf32, #tpu.memory_space<vmem>>, vector<32x100xf32>
    %cst_75 = arith.constant dense<0.000000e+00> : vector<16x100xf32>
    %64 = tpu.matmul %62, %63, %cst_75 {dimension_numbers = #tpu.dot_dimension_numbers<[1], [0], [0], [1], [0, 0, 1, 1], [], []>} : vector<16x32xf32>, vector<32x100xf32>, vector<16x100xf32> -> vector<16x100xf32>
    %65 = arith.addf %60, %64 : vector<16x100xf32>
    %c0_76 = arith.constant 0 : index
    %c0_77 = arith.constant 0 : index
    %66 = vector.load %arg9[%c0_76, %c0_77] : memref<16x1xf32, #tpu.memory_space<vmem>>, vector<16x1xf32>
    %67 = vector.broadcast %66 : vector<16x1xf32> to vector<16x100xf32>
    %68 = arith.addf %65, %67 : vector<16x100xf32>
    %cst_78 = arith.constant 0.000000e+00 : f32
    %69 = vector.broadcast %cst_78 : f32 to vector<16x100xf32>
    %70 = arith.maximumf %68, %69 : vector<16x100xf32>
    %c0_79 = arith.constant 0 : index
    %c0_80 = arith.constant 0 : index
    %71 = vector.load %arg10[%c0_79, %c0_80] : memref<100x384xf32, #tpu.memory_space<vmem>>, vector<100x384xf32>
    %cst_81 = arith.constant dense<0.000000e+00> : vector<16x384xf32>
    %72 = tpu.matmul %70, %71, %cst_81 {dimension_numbers = #tpu.dot_dimension_numbers<[1], [0], [0], [1], [0, 0, 1, 1], [], []>} : vector<16x100xf32>, vector<100x384xf32>, vector<16x384xf32> -> vector<16x384xf32>
    %c0_82 = arith.constant 0 : index
    %c0_83 = arith.constant 0 : index
    %73 = vector.load %arg18[%c0_82, %c0_83] : memref<16x384xf32, #tpu.memory_space<vmem>>, vector<16x384xf32>
    tpu.vector_store %arg18[%c0_82, %c0_83], %72 {strides = array<i32>} : memref<16x384xf32, #tpu.memory_space<vmem>>, vector<16x384xf32>,
    %cst_84 = arith.constant 0.000000e+00 : f32
    %74 = vector.broadcast %cst_84 : f32 to vector<8x324xf32>
    %c0_85 = arith.constant 0 : index
    %c0_86 = arith.constant 0 : index
    %c0_87 = arith.constant 0 : index
    %c0_88 = arith.constant 0 : index
    %75 = vector.load %arg11[%c0_85, %c0_86, %c0_87, %c0_88] : memref<3x3x8x16xf32, #tpu.memory_space<vmem>>, vector<1x1x8x16xf32>
    %76 = vector.shape_cast %75 : vector<1x1x8x16xf32> to vector<8x16xf32>
    %c0_89 = arith.constant 0 : index
    %c0_90 = arith.constant 0 : index
    %77 = vector.load %arg18[%c0_89, %c0_90] : memref<16x384xf32, #tpu.memory_space<vmem>>, vector<16x324xf32>
    %cst_91 = arith.constant dense<0.000000e+00> : vector<8x324xf32>
    %78 = tpu.matmul %76, %77, %cst_91 {dimension_numbers = #tpu.dot_dimension_numbers<[1], [0], [0], [1], [0, 0, 1, 1], [], []>} : vector<8x16xf32>, vector<16x324xf32>, vector<8x324xf32> -> vector<8x324xf32>
    %79 = arith.addf %74, %78 : vector<8x324xf32>
    %c0_92 = arith.constant 0 : index
    %c1_93 = arith.constant 1 : index
    %c0_94 = arith.constant 0 : index
    %c0_95 = arith.constant 0 : index
    %80 = vector.load %arg11[%c0_92, %c1_93, %c0_94, %c0_95] : memref<3x3x8x16xf32, #tpu.memory_space<vmem>>, vector<1x1x8x16xf32>
    %81 = vector.shape_cast %80 : vector<1x1x8x16xf32> to vector<8x16xf32>
    %c0_96 = arith.constant 0 : index
    %c1_97 = arith.constant 1 : index
    %82 = vector.load %arg18[%c0_96, %c1_97] : memref<16x384xf32, #tpu.memory_space<vmem>>, vector<16x324xf32>
    %cst_98 = arith.constant dense<0.000000e+00> : vector<8x324xf32>
    %83 = tpu.matmul %81, %82, %cst_98 {dimension_numbers = #tpu.dot_dimension_numbers<[1], [0], [0], [1], [0, 0, 1, 1], [], []>} : vector<8x16xf32>, vector<16x324xf32>, vector<8x324xf32> -> vector<8x324xf32>
    %84 = arith.addf %79, %83 : vector<8x324xf32>
    %c0_99 = arith.constant 0 : index
    %c2_100 = arith.constant 2 : index
    %c0_101 = arith.constant 0 : index
    %c0_102 = arith.constant 0 : index
    %85 = vector.load %arg11[%c0_99, %c2_100, %c0_101, %c0_102] : memref<3x3x8x16xf32, #tpu.memory_space<vmem>>, vector<1x1x8x16xf32>
    %86 = vector.shape_cast %85 : vector<1x1x8x16xf32> to vector<8x16xf32>
    %c0_103 = arith.constant 0 : index
    %c2_104 = arith.constant 2 : index
    %87 = vector.load %arg18[%c0_103, %c2_104] : memref<16x384xf32, #tpu.memory_space<vmem>>, vector<16x324xf32>
    %cst_105 = arith.constant dense<0.000000e+00> : vector<8x324xf32>
    %88 = tpu.matmul %86, %87, %cst_105 {dimension_numbers = #tpu.dot_dimension_numbers<[1], [0], [0], [1], [0, 0, 1, 1], [], []>} : vector<8x16xf32>, vector<16x324xf32>, vector<8x324xf32> -> vector<8x324xf32>
    %89 = arith.addf %84, %88 : vector<8x324xf32>
    %c1_106 = arith.constant 1 : index
    %c0_107 = arith.constant 0 : index
    %c0_108 = arith.constant 0 : index
    %c0_109 = arith.constant 0 : index
    %90 = vector.load %arg11[%c1_106, %c0_107, %c0_108, %c0_109] : memref<3x3x8x16xf32, #tpu.memory_space<vmem>>, vector<1x1x8x16xf32>
    %91 = vector.shape_cast %90 : vector<1x1x8x16xf32> to vector<8x16xf32>
    %c0_110 = arith.constant 0 : index
    %c18 = arith.constant 18 : index
    %92 = vector.load %arg18[%c0_110, %c18] : memref<16x384xf32, #tpu.memory_space<vmem>>, vector<16x324xf32>
    %cst_111 = arith.constant dense<0.000000e+00> : vector<8x324xf32>
    %93 = tpu.matmul %91, %92, %cst_111 {dimension_numbers = #tpu.dot_dimension_numbers<[1], [0], [0], [1], [0, 0, 1, 1], [], []>} : vector<8x16xf32>, vector<16x324xf32>, vector<8x324xf32> -> vector<8x324xf32>
    %94 = arith.addf %89, %93 : vector<8x324xf32>
    %c1_112 = arith.constant 1 : index
    %c1_113 = arith.constant 1 : index
    %c0_114 = arith.constant 0 : index
    %c0_115 = arith.constant 0 : index
    %95 = vector.load %arg11[%c1_112, %c1_113, %c0_114, %c0_115] : memref<3x3x8x16xf32, #tpu.memory_space<vmem>>, vector<1x1x8x16xf32>
    %96 = vector.shape_cast %95 : vector<1x1x8x16xf32> to vector<8x16xf32>
    %c0_116 = arith.constant 0 : index
    %c19 = arith.constant 19 : index
    %97 = vector.load %arg18[%c0_116, %c19] : memref<16x384xf32, #tpu.memory_space<vmem>>, vector<16x324xf32>
    %cst_117 = arith.constant dense<0.000000e+00> : vector<8x324xf32>
    %98 = tpu.matmul %96, %97, %cst_117 {dimension_numbers = #tpu.dot_dimension_numbers<[1], [0], [0], [1], [0, 0, 1, 1], [], []>} : vector<8x16xf32>, vector<16x324xf32>, vector<8x324xf32> -> vector<8x324xf32>
    %99 = arith.addf %94, %98 : vector<8x324xf32>
    %c1_118 = arith.constant 1 : index
    %c2_119 = arith.constant 2 : index
    %c0_120 = arith.constant 0 : index
    %c0_121 = arith.constant 0 : index
    %100 = vector.load %arg11[%c1_118, %c2_119, %c0_120, %c0_121] : memref<3x3x8x16xf32, #tpu.memory_space<vmem>>, vector<1x1x8x16xf32>
    %101 = vector.shape_cast %100 : vector<1x1x8x16xf32> to vector<8x16xf32>
    %c0_122 = arith.constant 0 : index
    %c20_123 = arith.constant 20 : index
    %102 = vector.load %arg18[%c0_122, %c20_123] : memref<16x384xf32, #tpu.memory_space<vmem>>, vector<16x324xf32>
    %cst_124 = arith.constant dense<0.000000e+00> : vector<8x324xf32>
    %103 = tpu.matmul %101, %102, %cst_124 {dimension_numbers = #tpu.dot_dimension_numbers<[1], [0], [0], [1], [0, 0, 1, 1], [], []>} : vector<8x16xf32>, vector<16x324xf32>, vector<8x324xf32> -> vector<8x324xf32>
    %104 = arith.addf %99, %103 : vector<8x324xf32>
    %c2_125 = arith.constant 2 : index
    %c0_126 = arith.constant 0 : index
    %c0_127 = arith.constant 0 : index
    %c0_128 = arith.constant 0 : index
    %105 = vector.load %arg11[%c2_125, %c0_126, %c0_127, %c0_128] : memref<3x3x8x16xf32, #tpu.memory_space<vmem>>, vector<1x1x8x16xf32>
    %106 = vector.shape_cast %105 : vector<1x1x8x16xf32> to vector<8x16xf32>
    %c0_129 = arith.constant 0 : index
    %c36 = arith.constant 36 : index
    %107 = vector.load %arg18[%c0_129, %c36] : memref<16x384xf32, #tpu.memory_space<vmem>>, vector<16x324xf32>
    %cst_130 = arith.constant dense<0.000000e+00> : vector<8x324xf32>
    %108 = tpu.matmul %106, %107, %cst_130 {dimension_numbers = #tpu.dot_dimension_numbers<[1], [0], [0], [1], [0, 0, 1, 1], [], []>} : vector<8x16xf32>, vector<16x324xf32>, vector<8x324xf32> -> vector<8x324xf32>
    %109 = arith.addf %104, %108 : vector<8x324xf32>
    %c2_131 = arith.constant 2 : index
    %c1_132 = arith.constant 1 : index
    %c0_133 = arith.constant 0 : index
    %c0_134 = arith.constant 0 : index
    %110 = vector.load %arg11[%c2_131, %c1_132, %c0_133, %c0_134] : memref<3x3x8x16xf32, #tpu.memory_space<vmem>>, vector<1x1x8x16xf32>
    %111 = vector.shape_cast %110 : vector<1x1x8x16xf32> to vector<8x16xf32>
    %c0_135 = arith.constant 0 : index
    %c37 = arith.constant 37 : index
    %112 = vector.load %arg18[%c0_135, %c37] : memref<16x384xf32, #tpu.memory_space<vmem>>, vector<16x324xf32>
    %cst_136 = arith.constant dense<0.000000e+00> : vector<8x324xf32>
    %113 = tpu.matmul %111, %112, %cst_136 {dimension_numbers = #tpu.dot_dimension_numbers<[1], [0], [0], [1], [0, 0, 1, 1], [], []>} : vector<8x16xf32>, vector<16x324xf32>, vector<8x324xf32> -> vector<8x324xf32>
    %114 = arith.addf %109, %113 : vector<8x324xf32>
    %c2_137 = arith.constant 2 : index
    %c2_138 = arith.constant 2 : index
    %c0_139 = arith.constant 0 : index
    %c0_140 = arith.constant 0 : index
    %115 = vector.load %arg11[%c2_137, %c2_138, %c0_139, %c0_140] : memref<3x3x8x16xf32, #tpu.memory_space<vmem>>, vector<1x1x8x16xf32>
    %116 = vector.shape_cast %115 : vector<1x1x8x16xf32> to vector<8x16xf32>
    %c0_141 = arith.constant 0 : index
    %c38 = arith.constant 38 : index
    %117 = vector.load %arg18[%c0_141, %c38] : memref<16x384xf32, #tpu.memory_space<vmem>>, vector<16x324xf32>
    %cst_142 = arith.constant dense<0.000000e+00> : vector<8x324xf32>
    %118 = tpu.matmul %116, %117, %cst_142 {dimension_numbers = #tpu.dot_dimension_numbers<[1], [0], [0], [1], [0, 0, 1, 1], [], []>} : vector<8x16xf32>, vector<16x324xf32>, vector<8x324xf32> -> vector<8x324xf32>
    %119 = arith.addf %114, %118 : vector<8x324xf32>
    %c0_143 = arith.constant 0 : index
    %c0_144 = arith.constant 0 : index
    %120 = vector.load %arg12[%c0_143, %c0_144] : memref<8x1xf32, #tpu.memory_space<vmem>>, vector<8x1xf32>
    %121 = vector.broadcast %120 : vector<8x1xf32> to vector<8x324xf32>
    %122 = arith.addf %119, %121 : vector<8x324xf32>
    %cst_145 = arith.constant 0.000000e+00 : f32
    %123 = vector.broadcast %cst_145 : f32 to vector<8x324xf32>
    %124 = arith.maximumf %122, %123 : vector<8x324xf32>
    %c0_146 = arith.constant 0 : index
    %c0_147 = arith.constant 0 : index
    %125 = vector.load %arg13[%c0_146, %c0_147] : memref<324x1280xf32, #tpu.memory_space<vmem>>, vector<324x1280xf32>
    %cst_148 = arith.constant dense<0.000000e+00> : vector<8x1280xf32>
    %126 = tpu.matmul %124, %125, %cst_148 {dimension_numbers = #tpu.dot_dimension_numbers<[1], [0], [0], [1], [0, 0, 1, 1], [], []>} : vector<8x324xf32>, vector<324x1280xf32>, vector<8x1280xf32> -> vector<8x1280xf32>
    %c0_149 = arith.constant 0 : index
    %c0_150 = arith.constant 0 : index
    %127 = vector.load %arg19[%c0_149, %c0_150] : memref<8x1280xf32, #tpu.memory_space<vmem>>, vector<8x1280xf32>
    tpu.vector_store %arg19[%c0_149, %c0_150], %126 {strides = array<i32>} : memref<8x1280xf32, #tpu.memory_space<vmem>>, vector<8x1280xf32>,
    %cst_151 = arith.constant 0.000000e+00 : f32
    %128 = vector.broadcast %cst_151 : f32 to vector<1x1156xf32>
    %c0_152 = arith.constant 0 : index
    %c0_153 = arith.constant 0 : index
    %c0_154 = arith.constant 0 : index
    %c0_155 = arith.constant 0 : index
    %129 = vector.load %arg14[%c0_152, %c0_153, %c0_154, %c0_155] : memref<3x3x1x8xf32, #tpu.memory_space<vmem>>, vector<1x1x1x8xf32>
    %130 = vector.shape_cast %129 : vector<1x1x1x8xf32> to vector<1x8xf32>
    %c0_156 = arith.constant 0 : index
    %c0_157 = arith.constant 0 : index
    %131 = vector.load %arg19[%c0_156, %c0_157] : memref<8x1280xf32, #tpu.memory_space<vmem>>, vector<8x1156xf32>
    %cst_158 = arith.constant dense<0.000000e+00> : vector<1x1156xf32>
    %132 = tpu.matmul %130, %131, %cst_158 {dimension_numbers = #tpu.dot_dimension_numbers<[1], [0], [0], [1], [0, 0, 1, 1], [], []>} : vector<1x8xf32>, vector<8x1156xf32>, vector<1x1156xf32> -> vector<1x1156xf32>
    %133 = arith.addf %128, %132 : vector<1x1156xf32>
    %c0_159 = arith.constant 0 : index
    %c1_160 = arith.constant 1 : index
    %c0_161 = arith.constant 0 : index
    %c0_162 = arith.constant 0 : index
    %134 = vector.load %arg14[%c0_159, %c1_160, %c0_161, %c0_162] : memref<3x3x1x8xf32, #tpu.memory_space<vmem>>, vector<1x1x1x8xf32>
    %135 = vector.shape_cast %134 : vector<1x1x1x8xf32> to vector<1x8xf32>
    %c0_163 = arith.constant 0 : index
    %c1_164 = arith.constant 1 : index
    %136 = vector.load %arg19[%c0_163, %c1_164] : memref<8x1280xf32, #tpu.memory_space<vmem>>, vector<8x1156xf32>
    %cst_165 = arith.constant dense<0.000000e+00> : vector<1x1156xf32>
    %137 = tpu.matmul %135, %136, %cst_165 {dimension_numbers = #tpu.dot_dimension_numbers<[1], [0], [0], [1], [0, 0, 1, 1], [], []>} : vector<1x8xf32>, vector<8x1156xf32>, vector<1x1156xf32> -> vector<1x1156xf32>
    %138 = arith.addf %133, %137 : vector<1x1156xf32>
    %c0_166 = arith.constant 0 : index
    %c2_167 = arith.constant 2 : index
    %c0_168 = arith.constant 0 : index
    %c0_169 = arith.constant 0 : index
    %139 = vector.load %arg14[%c0_166, %c2_167, %c0_168, %c0_169] : memref<3x3x1x8xf32, #tpu.memory_space<vmem>>, vector<1x1x1x8xf32>
    %140 = vector.shape_cast %139 : vector<1x1x1x8xf32> to vector<1x8xf32>
    %c0_170 = arith.constant 0 : index
    %c2_171 = arith.constant 2 : index
    %141 = vector.load %arg19[%c0_170, %c2_171] : memref<8x1280xf32, #tpu.memory_space<vmem>>, vector<8x1156xf32>
    %cst_172 = arith.constant dense<0.000000e+00> : vector<1x1156xf32>
    %142 = tpu.matmul %140, %141, %cst_172 {dimension_numbers = #tpu.dot_dimension_numbers<[1], [0], [0], [1], [0, 0, 1, 1], [], []>} : vector<1x8xf32>, vector<8x1156xf32>, vector<1x1156xf32> -> vector<1x1156xf32>
    %143 = arith.addf %138, %142 : vector<1x1156xf32>
    %c1_173 = arith.constant 1 : index
    %c0_174 = arith.constant 0 : index
    %c0_175 = arith.constant 0 : index
    %c0_176 = arith.constant 0 : index
    %144 = vector.load %arg14[%c1_173, %c0_174, %c0_175, %c0_176] : memref<3x3x1x8xf32, #tpu.memory_space<vmem>>, vector<1x1x1x8xf32>
    %145 = vector.shape_cast %144 : vector<1x1x1x8xf32> to vector<1x8xf32>
    %c0_177 = arith.constant 0 : index
    %c34 = arith.constant 34 : index
    %146 = vector.load %arg19[%c0_177, %c34] : memref<8x1280xf32, #tpu.memory_space<vmem>>, vector<8x1156xf32>
    %cst_178 = arith.constant dense<0.000000e+00> : vector<1x1156xf32>
    %147 = tpu.matmul %145, %146, %cst_178 {dimension_numbers = #tpu.dot_dimension_numbers<[1], [0], [0], [1], [0, 0, 1, 1], [], []>} : vector<1x8xf32>, vector<8x1156xf32>, vector<1x1156xf32> -> vector<1x1156xf32>
    %148 = arith.addf %143, %147 : vector<1x1156xf32>
    %c1_179 = arith.constant 1 : index
    %c1_180 = arith.constant 1 : index
    %c0_181 = arith.constant 0 : index
    %c0_182 = arith.constant 0 : index
    %149 = vector.load %arg14[%c1_179, %c1_180, %c0_181, %c0_182] : memref<3x3x1x8xf32, #tpu.memory_space<vmem>>, vector<1x1x1x8xf32>
    %150 = vector.shape_cast %149 : vector<1x1x1x8xf32> to vector<1x8xf32>
    %c0_183 = arith.constant 0 : index
    %c35 = arith.constant 35 : index
    %151 = vector.load %arg19[%c0_183, %c35] : memref<8x1280xf32, #tpu.memory_space<vmem>>, vector<8x1156xf32>
    %cst_184 = arith.constant dense<0.000000e+00> : vector<1x1156xf32>
    %152 = tpu.matmul %150, %151, %cst_184 {dimension_numbers = #tpu.dot_dimension_numbers<[1], [0], [0], [1], [0, 0, 1, 1], [], []>} : vector<1x8xf32>, vector<8x1156xf32>, vector<1x1156xf32> -> vector<1x1156xf32>
    %153 = arith.addf %148, %152 : vector<1x1156xf32>
    %c1_185 = arith.constant 1 : index
    %c2_186 = arith.constant 2 : index
    %c0_187 = arith.constant 0 : index
    %c0_188 = arith.constant 0 : index
    %154 = vector.load %arg14[%c1_185, %c2_186, %c0_187, %c0_188] : memref<3x3x1x8xf32, #tpu.memory_space<vmem>>, vector<1x1x1x8xf32>
    %155 = vector.shape_cast %154 : vector<1x1x1x8xf32> to vector<1x8xf32>
    %c0_189 = arith.constant 0 : index
    %c36_190 = arith.constant 36 : index
    %156 = vector.load %arg19[%c0_189, %c36_190] : memref<8x1280xf32, #tpu.memory_space<vmem>>, vector<8x1156xf32>
    %cst_191 = arith.constant dense<0.000000e+00> : vector<1x1156xf32>
    %157 = tpu.matmul %155, %156, %cst_191 {dimension_numbers = #tpu.dot_dimension_numbers<[1], [0], [0], [1], [0, 0, 1, 1], [], []>} : vector<1x8xf32>, vector<8x1156xf32>, vector<1x1156xf32> -> vector<1x1156xf32>
    %158 = arith.addf %153, %157 : vector<1x1156xf32>
    %c2_192 = arith.constant 2 : index
    %c0_193 = arith.constant 0 : index
    %c0_194 = arith.constant 0 : index
    %c0_195 = arith.constant 0 : index
    %159 = vector.load %arg14[%c2_192, %c0_193, %c0_194, %c0_195] : memref<3x3x1x8xf32, #tpu.memory_space<vmem>>, vector<1x1x1x8xf32>
    %160 = vector.shape_cast %159 : vector<1x1x1x8xf32> to vector<1x8xf32>
    %c0_196 = arith.constant 0 : index
    %c68 = arith.constant 68 : index
    %161 = vector.load %arg19[%c0_196, %c68] : memref<8x1280xf32, #tpu.memory_space<vmem>>, vector<8x1156xf32>
    %cst_197 = arith.constant dense<0.000000e+00> : vector<1x1156xf32>
    %162 = tpu.matmul %160, %161, %cst_197 {dimension_numbers = #tpu.dot_dimension_numbers<[1], [0], [0], [1], [0, 0, 1, 1], [], []>} : vector<1x8xf32>, vector<8x1156xf32>, vector<1x1156xf32> -> vector<1x1156xf32>
    %163 = arith.addf %158, %162 : vector<1x1156xf32>
    %c2_198 = arith.constant 2 : index
    %c1_199 = arith.constant 1 : index
    %c0_200 = arith.constant 0 : index
    %c0_201 = arith.constant 0 : index
    %164 = vector.load %arg14[%c2_198, %c1_199, %c0_200, %c0_201] : memref<3x3x1x8xf32, #tpu.memory_space<vmem>>, vector<1x1x1x8xf32>
    %165 = vector.shape_cast %164 : vector<1x1x1x8xf32> to vector<1x8xf32>
    %c0_202 = arith.constant 0 : index
    %c69 = arith.constant 69 : index
    %166 = vector.load %arg19[%c0_202, %c69] : memref<8x1280xf32, #tpu.memory_space<vmem>>, vector<8x1156xf32>
    %cst_203 = arith.constant dense<0.000000e+00> : vector<1x1156xf32>
    %167 = tpu.matmul %165, %166, %cst_203 {dimension_numbers = #tpu.dot_dimension_numbers<[1], [0], [0], [1], [0, 0, 1, 1], [], []>} : vector<1x8xf32>, vector<8x1156xf32>, vector<1x1156xf32> -> vector<1x1156xf32>
    %168 = arith.addf %163, %167 : vector<1x1156xf32>
    %c2_204 = arith.constant 2 : index
    %c2_205 = arith.constant 2 : index
    %c0_206 = arith.constant 0 : index
    %c0_207 = arith.constant 0 : index
    %169 = vector.load %arg14[%c2_204, %c2_205, %c0_206, %c0_207] : memref<3x3x1x8xf32, #tpu.memory_space<vmem>>, vector<1x1x1x8xf32>
    %170 = vector.shape_cast %169 : vector<1x1x1x8xf32> to vector<1x8xf32>
    %c0_208 = arith.constant 0 : index
    %c70 = arith.constant 70 : index
    %171 = vector.load %arg19[%c0_208, %c70] : memref<8x1280xf32, #tpu.memory_space<vmem>>, vector<8x1156xf32>
    %cst_209 = arith.constant dense<0.000000e+00> : vector<1x1156xf32>
    %172 = tpu.matmul %170, %171, %cst_209 {dimension_numbers = #tpu.dot_dimension_numbers<[1], [0], [0], [1], [0, 0, 1, 1], [], []>} : vector<1x8xf32>, vector<8x1156xf32>, vector<1x1156xf32> -> vector<1x1156xf32>
    %173 = arith.addf %168, %172 : vector<1x1156xf32>
    %c0_210 = arith.constant 0 : index
    %c0_211 = arith.constant 0 : index
    %174 = vector.load %arg15[%c0_210, %c0_211] : memref<1x1xf32, #tpu.memory_space<vmem>>, vector<1x1xf32>
    %175 = vector.broadcast %174 : vector<1x1xf32> to vector<1x1156xf32>
    %176 = arith.addf %173, %175 : vector<1x1156xf32>
    %177 = arith.negf %176 : vector<1x1156xf32>
    %178 = math.exp %177 : vector<1x1156xf32>
    %cst_212 = arith.constant 1.000000e+00 : f32
    %179 = vector.broadcast %cst_212 : f32 to vector<1x1156xf32>
    %180 = arith.addf %179, %178 : vector<1x1156xf32>
    %181 = arith.divf %179, %180 : vector<1x1156xf32>
    %182 = vector.shape_cast %181 : vector<1x1156xf32> to vector<1x1x1156xf32>
    %c0_213 = arith.constant 0 : index
    %c0_214 = arith.constant 0 : index
    %c0_215 = arith.constant 0 : index
    %183 = vector.load %arg16[%c0_213, %c0_214, %c0_215] : memref<1x1x1156xf32, #tpu.memory_space<vmem>>, vector<1x1x1156xf32>
    tpu.vector_store %arg16[%c0_213, %c0_214, %c0_215], %182 {strides = array<i32>} : memref<1x1x1156xf32, #tpu.memory_space<vmem>>, vector<1x1x1156xf32>,
    return
  }
  func.func @transform_0(%arg0: i32) -> (i32, i32, i32) {
    %c0_i32 = arith.constant 0 : i32
    %c0_i32_0 = arith.constant 0 : i32
    %c0_i32_1 = arith.constant 0 : i32
    return %arg0, %c0_i32, %c0_i32_0 : i32, i32, i32
  }
  func.func @transform_1(%arg0: i32) -> (i32, i32) {
    %c0_i32 = arith.constant 0 : i32
    %c0_i32_0 = arith.constant 0 : i32
    %c0_i32_1 = arith.constant 0 : i32
    return %c0_i32, %c0_i32_0 : i32, i32
  }
  func.func @transform_2(%arg0: i32) -> (i32, i32) {
    %c0_i32 = arith.constant 0 : i32
    %c0_i32_0 = arith.constant 0 : i32
    %c0_i32_1 = arith.constant 0 : i32
    return %c0_i32, %c0_i32_0 : i32, i32
  }
  func.func @transform_3(%arg0: i32) -> (i32, i32) {
    %c0_i32 = arith.constant 0 : i32
    %c0_i32_0 = arith.constant 0 : i32
    %c0_i32_1 = arith.constant 0 : i32
    return %c0_i32, %c0_i32_0 : i32, i32
  }
  func.func @transform_4(%arg0: i32) -> (i32, i32) {
    %c0_i32 = arith.constant 0 : i32
    %c0_i32_0 = arith.constant 0 : i32
    %c0_i32_1 = arith.constant 0 : i32
    return %c0_i32, %c0_i32_0 : i32, i32
  }
  func.func @transform_5(%arg0: i32) -> (i32, i32) {
    %c0_i32 = arith.constant 0 : i32
    %c0_i32_0 = arith.constant 0 : i32
    %c0_i32_1 = arith.constant 0 : i32
    return %c0_i32, %c0_i32_0 : i32, i32
  }
  func.func @transform_6(%arg0: i32) -> (i32, i32) {
    %c0_i32 = arith.constant 0 : i32
    %c0_i32_0 = arith.constant 0 : i32
    %c0_i32_1 = arith.constant 0 : i32
    return %c0_i32, %c0_i32_0 : i32, i32
  }
  func.func @transform_7(%arg0: i32) -> (i32, i32, i32, i32) {
    %c0_i32 = arith.constant 0 : i32
    %c0_i32_0 = arith.constant 0 : i32
    %c0_i32_1 = arith.constant 0 : i32
    %c0_i32_2 = arith.constant 0 : i32
    %c0_i32_3 = arith.constant 0 : i32
    return %c0_i32, %c0_i32_0, %c0_i32_1, %c0_i32_2 : i32, i32, i32, i32
  }
  func.func @transform_8(%arg0: i32) -> (i32, i32) {
    %c0_i32 = arith.constant 0 : i32
    %c0_i32_0 = arith.constant 0 : i32
    %c0_i32_1 = arith.constant 0 : i32
    return %c0_i32, %c0_i32_0 : i32, i32
  }
  func.func @transform_9(%arg0: i32) -> (i32, i32) {
    %c0_i32 = arith.constant 0 : i32
    %c0_i32_0 = arith.constant 0 : i32
    %c0_i32_1 = arith.constant 0 : i32
    return %c0_i32, %c0_i32_0 : i32, i32
  }
  func.func @transform_10(%arg0: i32) -> (i32, i32, i32, i32) {
    %c0_i32 = arith.constant 0 : i32
    %c0_i32_0 = arith.constant 0 : i32
    %c0_i32_1 = arith.constant 0 : i32
    %c0_i32_2 = arith.constant 0 : i32
    %c0_i32_3 = arith.constant 0 : i32
    return %c0_i32, %c0_i32_0, %c0_i32_1, %c0_i32_2 : i32, i32, i32, i32
  }
  func.func @transform_11(%arg0: i32) -> (i32, i32) {
    %c0_i32 = arith.constant 0 : i32
    %c0_i32_0 = arith.constant 0 : i32
    %c0_i32_1 = arith.constant 0 : i32
    return %c0_i32, %c0_i32_0 : i32, i32
  }
  func.func @transform_12(%arg0: i32) -> (i32, i32) {
    %c0_i32 = arith.constant 0 : i32
    %c0_i32_0 = arith.constant 0 : i32
    %c0_i32_1 = arith.constant 0 : i32
    return %c0_i32, %c0_i32_0 : i32, i32
  }
  func.func @transform_13(%arg0: i32) -> (i32, i32, i32, i32) {
    %c0_i32 = arith.constant 0 : i32
    %c0_i32_0 = arith.constant 0 : i32
    %c0_i32_1 = arith.constant 0 : i32
    %c0_i32_2 = arith.constant 0 : i32
    %c0_i32_3 = arith.constant 0 : i32
    return %c0_i32, %c0_i32_0, %c0_i32_1, %c0_i32_2 : i32, i32, i32, i32
  }
  func.func @transform_14(%arg0: i32) -> (i32, i32) {
    %c0_i32 = arith.constant 0 : i32
    %c0_i32_0 = arith.constant 0 : i32
    %c0_i32_1 = arith.constant 0 : i32
    return %c0_i32, %c0_i32_0 : i32, i32
  }
  func.func @transform_15(%arg0: i32) -> (i32, i32, i32) {
    %c0_i32 = arith.constant 0 : i32
    %c0_i32_0 = arith.constant 0 : i32
    %c0_i32_1 = arith.constant 0 : i32
    return %arg0, %c0_i32, %c0_i32_0 : i32, i32, i32
  }
}

</mosaic_0001>

<bundles_post_ra>
// kernel: decoder_forward.1
= control target key start
LH: loop header
LB: loop body
LE: loop exit
PB: predicated region body
PF: predicated region fallthrough
CT: control target
= control target key end

     0   :  { %s8904_s0 = inlined_call_operand.hbm [shape: f32[2,1,32], index: 0, kind: input, shape index: {}]   ;;  %s8905_s1 = inlined_call_operand.hbm [shape: f32[32,256], index: 1, kind: input, shape index: {}]   ;;  %s8906_s2 = inlined_call_operand.hbm [shape: f32[1,256], index: 2, kind: input, shape index: {}]   ;;  %s8907_s3 = inlined_call_operand.hbm [shape: f32[256,512], index: 3, kind: input, shape index: {}]   ;;  %s8908_s4 = inlined_call_operand.hbm [shape: f32[1,512], index: 4, kind: input, shape index: {}]   ;;  %s8909_s5 = inlined_call_operand.hbm [shape: f32[32,512], index: 5, kind: input, shape index: {}]   ;;  %s8910_s6 = inlined_call_operand.hbm [shape: f32[512,128], index: 6, kind: input, shape index: {}]   ;;  %s8911_s7 = inlined_call_operand.vmem [shape: f32[3,3,16,32], index: 7, kind: input, shape index: {}]   ;;  %s8912_s8 = inlined_call_operand.vmem [shape: f32[16,1], index: 8, kind: input, shape index: {}]   ;;  %s8913_s9 = inlined_call_operand.hbm [shape: f32[100,384], index: 9, kind: input, shape index: {}]   ;;  %s8914_s10 = inlined_call_operand.vmem [shape: f32[3,3,8,16], index: 10, kind: input, shape index: {}]   ;;  %s8915_s11 = inlined_call_operand.vmem [shape: f32[8,1], index: 11, kind: input, shape index: {}]   ;;  %s8916_s12 = inlined_call_operand.hbm [shape: f32[324,1280], index: 12, kind: input, shape index: {}]   ;;  %s8917_s13 = inlined_call_operand.vmem [shape: f32[3,3,1,8], index: 13, kind: input, shape index: {}]   ;;  %s8918_s14 = inlined_call_operand.<no memory space> [shape: f32[1,1], index: 14, kind: input, shape index: {}]   ;;  %s8919_s15 = inlined_call_operand.vmem [shape: f32[2,1,1156], index: 15, kind: output, shape index: {}]  }
   0x1   :  { %8923 = sst [smem:[#allocation25_spill]] %s8905_s1  ;;  %v20_v0 = vstv %s8918_s14 }
   0x2   :  { %8924 = sst [smem:[#allocation26_spill]] %s8907_s3  ;;  %21 = vst [vmem:[#allocation5] sm:$0x1] %v20_v0 }
   0x3   :  { %8925 = sst [smem:[#allocation27_spill]] %s8912_s8 }
   0x4   :  { %8926 = sst [smem:[#allocation28_spill]] %s8914_s10 }
   0x5   :  { %8927 = sst [smem:[#allocation29_spill]] %s8915_s11 }
   0x6   :  { %8928 = sst [smem:[#allocation30_spill]] %s8917_s13 }
   0x7   :  { %8929 = sst [smem:[#allocation31_spill]] %s8919_s15 }
   0x8   :  { %22 = vsyncpa [#allocation7], 0 }
   0x9   :  { %24 = vsyncpa [#allocation7 + $0x1], 0 }
   0xa   :  { %25 = vsyncpa [#allocation9], 0 }
   0xb   :  { %26 = vsyncpa [#allocation12], 0 }
   0xc   :  { %27 = vsyncpa [#allocation15], 0 }
   0xd   :  { %28 = vsyncpa [#allocation18], 0  ;;  %s7537_s20 = smov 0   ;;  %s7539_s21 = smov 0  }
   0xe   :  { %s7541_s22 = smov 0   ;;  %s7543_s23 = smov 0  }
   0xf LB: > { %s8930_s1 = sld [smem:[#allocation25_spill]]  ;;  %s7561_s26 = sadd.s32 4294967295, %s7415_s23   ;;  %s7415_s23 = sphi %s7543_s23, %s8960_s23   ;;  %s7411_s22 = sphi %s7541_s22, %s8959_s22   ;;  %s7407_s21 = sphi %s7539_s21, %s8958_s21   ;;  %s7403_s20 = sphi %s7537_s20, %s8957_s20  }
  0x10   : > { %p6278_p0 = scmp.ge.s32.totalorder %s7415_s23, 1  ;;  %p55_p1 = scmp.eq.s32.totalorder %s7561_s26, 0 }
  0x11   : > { %p385_p2 = scmp.lt.s32.totalorder %s7415_s23, 3  ;;  %s7417_s28 = smov [#allocation8]  }
  0x12   : > { %s398_s29 = sshll.u32 %s7417_s28, 4  ;;  %s8932_s3 = sld [smem:[#allocation26_spill]]  ;;  %s399_s29 = int_to_ptr.vmem [resolvable:$true] %s398_s29 }
  0x13   : > { %p7566_p3 = pnand %p6278_p0, %p385_p2  ;;  %s7418_s19 = smov [#allocation11]  }
  0x14   : > { %s424_s14 = sshll.u32 %s7418_s19, 4  ;;  %s7419_s24 = smov 256   ;;  %s425_s14 = int_to_ptr.vmem [resolvable:$true] %s424_s14 }
  0x15   : > { %s396_s25 = sshll.u32 %s8930_s1, 4  ;;  %p6542_p4 = pneg %p7566_p3  ;;  %s397_s25 = int_to_ptr.hbm [resolvable:$true] %s396_s25 }
  0x16   : > { %s7420_s28 = smov 16   ;;  %s7421_s1 = smov 512  }
  0x17   : > { %p7577_p5 = pnand %p6542_p4, %p55_p1  ;;  %s7422_s30 = smov 32  }
  0x18   : > { %s422_s17 = sshll.u32 %s8932_s3, 4  ;;  %s448_s15 = sshll.u32 %s8909_s5, 4  ;;  %s423_s17 = int_to_ptr.hbm [resolvable:$true] %s422_s17  ;;  %s449_s15 = int_to_ptr.hbm [resolvable:$true] %s448_s15 }
  0x19   : > { %6545 = dma.hbm_to_vmem [thread:$0]  (!%p7577_p5), %s397_s25, 1024, %s399_s29, [#allocation9], %s7419_s24, %s7419_s24, %s7420_s28  }
  0x1a   : > { %6551 = dma.hbm_to_vmem [thread:$0]  (!%p7577_p5), %s423_s17, 16384, %s425_s14, [#allocation12], %s7421_s1, %s7421_s1, %s7422_s30  }
  0x1b   : > { %s7423_s13 = smov [#allocation14]   ;;  %s482_s8 = sshll.u32 %s8913_s9, 4  ;;  %s483_s8 = int_to_ptr.hbm [resolvable:$true] %s482_s8 }
  0x1c   : > { %s450_s11 = sshll.u32 %s7423_s13, 4  ;;  %s7424_s25 = smov [#allocation17]   ;;  %s451_s11 = int_to_ptr.vmem [resolvable:$true] %s450_s11 }
  0x1d   : > { %6557 = dma.hbm_to_vmem [thread:$0]  (!%p7577_p5), %s449_s15, 2048, %s451_s11, [#allocation15], %s7421_s1, %s7421_s1, %s7422_s30  }
  0x1e   : > { %s484_s29 = sshll.u32 %s7424_s25, 4  ;;  %s7425_s17 = smov 384   ;;  %s485_s29 = int_to_ptr.vmem [resolvable:$true] %s484_s29 }
  0x1f   : > { %s7426_s14 = smov 24   ;;  %s411_s13 = sshll.u32 %s8906_s2, 4  ;;  %s412_s13 = int_to_ptr.hbm [resolvable:$true] %s411_s13 }
  0x20   : > { %6563 = dma.hbm_to_vmem [thread:$0]  (!%p7577_p5), %s483_s8, 4992, %s485_s29, [#allocation18], %s7425_s17, %s7425_s17, %s7426_s14  }
  0x21   : > { %s7427_s28 = smov [#allocation10]   ;;  %s437_s1 = sshll.u32 %s8908_s4, 4  ;;  %s438_s1 = int_to_ptr.hbm [resolvable:$true] %s437_s1 }
  0x22   : > { %s413_s10 = sshll.u32 %s7427_s28, 4  ;;  %s7428_s11 = smov [#allocation13]   ;;  %s414_s10 = int_to_ptr.vmem [resolvable:$true] %s413_s10 }
  0x23   : > { %6548 = dma.hbm_to_vmem [thread:$0]  (!%p7577_p5), %s412_s13, 32, %s414_s10, [#allocation9]  }
  0x24   : > { %s439_s15 = sshll.u32 %s7428_s11, 4  ;;  %s462_s25 = sshll.u32 %s8910_s6, 4  ;;  %s440_s15 = int_to_ptr.vmem [resolvable:$true] %s439_s15  ;;  %s463_s25 = int_to_ptr.hbm [resolvable:$true] %s462_s25 }
  0x25   : > { %6554 = dma.hbm_to_vmem [thread:$0]  (!%p7577_p5), %s438_s1, 64, %s440_s15, [#allocation12]  }
  0x26   : > { %s7429_s29 = smov [#allocation16]   ;;  %s502_s24 = sshll.u32 %s8916_s12, 4  ;;  %s503_s24 = int_to_ptr.hbm [resolvable:$true] %s502_s24 }
  0x27   : > { %s464_s17 = sshll.u32 %s7429_s29, 4  ;;  %s7430_s13 = smov 128   ;;  %s465_s17 = int_to_ptr.vmem [resolvable:$true] %s464_s17 }
  0x28   : > { %s7431_s28 = smov 8   ;;  %s7432_s10 = smov [#allocation19]  }
  0x29   : > { %6560 = dma.hbm_to_vmem [thread:$0]  (!%p7577_p5), %s463_s25, 8192, %s465_s17, [#allocation15], %s7430_s13, %s7430_s13, %s7431_s28  }
  0x2a   : > { %s504_s16 = sshll.u32 %s7432_s10, 4  ;;  %s7433_s19 = smov 1280   ;;  %s505_s16 = int_to_ptr.vmem [resolvable:$true] %s504_s16 }
  0x2b   : > { %s7434_s1 = smov 80   ;;  %s7616_s11 = sadd.s32 1, %s7415_s23  }
  0x2c   : > { %6566 = dma.hbm_to_vmem [thread:$0]  (!%p7577_p5), %s503_s24, 52480, %s505_s16, [#allocation18], %s7433_s19, %s7433_s19, %s7434_s1  }
  0x2d   : > { %s41_s15 = sadd.s32 1, %s7411_s22  ;;  %s38_s30 = ssub.s32 %s7415_s23, %s7616_s11 }
  0x2e   : > { %p48_p6 = scmp.ne.s32.totalorder %s7411_s22, %s7407_s21  ;;  %p39_p7 = scmp.eq.s32.totalorder %s38_s30, 0 }
  0x2f   : > { %p49_p8 = scmp.eq.s32.totalorder %s7415_s23, 0  ;;  %p54_p9 = scmp.ne.s32.totalorder %s7407_s21, %s7403_s20 }
  0x30   : > { %p6579_p10 = scmp.lt.s32.totalorder %s7415_s23, 2  ;;  %s524_s18 = sand.u32 1, %s7411_s22  }
  0x31   : > { %s7628_s8 = scalar_select %p39_p7, %s7411_s22, %s41_s15  }
  0x32   : > { %p50_p11 = por %p49_p8, %p48_p6  ;;  %p7632_p12 = por %p55_p1, %p54_p9 }
  0x33   : > { %s530_s14 = scalar_lea.hbm %s8904_s0, %s7415_s23  ;;  %s527_s24 = scalar_lea.vmem [#allocation6], %s524_s18 }
  0x34   : > { %s532_s3 = sshll.u32 %s530_s14, 4  ;;  %s534_s13 = sshll.u32 %s527_s24, 4  ;;  %s533_s3 = int_to_ptr.hbm [resolvable:$true] %s532_s3  ;;  %s535_s13 = int_to_ptr.vmem [resolvable:$true] %s534_s13 }
  0x35   : > { %p7641_p13 = pnand %p6579_p10, %p50_p11  ;;  %s525_s28 = scalar_lea.sflag [#allocation7], %s524_s18 }
  0x36   : > { %s7335_s10 = sshra.s32 %s533_s3, 4  ;;  %s7342_s1 = scalar_lea.hbm %s8904_s0, 2  ;;  %s7336_s10 = int_to_ptr.hbm [resolvable:$true] %s7335_s10 }
  0x37   : > { %s7337_s16 = scalar_lea.hbm %s7336_s10, 1  ;;  %p7339_p2 = pneg %p7641_p13 }
  0x38   : > { %p7338_p0 = scmp.ne.s32.totalorder %s7336_s10, %s7337_s16  ;;  %p7343_p6 = scmp.lt.s32.totalorder %s7336_s10, %s8904_s0 }
  0x39   : > { %p7344_p7 = scmp.lt.s32.totalorder %s7342_s1, %s7337_s16 }
  0x3a   : > { %p7340_p4 = pnand %p7339_p2, %p7338_p0 }
  0x3b   : > { %p7345_p8 = por %p7344_p7, %p7343_p6 }
  0x3c   : > { %p7341_p5 = pneg %p7340_p4 }
  0x3e   : > { %p7346_p9 = pnand %p7345_p8, %p7341_p5 }
  0x40   : > { %7349 = shalt.err (!%p7346_p9)
}
  0x41   : > { %6570 = dma.hbm_to_vmem [thread:$0]  (!%p7641_p13), %s533_s3, 16, %s535_s13, %s525_s28  }
  0x42   : > { %543 = sbr.rel (%p7566_p3) target bundleno = 2054 (0x806), region = 80  ;;  %s545_s18 = sand.u32 (!%p7566_p3), 1, %s7407_s21  }
  0x43   : > { %s546_s29 = scalar_lea.sflag (!%p7566_p3), [#allocation7], %s545_s18  ;;  %s7658_s17 = scalar_lea.vmem (!%p7566_p3), [#allocation6], %s545_s18 }
  0x47   : > { %7382 = dma.done.wait (%p7632_p12), %s546_s29, 16  }
  0x48   : > { %7384 = vsyncadd (%p7632_p12), %s546_s29, 4294967280 }
  0x49   : > { %7386 = dma.done.wait (%p55_p1), [#allocation9], 1056  }
  0x4a   : > { %7388 = vsyncadd (%p55_p1), [#allocation9], 4294966240 }
  0x4b   : > { %7390 = dma.done.wait (%p55_p1), [#allocation12], 16448  }
  0x4c   : > { %7392 = vsyncadd (%p55_p1), [#allocation12], 4294950848 }
  0x4d   : > { %7394 = dma.done.wait (%p55_p1), [#allocation15], 10240  }
  0x4e   : > { %7396 = vsyncadd (%p55_p1), [#allocation15], 4294957056 }
  0x4f   : > { %7398 = dma.done.wait (%p55_p1), [#allocation18], 57472  }
  0x50   : > { %7400 = vsyncadd (%p55_p1), [#allocation18], 4294909824  ;;  %v645_v1 = vld [vmem:[#allocation8 + $0x30] sm:$0xff]  ;;  %v646_v2 = vld [vmem:[#allocation8 + $0x38] sm:$0xff]  ;;  %vm653_vm0 = vcmask 261120   ;;  %s7435_s27 = smov 117  }
  0x51   : > { %v643_v3 = vld [vmem:[#allocation8 + $0x20] sm:$0xff]  ;;  %669 = vmatpush.msra.mxu0 %v645_v1  ;;  %689 = vmatpush.msra.mxu1 %v646_v2  ;;  %v644_v4 = vld [vmem:[#allocation8 + $0x28] sm:$0xff]  ;;  %v641_v5 = vld [vmem:[#allocation8 + $0x10] sm:$0xff]  ;;  %s7436_s25 = smov 118   ;;  %s7437_s14 = smov 127   ;;  %vm1688_vm1 = vcmask 1043456  }
  0x52   : > { %v642_v6 = vld [vmem:[#allocation8 + $0x18] sm:$0xff]  ;;  %v639_v7 = vld [vmem:[#allocation8] sm:$0xff]  ;;  %v640_v10 = vld [vmem:[#allocation8 + $0x8] sm:$0xff]  ;;  %s7438_s3 = smov 116   ;;  %s7439_s24 = smov 126   ;;  %vm1681_vm2 = vcmask 818176  }
  0x53   : > { %670 = vmatpush.msra.mxu0 %v643_v3  ;;  %690 = vmatpush.msra.mxu1 %v644_v4  ;;  %v759_v8 = vld [vmem:[#allocation11 + $0x1e0] sm:$0xff]  ;;  %v638_v13 = vld [vmem:[%s7658_s17] sm:$0x1]  ;;  %v760_v14 = vld [vmem:[#allocation11 + $0x1e8] sm:$0xff]  ;;  %s7440_s13 = smov 108   ;;  %s7441_s20 = smov 106  }
  0x54   : > { %v823_v9 = vld [vmem:[#allocation11 + $0x3e0] sm:$0xff]  ;;  %837 = vmatpush.msra.mxu2 %v759_v8  ;;  %v824_v15 = vld [vmem:[#allocation11 + $0x3e8] sm:$0xff]  ;;  %v761_v8 = vld [vmem:[#allocation11 + $0x1f0] sm:$0xff]  ;;  %s7442_s28 = smov 107   ;;  %s7446_s10 = smov 92   ;;  %vm1811_vm3 = vcmask 130048  }
  0x55   : > { %857 = vmatpush.msra.mxu3 %v823_v9  ;;  %v755_v11 = vld [vmem:[#allocation11 + $0x1c0] sm:$0xff]  ;;  %671 = vmatpush.msra.mxu0 %v641_v5  ;;  %v756_v18 = vld [vmem:[#allocation11 + $0x1c8] sm:$0xff]  ;;  %v825_v9 = vld [vmem:[#allocation11 + $0x3f0] sm:$0xff]  ;;  %s7447_s16 = smov 91   ;;  %s7448_s23 = smov 90   ;;  %vm1800_vm4 = vcmask 1039360  }
  0x56   : > { %v819_v12 = vld [vmem:[#allocation11 + $0x3c0] sm:$0xff]  ;;  %691 = vmatpush.msra.mxu1 %v642_v6  ;;  %838 = vmatpush.msra.mxu2 %v755_v11  ;;  %v820_v19 = vld [vmem:[#allocation11 + $0x3c8] sm:$0xff]  ;;  %s8937_s15 = sld [smem:[#allocation28_spill]]  ;;  %vm1952_vm5 = vcmask 1031168   ;;  %vm2043_vm6 = vcmask 900096   ;;  %vm2225_vm7 = vcmask 883712  }
  0x57   : > { %858 = vmatpush.msra.mxu3 %v819_v12  ;;  %672 = vmatpush.msra.mxu0 %v639_v7  ;;  %v751_v16 = vld [vmem:[#allocation11 + $0x1a0] sm:$0xff]  ;;  %v752_v22 = vld [vmem:[#allocation11 + $0x1a8] sm:$0xff]  ;;  %v762_v12 = vld [vmem:[#allocation11 + $0x1f8] sm:$0xff]  ;;  %vm2134_vm8 = vcmask 891904   ;;  %vm2316_vm9 = vcmask 752640   ;;  %vm2407_vm10 = vcmask 744448  }
  0x58   : > { %692 = vmatpush.msra.mxu1 %v640_v10  ;;  %v815_v17 = vld [vmem:[#allocation11 + $0x3a0] sm:$0xff]  ;;  %6297 = vmatmul.msk.f32.vlgmr.msra.gmra.mxu0 %vm653_vm0, %v638_v13  ;;  %v816_v23 = vld [vmem:[#allocation11 + $0x3a8] sm:$0xff]  ;;  %s8938_s1 = sld [smem:[#allocation29_spill]]  ;;  %vm2498_vm11 = vcmask 736256   ;;  %vm2997_vm12 = vcmask 556032   ;;  %vm3703_vm13 = vcmask 64512  }
  0x59   : > { %6298 = vmatmul.msk.f32.vlgmr.msra.gmra.mxu1 %vm653_vm0, %v638_v13  ;;  %877 = vmatpush.msrb.mxu0 %v760_v14  ;;  %v747_v20 = vld [vmem:[#allocation11 + $0x180] sm:$0xff]  ;;  %v748_v26 = vld [vmem:[#allocation11 + $0x188] sm:$0xff]  ;;  %v826_v13 = vld [vmem:[#allocation11 + $0x3f8] sm:$0xff]  ;;  %vm4386_vm14 = vcmask 769024   ;;  %vm4641_vm15 = vcmask 760832   ;;  %p634_p1 = scmp.lt.s32.totalorder %s7561_s26, 1 }
  0x5a   : > { %897 = vmatpush.msrb.mxu1 %v824_v15  ;;  %v811_v21 = vld [vmem:[#allocation11 + $0x380] sm:$0xff]  ;;  %839 = vmatpush.msra.mxu2 %v751_v16  ;;  %v812_v27 = vld [vmem:[#allocation11 + $0x388] sm:$0xff]  ;;  %v757_v14 = vld [vmem:[#allocation11 + $0x1d0] sm:$0xff]  ;;  %s8956_s30 = sld [smem:[#allocation31_spill]] }
  0x5b   : > { %859 = vmatpush.msra.mxu3 %v815_v17  ;;  %878 = vmatpush.msrb.mxu0 %v756_v18  ;;  %v743_v24 = vld [vmem:[#allocation11 + $0x160] sm:$0xff]  ;;  %v744_v30 = vld [vmem:[#allocation11 + $0x168] sm:$0xff]  ;;  %v821_v15 = vld [vmem:[#allocation11 + $0x3d0] sm:$0xff]  ;;  %s8962_s26 = smov (!%p634_p1, %s7561_s26), 1 }
  0x5c   : > { %898 = vmatpush.msrb.mxu1 %v820_v19  ;;  %v807_v25 = vld [vmem:[#allocation11 + $0x360] sm:$0xff]  ;;  %840 = vmatpush.msra.mxu2 %v747_v20  ;;  %v808_v31 = vld [vmem:[#allocation11 + $0x368] sm:$0xff]  ;;  %v758_v16 = vld [vmem:[#allocation11 + $0x1d8] sm:$0xff] }
  0x5d   : > { %860 = vmatpush.msra.mxu3 %v811_v21  ;;  %879 = vmatpush.msrb.mxu0 %v752_v22  ;;  %v739_v28 = vld [vmem:[#allocation11 + $0x140] sm:$0xff]  ;;  %v740_v34 = vld [vmem:[#allocation11 + $0x148] sm:$0xff]  ;;  %v822_v17 = vld [vmem:[#allocation11 + $0x3d8] sm:$0xff] }
  0x5e   : > { %899 = vmatpush.msrb.mxu1 %v816_v23  ;;  %v803_v29 = vld [vmem:[#allocation11 + $0x340] sm:$0xff]  ;;  %841 = vmatpush.msra.mxu2 %v743_v24  ;;  %v804_v35 = vld [vmem:[#allocation11 + $0x348] sm:$0xff]  ;;  %v753_v18 = vld [vmem:[#allocation11 + $0x1b0] sm:$0xff] }
  0x5f   : > { %861 = vmatpush.msra.mxu3 %v807_v25  ;;  %880 = vmatpush.msrb.mxu0 %v748_v26  ;;  %v735_v32 = vld [vmem:[#allocation11 + $0x120] sm:$0xff]  ;;  %v736_v38 = vld [vmem:[#allocation11 + $0x128] sm:$0xff]  ;;  %v817_v19 = vld [vmem:[#allocation11 + $0x3b0] sm:$0xff] }
  0x60   : > { %900 = vmatpush.msrb.mxu1 %v812_v27  ;;  %v799_v33 = vld [vmem:[#allocation11 + $0x320] sm:$0xff]  ;;  %842 = vmatpush.msra.mxu2 %v739_v28  ;;  %v800_v39 = vld [vmem:[#allocation11 + $0x328] sm:$0xff]  ;;  %v754_v20 = vld [vmem:[#allocation11 + $0x1b8] sm:$0xff] }
  0x61   : > { %862 = vmatpush.msra.mxu3 %v803_v29  ;;  %881 = vmatpush.msrb.mxu0 %v744_v30  ;;  %v731_v36 = vld [vmem:[#allocation11 + $0x100] sm:$0xff]  ;;  %v732_v42 = vld [vmem:[#allocation11 + $0x108] sm:$0xff]  ;;  %v818_v21 = vld [vmem:[#allocation11 + $0x3b8] sm:$0xff] }
  0x62   : > { %901 = vmatpush.msrb.mxu1 %v808_v31  ;;  %v795_v37 = vld [vmem:[#allocation11 + $0x300] sm:$0xff]  ;;  %843 = vmatpush.msra.mxu2 %v735_v32  ;;  %v796_v43 = vld [vmem:[#allocation11 + $0x308] sm:$0xff]  ;;  %v749_v22 = vld [vmem:[#allocation11 + $0x190] sm:$0xff] }
  0x63   : > { %863 = vmatpush.msra.mxu3 %v799_v33  ;;  %882 = vmatpush.msrb.mxu0 %v740_v34  ;;  %v727_v40 = vld [vmem:[#allocation11 + $0xe0] sm:$0xff]  ;;  %v728_v46 = vld [vmem:[#allocation11 + $0xe8] sm:$0xff]  ;;  %v813_v23 = vld [vmem:[#allocation11 + $0x390] sm:$0xff] }
  0x64   : > { %902 = vmatpush.msrb.mxu1 %v804_v35  ;;  %v791_v41 = vld [vmem:[#allocation11 + $0x2e0] sm:$0xff]  ;;  %844 = vmatpush.msra.mxu2 %v731_v36  ;;  %v792_v47 = vld [vmem:[#allocation11 + $0x2e8] sm:$0xff]  ;;  %v750_v24 = vld [vmem:[#allocation11 + $0x198] sm:$0xff] }
  0x65   : > { %864 = vmatpush.msra.mxu3 %v795_v37  ;;  %883 = vmatpush.msrb.mxu0 %v736_v38  ;;  %v723_v44 = vld [vmem:[#allocation11 + $0xc0] sm:$0xff]  ;;  %v724_v50 = vld [vmem:[#allocation11 + $0xc8] sm:$0xff]  ;;  %v814_v25 = vld [vmem:[#allocation11 + $0x398] sm:$0xff] }
  0x66   : > { %903 = vmatpush.msrb.mxu1 %v800_v39  ;;  %v787_v45 = vld [vmem:[#allocation11 + $0x2c0] sm:$0xff]  ;;  %845 = vmatpush.msra.mxu2 %v727_v40  ;;  %v788_v51 = vld [vmem:[#allocation11 + $0x2c8] sm:$0xff]  ;;  %v745_v26 = vld [vmem:[#allocation11 + $0x170] sm:$0xff] }
  0x67   : > { %865 = vmatpush.msra.mxu3 %v791_v41  ;;  %884 = vmatpush.msrb.mxu0 %v732_v42  ;;  %v719_v48 = vld [vmem:[#allocation11 + $0xa0] sm:$0xff]  ;;  %v720_v54 = vld [vmem:[#allocation11 + $0xa8] sm:$0xff]  ;;  %v809_v27 = vld [vmem:[#allocation11 + $0x370] sm:$0xff] }
  0x68   : > { %904 = vmatpush.msrb.mxu1 %v796_v43  ;;  %v783_v49 = vld [vmem:[#allocation11 + $0x2a0] sm:$0xff]  ;;  %846 = vmatpush.msra.mxu2 %v723_v44  ;;  %v784_v55 = vld [vmem:[#allocation11 + $0x2a8] sm:$0xff]  ;;  %v746_v28 = vld [vmem:[#allocation11 + $0x178] sm:$0xff] }
  0x69   : > { %866 = vmatpush.msra.mxu3 %v787_v45  ;;  %885 = vmatpush.msrb.mxu0 %v728_v46  ;;  %v715_v52 = vld [vmem:[#allocation11 + $0x80] sm:$0xff]  ;;  %v716_v58 = vld [vmem:[#allocation11 + $0x88] sm:$0xff]  ;;  %v810_v29 = vld [vmem:[#allocation11 + $0x378] sm:$0xff] }
  0x6a   : > { %905 = vmatpush.msrb.mxu1 %v792_v47  ;;  %v779_v53 = vld [vmem:[#allocation11 + $0x280] sm:$0xff]  ;;  %847 = vmatpush.msra.mxu2 %v719_v48  ;;  %v780_v59 = vld [vmem:[#allocation11 + $0x288] sm:$0xff]  ;;  %v741_v30 = vld [vmem:[#allocation11 + $0x150] sm:$0xff] }
  0x6b   : > { %867 = vmatpush.msra.mxu3 %v783_v49  ;;  %886 = vmatpush.msrb.mxu0 %v724_v50  ;;  %v711_v56 = vld [vmem:[#allocation11 + $0x60] sm:$0xff]  ;;  %v712_v62 = vld [vmem:[#allocation11 + $0x68] sm:$0xff]  ;;  %v805_v31 = vld [vmem:[#allocation11 + $0x350] sm:$0xff] }
  0x6c   : > { %906 = vmatpush.msrb.mxu1 %v788_v51  ;;  %v775_v57 = vld [vmem:[#allocation11 + $0x260] sm:$0xff]  ;;  %848 = vmatpush.msra.mxu2 %v715_v52  ;;  %v776_v63 = vld [vmem:[#allocation11 + $0x268] sm:$0xff]  ;;  %v742_v32 = vld [vmem:[#allocation11 + $0x158] sm:$0xff] }
  0x6d   : > { %868 = vmatpush.msra.mxu3 %v779_v53  ;;  %887 = vmatpush.msrb.mxu0 %v720_v54  ;;  %v707_v60 = vld [vmem:[#allocation11 + $0x40] sm:$0xff]  ;;  %v708_v2 = vld [vmem:[#allocation11 + $0x48] sm:$0xff]  ;;  %v806_v33 = vld [vmem:[#allocation11 + $0x358] sm:$0xff] }
  0x6e   : > { %907 = vmatpush.msrb.mxu1 %v784_v55  ;;  %v771_v61 = vld [vmem:[#allocation11 + $0x240] sm:$0xff]  ;;  %849 = vmatpush.msra.mxu2 %v711_v56  ;;  %v772_v3 = vld [vmem:[#allocation11 + $0x248] sm:$0xff]  ;;  %v737_v34 = vld [vmem:[#allocation11 + $0x130] sm:$0xff] }
  0x6f   : > { %869 = vmatpush.msra.mxu3 %v775_v57  ;;  %888 = vmatpush.msrb.mxu0 %v716_v58  ;;  %v703_v0 = vld [vmem:[#allocation11 + $0x20] sm:$0xff]  ;;  %v704_v6 = vld [vmem:[#allocation11 + $0x28] sm:$0xff]  ;;  %v801_v35 = vld [vmem:[#allocation11 + $0x330] sm:$0xff] }
  0x70   : > { %908 = vmatpush.msrb.mxu1 %v780_v59  ;;  %v767_v1 = vld [vmem:[#allocation11 + $0x220] sm:$0xff]  ;;  %850 = vmatpush.msra.mxu2 %v707_v60  ;;  %v768_v7 = vld [vmem:[#allocation11 + $0x228] sm:$0xff]  ;;  %v738_v36 = vld [vmem:[#allocation11 + $0x138] sm:$0xff] }
  0x71   : > { %870 = vmatpush.msra.mxu3 %v771_v61  ;;  %889 = vmatpush.msrb.mxu0 %v712_v62  ;;  %v699_v4 = vld [vmem:[#allocation11] sm:$0xff]  ;;  %v700_v10 = vld [vmem:[#allocation11 + $0x8] sm:$0xff]  ;;  %v802_v37 = vld [vmem:[#allocation11 + $0x338] sm:$0xff] }
  0x72   : > { %909 = vmatpush.msrb.mxu1 %v776_v63  ;;  %v763_v5 = vld [vmem:[#allocation11 + $0x200] sm:$0xff]  ;;  %851 = vmatpush.msra.mxu2 %v703_v0  ;;  %v764_v11 = vld [vmem:[#allocation11 + $0x208] sm:$0xff]  ;;  %v733_v38 = vld [vmem:[#allocation11 + $0x110] sm:$0xff] }
  0x73   : > { %871 = vmatpush.msra.mxu3 %v767_v1  ;;  %890 = vmatpush.msrb.mxu0 %v708_v2  ;;  %v797_v39 = vld [vmem:[#allocation11 + $0x310] sm:$0xff]  ;;  %v734_v40 = vld [vmem:[#allocation11 + $0x118] sm:$0xff] }
  0x74   : > { %910 = vmatpush.msrb.mxu1 %v772_v3  ;;  %852 = vmatpush.msra.mxu2 %v699_v4  ;;  %v798_v41 = vld [vmem:[#allocation11 + $0x318] sm:$0xff]  ;;  %v729_v42 = vld [vmem:[#allocation11 + $0xf0] sm:$0xff] }
  0x75   : > { %872 = vmatpush.msra.mxu3 %v763_v5  ;;  %891 = vmatpush.msrb.mxu0 %v704_v6  ;;  %v793_v43 = vld [vmem:[#allocation11 + $0x2f0] sm:$0xff]  ;;  %v730_v44 = vld [vmem:[#allocation11 + $0xf8] sm:$0xff] }
  0x76   : > { %911 = vmatpush.msrb.mxu1 %v768_v7  ;;  %917 = vmatpush.msrb.mxu2 %v761_v8  ;;  %v794_v45 = vld [vmem:[#allocation11 + $0x2f8] sm:$0xff]  ;;  %v725_v46 = vld [vmem:[#allocation11 + $0xd0] sm:$0xff] }
  0x77   : > { %937 = vmatpush.msrb.mxu3 %v825_v9  ;;  %892 = vmatpush.msrb.mxu0 %v700_v10  ;;  %v789_v47 = vld [vmem:[#allocation11 + $0x2d0] sm:$0xff]  ;;  %v726_v48 = vld [vmem:[#allocation11 + $0xd8] sm:$0xff] }
  0x78   : > { %912 = vmatpush.msrb.mxu1 %v764_v11  ;;  %918 = vmatpush.msrb.mxu2 %v757_v14  ;;  %v790_v49 = vld [vmem:[#allocation11 + $0x2d8] sm:$0xff]  ;;  %v721_v50 = vld [vmem:[#allocation11 + $0xb0] sm:$0xff] }
  0x79   : > { %957 = vmatpush.msra.mxu0 %v762_v12  ;;  %938 = vmatpush.msrb.mxu3 %v821_v15  ;;  %v785_v51 = vld [vmem:[#allocation11 + $0x2b0] sm:$0xff]  ;;  %v722_v52 = vld [vmem:[#allocation11 + $0xb8] sm:$0xff] }
  0x7a   : > { %977 = vmatpush.msra.mxu1 %v826_v13  ;;  %919 = vmatpush.msrb.mxu2 %v753_v18  ;;  %v786_v53 = vld [vmem:[#allocation11 + $0x2b8] sm:$0xff]  ;;  %v717_v54 = vld [vmem:[#allocation11 + $0x90] sm:$0xff] }
  0x7b   : > { %958 = vmatpush.msra.mxu0 %v758_v16  ;;  %939 = vmatpush.msrb.mxu3 %v817_v19  ;;  %v781_v55 = vld [vmem:[#allocation11 + $0x290] sm:$0xff]  ;;  %v718_v56 = vld [vmem:[#allocation11 + $0x98] sm:$0xff] }
  0x7c   : > { %978 = vmatpush.msra.mxu1 %v822_v17  ;;  %920 = vmatpush.msrb.mxu2 %v749_v22  ;;  %v782_v57 = vld [vmem:[#allocation11 + $0x298] sm:$0xff]  ;;  %v713_v58 = vld [vmem:[#allocation11 + $0x70] sm:$0xff] }
  0x7d   : > { %959 = vmatpush.msra.mxu0 %v754_v20  ;;  %940 = vmatpush.msrb.mxu3 %v813_v23  ;;  %v777_v59 = vld [vmem:[#allocation11 + $0x270] sm:$0xff]  ;;  %v714_v60 = vld [vmem:[#allocation11 + $0x78] sm:$0xff] }
  0x7e   : > { %979 = vmatpush.msra.mxu1 %v818_v21  ;;  %921 = vmatpush.msrb.mxu2 %v745_v26  ;;  %v778_v61 = vld [vmem:[#allocation11 + $0x278] sm:$0xff]  ;;  %v709_v62 = vld [vmem:[#allocation11 + $0x50] sm:$0xff] }
  0x7f   : > { %960 = vmatpush.msra.mxu0 %v750_v24  ;;  %941 = vmatpush.msrb.mxu3 %v809_v27  ;;  %v773_v63 = vld [vmem:[#allocation11 + $0x250] sm:$0xff]  ;;  %v710_v0 = vld [vmem:[#allocation11 + $0x58] sm:$0xff] }
  0x80   : > { %980 = vmatpush.msra.mxu1 %v814_v25  ;;  %922 = vmatpush.msrb.mxu2 %v741_v30  ;;  %v774_v1 = vld [vmem:[#allocation11 + $0x258] sm:$0xff]  ;;  %v705_v2 = vld [vmem:[#allocation11 + $0x30] sm:$0xff] }
  0x81   : > { %961 = vmatpush.msra.mxu0 %v746_v28  ;;  %942 = vmatpush.msrb.mxu3 %v805_v31  ;;  %v769_v3 = vld [vmem:[#allocation11 + $0x230] sm:$0xff]  ;;  %v706_v4 = vld [vmem:[#allocation11 + $0x38] sm:$0xff]  ;;  %v1065_v31 = vld [vmem:[#allocation16 + $0xe0] sm:$0xff] }
  0x82   : > { %981 = vmatpush.msra.mxu1 %v810_v29  ;;  %923 = vmatpush.msrb.mxu2 %v737_v34  ;;  %v770_v5 = vld [vmem:[#allocation11 + $0x238] sm:$0xff]  ;;  %v701_v6 = vld [vmem:[#allocation11 + $0x10] sm:$0xff] }
  0x83   : > { %962 = vmatpush.msra.mxu0 %v742_v32  ;;  %943 = vmatpush.msrb.mxu3 %v801_v35  ;;  %v765_v7 = vld [vmem:[#allocation11 + $0x210] sm:$0xff]  ;;  %v702_v8 = vld [vmem:[#allocation11 + $0x18] sm:$0xff]  ;;  %v1049_v32 = vld [vmem:[#allocation16 + $0x60] sm:$0xff] }
  0x84   : > { %982 = vmatpush.msra.mxu1 %v806_v33  ;;  %924 = vmatpush.msrb.mxu2 %v733_v38  ;;  %v766_v9 = vld [vmem:[#allocation11 + $0x218] sm:$0xff]  ;;  %v1066_v27 = vld [vmem:[#allocation16 + $0xe8] sm:$0xff]  ;;  %v1097_v33 = vld [vmem:[#allocation16 + $0x1e0] sm:$0xff] }
  0x85   : > { %963 = vmatpush.msra.mxu0 %v738_v36  ;;  %944 = vmatpush.msrb.mxu3 %v797_v39  ;;  %v647_v10 = vld [vmem:[#allocation10] sm:$0x3]  ;;  %v1067_v23 = vld [vmem:[#allocation16 + $0xf0] sm:$0xff]  ;;  %v1050_v28 = vld [vmem:[#allocation16 + $0x68] sm:$0xff] }
  0x86   : > { %983 = vmatpush.msra.mxu1 %v802_v37  ;;  %925 = vmatpush.msrb.mxu2 %v729_v42  ;;  %v649_v11 = vperm.slane %v647_v10, 0  ;;  %v650_v12 = vperm.slane %v647_v10, 1  ;;  %v1068_v19 = vld [vmem:[#allocation16 + $0xf8] sm:$0xff]  ;;  %v1051_v24 = vld [vmem:[#allocation16 + $0x70] sm:$0xff]  ;;  %v1098_v29 = vld [vmem:[#allocation16 + $0x1e8] sm:$0xff] }
  0x87   : > { %964 = vmatpush.msra.mxu0 %v734_v40  ;;  %945 = vmatpush.msrb.mxu3 %v793_v43  ;;  %v1052_v20 = vld [vmem:[#allocation16 + $0x78] sm:$0xff]  ;;  %v1099_v25 = vld [vmem:[#allocation16 + $0x1f0] sm:$0xff]  ;;  %v1082_v30 = vld [vmem:[#allocation16 + $0x168] sm:$0xff] }
  0x88   : > { %984 = vmatpush.msra.mxu1 %v798_v41  ;;  %926 = vmatpush.msrb.mxu2 %v725_v46  ;;  %v1100_v21 = vld [vmem:[#allocation16 + $0x1f8] sm:$0xff]  ;;  %v1083_v26 = vld [vmem:[#allocation16 + $0x170] sm:$0xff]  ;;  %v1062_v40 = vld [vmem:[#allocation16 + $0xc8] sm:$0xff] }
  0x89   : > { %965 = vmatpush.msra.mxu0 %v730_v44  ;;  %946 = vmatpush.msrb.mxu3 %v789_v47  ;;  %v1084_v22 = vld [vmem:[#allocation16 + $0x178] sm:$0xff]  ;;  %v1063_v37 = vld [vmem:[#allocation16 + $0xd0] sm:$0xff]  ;;  %v1046_v41 = vld [vmem:[#allocation16 + $0x48] sm:$0xff] }
  0x8a   : > { %985 = vmatpush.msra.mxu1 %v794_v45  ;;  %927 = vmatpush.msrb.mxu2 %v721_v50  ;;  %v1064_v34 = vld [vmem:[#allocation16 + $0xd8] sm:$0xff]  ;;  %v1047_v38 = vld [vmem:[#allocation16 + $0x50] sm:$0xff]  ;;  %v1061_v42 = vld [vmem:[#allocation16 + $0xc0] sm:$0xff] }
  0x8b   : > { %966 = vmatpush.msra.mxu0 %v726_v48  ;;  %947 = vmatpush.msrb.mxu3 %v785_v51  ;;  %v1048_v35 = vld [vmem:[#allocation16 + $0x58] sm:$0xff]  ;;  %v1095_v39 = vld [vmem:[#allocation16 + $0x1d0] sm:$0xff]  ;;  %v1045_v45 = vld [vmem:[#allocation16 + $0x40] sm:$0xff] }
  0x8c   : > { %986 = vmatpush.msra.mxu1 %v790_v49  ;;  %928 = vmatpush.msrb.mxu2 %v717_v54  ;;  %v1096_v36 = vld [vmem:[#allocation16 + $0x1d8] sm:$0xff]  ;;  %v1059_v44 = vld [vmem:[#allocation16 + $0xb0] sm:$0xff]  ;;  %v1058_v46 = vld [vmem:[#allocation16 + $0xa8] sm:$0xff] }
  0x8d   : > { %967 = vmatpush.msra.mxu0 %v722_v52  ;;  %948 = vmatpush.msrb.mxu3 %v781_v55  ;;  %v1060_v43 = vld [vmem:[#allocation16 + $0xb8] sm:$0xff]  ;;  %v1081_v47 = vld [vmem:[#allocation16 + $0x160] sm:$0xff]  ;;  %v1094_v48 = vld [vmem:[#allocation16 + $0x1c8] sm:$0xff] }
  0x8e   : > { %987 = vmatpush.msra.mxu1 %v786_v53  ;;  %929 = vmatpush.msrb.mxu2 %v713_v58  ;;  %v1044_v49 = vld [vmem:[#allocation16 + $0x38] sm:$0xff]  ;;  %v1057_v50 = vld [vmem:[#allocation16 + $0xa0] sm:$0xff]  ;;  %v1043_v53 = vld [vmem:[#allocation16 + $0x30] sm:$0xff] }
  0x8f   : > { %968 = vmatpush.msra.mxu0 %v718_v56  ;;  %949 = vmatpush.msrb.mxu3 %v777_v59  ;;  %v1080_v51 = vld [vmem:[#allocation16 + $0x158] sm:$0xff]  ;;  %v1093_v52 = vld [vmem:[#allocation16 + $0x1c0] sm:$0xff]  ;;  %v1079_v55 = vld [vmem:[#allocation16 + $0x150] sm:$0xff] }
  0x90   : > { %988 = vmatpush.msra.mxu1 %v782_v57  ;;  %930 = vmatpush.msrb.mxu2 %v709_v62  ;;  %v1056_v54 = vld [vmem:[#allocation16 + $0x98] sm:$0xff]  ;;  %v1042_v57 = vld [vmem:[#allocation16 + $0x28] sm:$0xff]  ;;  %v1055_v58 = vld [vmem:[#allocation16 + $0x90] sm:$0xff] }
  0x91   : > { %969 = vmatpush.msra.mxu0 %v714_v60  ;;  %950 = vmatpush.msrb.mxu3 %v773_v63  ;;  %v1092_v56 = vld [vmem:[#allocation16 + $0x1b8] sm:$0xff]  ;;  %v1078_v59 = vld [vmem:[#allocation16 + $0x148] sm:$0xff]  ;;  %v1091_v60 = vld [vmem:[#allocation16 + $0x1b0] sm:$0xff] }
  0x92   : > { %989 = vmatpush.msra.mxu1 %v778_v61  ;;  %931 = vmatpush.msrb.mxu2 %v705_v2  ;;  %v1041_v61 = vld [vmem:[#allocation16 + $0x20] sm:$0xff]  ;;  %v1054_v62 = vld [vmem:[#allocation16 + $0x88] sm:$0xff]  ;;  %v1087_v10 = vld [vmem:[#allocation16 + $0x190] sm:$0xff] }
  0x93   : > { %970 = vmatpush.msra.mxu0 %v710_v0  ;;  %951 = vmatpush.msrb.mxu3 %v769_v3  ;;  %v1077_v63 = vld [vmem:[#allocation16 + $0x140] sm:$0xff]  ;;  %v1090_v0 = vld [vmem:[#allocation16 + $0x1a8] sm:$0xff]  ;;  %v1076_v3 = vld [vmem:[#allocation16 + $0x138] sm:$0xff] }
  0x94   : > { %990 = vmatpush.msra.mxu1 %v774_v1  ;;  %932 = vmatpush.msrb.mxu2 %v701_v6  ;;  %v1040_v1 = vld [vmem:[#allocation16 + $0x18] sm:$0xff]  ;;  %v1053_v2 = vld [vmem:[#allocation16 + $0x80] sm:$0xff]  ;;  %v1075_v6 = vld [vmem:[#allocation16 + $0x130] sm:$0xff] }
  0x95   : > { %971 = vmatpush.msra.mxu0 %v706_v4  ;;  %952 = vmatpush.msrb.mxu3 %v765_v7  ;;  %v1089_v4 = vld [vmem:[#allocation16 + $0x1a0] sm:$0xff]  ;;  %v1088_v7 = vld [vmem:[#allocation16 + $0x198] sm:$0xff] }
  0x96   : > { %991 = vmatpush.msra.mxu1 %v770_v5  ;;  %v1039_v5 = vld [vmem:[#allocation16 + $0x10] sm:$0xff] }
  0x97   : > { %972 = vmatpush.msra.mxu0 %v702_v8  ;;  %v1038_v8 = vld [vmem:[#allocation16 + $0x8] sm:$0xff] }
  0x98   : > { %992 = vmatpush.msra.mxu1 %v766_v9  ;;  %v1074_v9 = vld [vmem:[#allocation16 + $0x128] sm:$0xff] }
  0xd5   : > { %v674_v13 = vpop.f32.mrf.mxu0 }
  0xd6   : > { %v694_v14 = vpop.f32.mrf.mxu1  ;;  %v675_v15 = vadd.f32 %v674_v13, %v649_v11  ;;  %v1037_v11 = vld [vmem:[#allocation16] sm:$0xff]  ;;  %v1086_v13 = vld [vmem:[#allocation16 + $0x188] sm:$0xff] }
  0xd7   : > { %v695_v16 = vadd.f32 %v694_v14, %v650_v12  ;;  %v1073_v12 = vld [vmem:[#allocation16 + $0x120] sm:$0xff]  ;;  %v1072_v14 = vld [vmem:[#allocation16 + $0x118] sm:$0xff] }
  0xd8   : > { %v697_v17 = vmax.f32 %v675_v15, 0.0  ;;  %v1085_v15 = vld [vmem:[#allocation16 + $0x180] sm:$0xff] }
  0xd9   : > { %v698_v18 = vmax.f32 %v695_v16, 0.0  ;;  %v1071_v16 = vld [vmem:[#allocation16 + $0x110] sm:$0xff] }
  0xda   : > { %853 = vmatmul.f32.vlgmr.msra.gmra.mxu2 %v697_v17  ;;  %893 = vmatmul.f32.vlgmr.msrb.gmra.mxu0 %v697_v17 }
  0xdb   : > { %873 = vmatmul.f32.vlgmr.msra.gmra.mxu3 %v698_v18  ;;  %913 = vmatmul.f32.vlgmr.msrb.gmra.mxu1 %v698_v18 }
  0xdc   : > { %1130 = vmatpush.msra.mxu3 %v1068_v19  ;;  %1101 = vmatpush.msra.mxu2 %v1052_v20  ;;  %v827_v19 = vld [vmem:[#allocation13] sm:$0xf] }
  0xdd   : > { %1188 = vmatpush.msrb.mxu1 %v1100_v21  ;;  %1159 = vmatpush.msrb.mxu0 %v1084_v22  ;;  %v830_v20 = vperm.slane %v827_v19, 1 }
  0xde   : > { %1131 = vmatpush.msra.mxu3 %v1067_v23  ;;  %1102 = vmatpush.msra.mxu2 %v1051_v24  ;;  %v829_v24 = vperm.slane %v827_v19, 0 }
  0xdf   : > { %1189 = vmatpush.msrb.mxu1 %v1099_v25  ;;  %1160 = vmatpush.msrb.mxu0 %v1083_v26 }
  0xe0   : > { %1132 = vmatpush.msra.mxu3 %v1066_v27  ;;  %1103 = vmatpush.msra.mxu2 %v1050_v28 }
  0xe1   : > { %1190 = vmatpush.msrb.mxu1 %v1098_v29  ;;  %1161 = vmatpush.msrb.mxu0 %v1082_v30  ;;  %v832_v29 = vperm.slane %v827_v19, 3 }
  0xe2   : > { %933 = vmatmul.f32.vlgmr.msrb.gmra.mxu2 %v697_v17  ;;  %973 = vmatmul.f32.vlgmr.msra.gmra.mxu0 %v697_v17  ;;  %v1070_v17 = vld [vmem:[#allocation16 + $0x108] sm:$0xff] }
  0xe3   : > { %953 = vmatmul.f32.vlgmr.msrb.gmra.mxu3 %v698_v18  ;;  %993 = vmatmul.f32.vlgmr.msra.gmra.mxu1 %v698_v18  ;;  %v1069_v18 = vld [vmem:[#allocation16 + $0x100] sm:$0xff] }
  0xe4   : > { %1133 = vmatpush.msra.mxu3 %v1065_v31  ;;  %1104 = vmatpush.msra.mxu2 %v1049_v32  ;;  %v1002_v31 = vld [vmem:[#allocation14 + $0x8] sm:$0xff] }
  0xe5   : > { %1191 = vmatpush.msrb.mxu1 %v1097_v33  ;;  %1162 = vmatpush.msrb.mxu0 %v1081_v47  ;;  %v1006_v47 = vld [vmem:[#allocation14 + $0x28] sm:$0xff] }
  0xe6   : > { %1134 = vmatpush.msra.mxu3 %v1064_v34  ;;  %1105 = vmatpush.msra.mxu2 %v1048_v35 }
  0xe7   : > { %1192 = vmatpush.msrb.mxu1 %v1096_v36  ;;  %1163 = vmatpush.msrb.mxu0 %v1080_v51 }
  0xe8   : > { %1135 = vmatpush.msra.mxu3 %v1063_v37  ;;  %1106 = vmatpush.msra.mxu2 %v1047_v38 }
  0xe9   : > { %1193 = vmatpush.msrb.mxu1 %v1095_v39  ;;  %1164 = vmatpush.msrb.mxu0 %v1079_v55  ;;  %v831_v39 = vperm.slane %v827_v19, 2  ;;  %v1005_v55 = vld [vmem:[#allocation14 + $0x20] sm:$0xff] }
  0xea   : > { %1136 = vmatpush.msra.mxu3 %v1062_v40  ;;  %1107 = vmatpush.msra.mxu2 %v1046_v41  ;;  %v1001_v41 = vld [vmem:[#allocation14] sm:$0xff] }
  0xeb   : > { %1194 = vmatpush.msrb.mxu1 %v1094_v48  ;;  %1165 = vmatpush.msrb.mxu0 %v1078_v59  ;;  %v1004_v48 = vld [vmem:[#allocation14 + $0x18] sm:$0xff] }
  0xec   : > { %1137 = vmatpush.msra.mxu3 %v1061_v42  ;;  %1108 = vmatpush.msra.mxu2 %v1045_v45 }
  0xed   : > { %1195 = vmatpush.msrb.mxu1 %v1093_v52  ;;  %1166 = vmatpush.msrb.mxu0 %v1077_v63 }
  0xee   : > { %1138 = vmatpush.msra.mxu3 %v1060_v43  ;;  %1109 = vmatpush.msra.mxu2 %v1044_v49 }
  0xef   : > { %1196 = vmatpush.msrb.mxu1 %v1092_v56  ;;  %1167 = vmatpush.msrb.mxu0 %v1076_v3  ;;  %v1003_v56 = vld [vmem:[#allocation14 + $0x10] sm:$0xff] }
  0xf0   : > { %1139 = vmatpush.msra.mxu3 %v1059_v44  ;;  %1110 = vmatpush.msra.mxu2 %v1043_v53 }
  0xf1   : > { %1197 = vmatpush.msrb.mxu1 %v1091_v60  ;;  %1168 = vmatpush.msrb.mxu0 %v1075_v6  ;;  %v1010_v60 = vld [vmem:[#allocation14 + $0x48] sm:$0xff] }
  0xf2   : > { %1140 = vmatpush.msra.mxu3 %v1058_v46  ;;  %1111 = vmatpush.msra.mxu2 %v1042_v57 }
  0xf3   : > { %1198 = vmatpush.msrb.mxu1 %v1090_v0  ;;  %1169 = vmatpush.msrb.mxu0 %v1074_v9  ;;  %v1009_v0 = vld [vmem:[#allocation14 + $0x40] sm:$0xff]  ;;  %v1011_v9 = vld [vmem:[#allocation14 + $0x50] sm:$0xff] }
  0xf4   : > { %1141 = vmatpush.msra.mxu3 %v1057_v50  ;;  %1112 = vmatpush.msra.mxu2 %v1041_v61  ;;  %v1008_v61 = vld [vmem:[#allocation14 + $0x38] sm:$0xff] }
  0xf5   : > { %1199 = vmatpush.msrb.mxu1 %v1089_v4  ;;  %1170 = vmatpush.msrb.mxu0 %v1073_v12  ;;  %v1014_v4 = vld [vmem:[#allocation14 + $0x68] sm:$0xff]  ;;  %v1016_v12 = vld [vmem:[#allocation14 + $0x78] sm:$0xff] }
  0xf6   : > { %1142 = vmatpush.msra.mxu3 %v1056_v54  ;;  %1113 = vmatpush.msra.mxu2 %v1040_v1  ;;  %v1007_v1 = vld [vmem:[#allocation14 + $0x30] sm:$0xff] }
  0xf7   : > { %1200 = vmatpush.msrb.mxu1 %v1088_v7  ;;  %1171 = vmatpush.msrb.mxu0 %v1072_v14  ;;  %v1015_v14 = vld [vmem:[#allocation14 + $0x70] sm:$0xff] }
  0xf8   : > { %1143 = vmatpush.msra.mxu3 %v1055_v58  ;;  %1114 = vmatpush.msra.mxu2 %v1039_v5  ;;  %v1012_v5 = vld [vmem:[#allocation14 + $0x58] sm:$0xff] }
  0xf9   : > { %1201 = vmatpush.msrb.mxu1 %v1087_v10  ;;  %1172 = vmatpush.msrb.mxu0 %v1071_v16 }
  0xfa   : > { %1144 = vmatpush.msra.mxu3 %v1054_v62  ;;  %1115 = vmatpush.msra.mxu2 %v1038_v8  ;;  %v1013_v8 = vld [vmem:[#allocation14 + $0x60] sm:$0xff] }
  0xfb   : > { %1202 = vmatpush.msrb.mxu1 %v1086_v13  ;;  %1173 = vmatpush.msrb.mxu0 %v1070_v17 }
  0xfc   : > { %1145 = vmatpush.msra.mxu3 %v1053_v2  ;;  %1116 = vmatpush.msra.mxu2 %v1037_v11 }
  0xfd   : > { %1203 = vmatpush.msrb.mxu1 %v1085_v15  ;;  %1174 = vmatpush.msrb.mxu0 %v1069_v18 }
 0x157   : > { %v894_v21 = vpop.f32.mrf.mxu0 }
 0x158   : > { %v914_v22 = vpop.f32.mrf.mxu1  ;;  %v895_v23 = vadd.f32 %v894_v21, %v830_v20 }
 0x15a   : > { %v915_v25 = vadd.f32 %v914_v22, %v895_v23 }
 0x15c   : > { %v998_v26 = vmax.f32 %v915_v25, 0.0 }
 0x15d   : > { %v854_v27 = vpop.f32.mrf.mxu2 }
 0x15e   : > { %v874_v28 = vpop.f32.mrf.mxu3  ;;  %v855_v30 = vadd.f32 %v854_v27, %v829_v24  ;;  %v1018_v32 = vperm.slane %v998_v26, 0 }
 0x15f   : > { %v974_v34 = vpop.f32.mrf.mxu0 }
 0x160   : > { %v875_v33 = vadd.f32 %v874_v28, %v855_v30  ;;  %v975_v35 = vadd.f32 %v974_v34, %v832_v29  ;;  %v1022_v36 = vmul.f32 %v1018_v32, %v1002_v31  ;;  %v994_v38 = vpop.f32.mrf.mxu1  ;;  %v1026_v52 = vmul.f32 %v1018_v32, %v1006_v47 }
 0x161   : > { %v1030_v62 = vmul.f32 %v1018_v32, %v1010_v60  ;;  %v1034_v6 = vmul.f32 %v1018_v32, %v1014_v4 }
 0x162   : > { %v997_v37 = vmax.f32 %v875_v33, 0.0  ;;  %v995_v40 = vadd.f32 %v994_v38, %v975_v35  ;;  %1146 = vmatmul.f32.vlgmr.msra.gmra.mxu3 %v1022_v36 }
 0x164   : > { %v1017_v42 = vperm.slane %v997_v37, 0  ;;  %v1000_v43 = vmax.f32 %v995_v40, 0.0 }
 0x165   : > { %v934_v44 = vpop.f32.mrf.mxu2 }
 0x166   : > { %v935_v45 = vadd.f32 %v934_v44, %v831_v39  ;;  %v1021_v46 = vmul.f32 %v1017_v42, %v1001_v41  ;;  %v1020_v49 = vperm.slane %v1000_v43, 0  ;;  %v954_v50 = vpop.f32.mrf.mxu3  ;;  %v1025_v58 = vmul.f32 %v1017_v42, %v1005_v55 }
 0x167   : > { %v1029_v2 = vmul.f32 %v1017_v42, %v1009_v0  ;;  %v1033_v10 = vmul.f32 %v1017_v42, %v1013_v8 }
 0x168   : > { %v955_v51 = vadd.f32 %v954_v50, %v935_v45  ;;  %1117 = vmatmul.f32.vlgmr.msra.gmra.mxu2 %v1021_v46  ;;  %v1024_v53 = vmul.f32 %v1020_v49, %v1004_v48  ;;  %v1028_v63 = vmul.f32 %v1020_v49, %v1008_v61  ;;  %v1032_v7 = vmul.f32 %v1020_v49, %v1012_v5  ;;  %v1221_v50 = vld [vmem:[%s8911_s7] sm:$0xff] }
 0x169   : > { %v1036_v13 = vmul.f32 %v1020_v49, %v1016_v12 }
 0x16a   : > { %v999_v54 = vmax.f32 %v955_v51, 0.0  ;;  %1149 = vmatmul.f32.gmra.mxu3 %v1026_v52  ;;  %1204 = vmatmul.f32.vlgmr.msrb.gmra.mxu1 %v1024_v53 }
 0x16c   : > { %v1019_v57 = vperm.slane %v999_v54, 0  ;;  %v1222_v54 = vld [vmem:[%s8911_s7 + $0x8] sm:$0xff] }
 0x16e   : > { %v1023_v59 = vmul.f32 %v1019_v57, %v1003_v56  ;;  %v1027_v3 = vmul.f32 %v1019_v57, %v1007_v1  ;;  %v1031_v11 = vmul.f32 %v1019_v57, %v1011_v9  ;;  %v1035_v15 = vmul.f32 %v1019_v57, %v1015_v14  ;;  %v6299_v1 = vld [vmem:[%s8911_s7 + $0x10] sm:$0xff]  ;;  %v6305_v14 = vld [vmem:[%s8911_s7 + $0x20] sm:$0xff] }
 0x170   : > { %1120 = vmatmul.f32.gmra.mxu2 %v1025_v58  ;;  %1175 = vmatmul.f32.vlgmr.msrb.gmra.mxu0 %v1023_v59 }
 0x172   : > { %1152 = vmatmul.f32.gmra.mxu3 %v1030_v62  ;;  %1207 = vmatmul.f32.gmra.mxu1 %v1028_v63 }
 0x178   : > { %1123 = vmatmul.f32.gmra.mxu2 %v1029_v2  ;;  %1178 = vmatmul.f32.gmra.mxu0 %v1027_v3 }
 0x17a   : > { %1155 = vmatmul.f32.gmra.mxu3 %v1034_v6  ;;  %1210 = vmatmul.f32.gmra.mxu1 %v1032_v7 }
 0x180   : > { %1126 = vmatmul.f32.gmra.mxu2 %v1033_v10  ;;  %1181 = vmatmul.f32.gmra.mxu0 %v1031_v11 }
 0x182   : > { %1213 = vmatmul.f32.gmra.mxu1 %v1036_v13  ;;  %v6300_v13 = vld [vmem:[%s8911_s7 + $0x18] sm:$0xff] }
 0x188   : > { %1184 = vmatmul.f32.gmra.mxu0 %v1035_v15  ;;  %v6309_v15 = vld [vmem:[%s8911_s7 + $0x30] sm:$0xff] }
 0x1e5   : > { %v1147_v16 = vpop.f32.mrf.mxu3 }
 0x1e7   : > { %v1205_v17 = vpop.f32.mrf.mxu1 }
 0x1eb   : > { %v1118_v18 = vpop.f32.mrf.mxu2 }
 0x1ec   : > { %v1148_v21 = vadd.f32 %v1147_v16, %v1118_v18 }
 0x1ed   : > { %v1176_v19 = vpop.f32.mrf.mxu0  ;;  %v1150_v20 = vpop.f32.mrf.mxu3 }
 0x1ee   : > { %v1177_v24 = vadd.f32 %v1176_v19, %v1148_v21 }
 0x1ef   : > { %v1208_v22 = vpop.f32.mrf.mxu1 }
 0x1f0   : > { %v1206_v28 = vadd.f32 %v1205_v17, %v1177_v24  ;;  %v7443_v24 = vmov 0  }
 0x1f1   : > { %6737 = vset.pattern.permute.xlu1 %v7443_v24  ;;  %6738 = vset.pattern.permute.xlu2 %v7443_v24 }
 0x1f2   : > { %6859 = vset.pattern.permute.xlu0 %v7443_v24  ;;  %v1647_v24 = vld [vmem:[#allocation17 + $0x28] sm:$0xff] }
 0x1f3   : > { %v1121_v23 = vpop.f32.mrf.mxu2 }
 0x1f4   : > { %v1151_v25 = vadd.f32 %v1150_v20, %v1121_v23 }
 0x1f5   : > { %v1179_v26 = vpop.f32.mrf.mxu0  ;;  %v1153_v30 = vpop.f32.mrf.mxu3 }
 0x1f6   : > { %v1180_v27 = vadd.f32 %v1179_v26, %v1151_v25 }
 0x1f7   : > { %v1211_v33 = vpop.f32.mrf.mxu1 }
 0x1f8   : > { %v1209_v29 = vadd.f32 %v1208_v22, %v1180_v27 }
 0x1fa   : > { %v6667_v31 = vpack.i.bf16 %v1206_v28, %v1209_v29 }
 0x1fb   : > { %v1124_v32 = vpop.f32.mrf.mxu2 }
 0x1fc   : > { %6668 = vrot.lane.b32.xlu2 %v6667_v31, %s7435_s27  ;;  %v1154_v35 = vadd.f32 %v1153_v30, %v1124_v32  ;;  %v6306_v30 = vld [vmem:[%s8911_s7 + $0x28] sm:$0xff]  ;;  %v6310_v32 = vld [vmem:[%s8911_s7 + $0x38] sm:$0xff] }
 0x1fd   : > { %v1182_v34 = vpop.f32.mrf.mxu0  ;;  %v1156_v36 = vpop.f32.mrf.mxu3 }
 0x1fe   : > { %v1183_v38 = vadd.f32 %v1182_v34, %v1154_v35 }
 0x1ff   : > { %v1214_v42 = vpop.f32.mrf.mxu1 }
 0x200   : > { %v1212_v43 = vadd.f32 %v1211_v33, %v1183_v38  ;;  %v6317_v33 = vld [vmem:[%s8911_s7 + $0x50] sm:$0xff] }
 0x203   : > { %v1127_v37 = vpop.f32.mrf.mxu2 }
 0x204   : > { %v1157_v39 = vadd.f32 %v1156_v36, %v1127_v37 }
 0x205   : > { %v1185_v40 = vpop.f32.mrf.mxu0 }
 0x206   : > { %v1186_v41 = vadd.f32 %v1185_v40, %v1157_v39  ;;  %v6314_v40 = vld [vmem:[%s8911_s7 + $0x48] sm:$0xff] }
 0x208   : > { %v1215_v44 = vadd.f32 %v1214_v42, %v1186_v41  ;;  %v6321_v41 = vld [vmem:[%s8911_s7 + $0x60] sm:$0xff]  ;;  %v6318_v42 = vld [vmem:[%s8911_s7 + $0x58] sm:$0xff] }
 0x20a   : > { %1293 = vmatpush.msrb.mxu3 %v1215_v44  ;;  %v6697_v45 = vpack.i.bf16 %v1212_v43, %v1215_v44 }
 0x20c   : > { %6698 = vrot.lane.b32.xlu2 %v6697_v45, %s7436_s25  ;;  %6678 = vrot.lane.b32.xlu1 %v6697_v45, %s7435_s27 }
 0x20d   : > { %6658 = vrot.lane.b32.xlu0 %v6697_v45, %s7437_s14  ;;  %1294 = vmatpush.msrb.mxu3 %v1212_v43 }
 0x20f   : > { %1295 = vmatpush.msrb.mxu3 %v1209_v29 }
 0x211   : > { %1296 = vmatpush.msrb.mxu3 %v1206_v28 }
 0x212   : > { %6303 = vmatmul.msk.f32.vlgmr.msrb.gmra.mxu3 %vm653_vm0, %v1221_v50  ;;  %v6330_v50 = vld [vmem:[%s8911_s7 + $0x88] sm:$0xff] }
 0x214   : > { %6703 = vrot.lane.b32.xlu2 %v6697_v45, %s7438_s3  ;;  %6683 = vrot.lane.b32.xlu1 %v6697_v45, %s7439_s24 }
 0x215   : > { %6663 = vrot.lane.b32.xlu0 %v6667_v31, %s7437_s14 }
 0x21a   : > { %6304 = vmatmul.msk.f32.gmra.mxu3 %vm653_vm0, %v1222_v54  ;;  %v1675_v54 = vld [vmem:[#allocation17 + $0x108] sm:$0xff] }
 0x21c   : > { %6718 = vrot.lane.b32.xlu2 %v6697_v45, %s7440_s13  ;;  %6688 = vrot.lane.b32.xlu1 %v6667_v31, %s7436_s25  ;;  %s7449_s25 = smov 94  }
 0x21d   : > { %6673 = vrot.lane.b32.xlu0 %v6667_v31, %s7439_s24 }
 0x224   : > { %6723 = vrot.lane.b32.xlu2 %v6667_v31, %s7440_s13  ;;  %6708 = vrot.lane.b32.xlu1 %v6697_v45, %s7441_s20 }
 0x225   : > { %6693 = vrot.lane.b32.xlu0 %v6667_v31, %s7438_s3  ;;  %s7444_s3 = smov 110  }
 0x22c   : > { %6713 = vrot.lane.b32.xlu1 %v6667_v31, %s7441_s20  ;;  %s7445_s20 = smov 109  }
 0x22d   : > { %6728 = vrot.lane.b32.xlu0 %v6697_v45, %s7442_s28 }
 0x235   : > { %6733 = vrot.lane.b32.xlu0 %v6667_v31, %s7442_s28  ;;  %s8936_s28 = sld [smem:[#allocation27_spill]]  ;;  %v6313_v31 = vld [vmem:[%s8911_s7 + $0x40] sm:$0xff] }
 0x23b   : > { %v1626_v18 = vld [vmem:[%s8936_s28] sm:$0xff]  ;;  %v1627_v21 = vld [vmem:[%s8936_s28 + $0x8] sm:$0xff] }
 0x23c   : > { %1630 = vperm.xlu1 %6737, %v1626_v18   ;;  %1635 = vperm.xlu2 %6738, %v1627_v21   ;;  %v1650_v21 = vld [vmem:[#allocation17 + $0x40] sm:$0xff] }
 0x256   : > { %v6669_v46 = vpop.permute.xlu2 %6668 }
 0x257   : > { %v6670_v8 = vunpack.i.l.bf16 %v6669_v46  ;;  %v6671_v11 = vunpack.i.h.bf16 %v6669_v46  ;;  %v6325_v46 = vld [vmem:[%s8911_s7 + $0x70] sm:$0xff] }
 0x266   : > { %v6699_v47 = vpop.permute.xlu2 %6698 }
 0x267   : > { %v6700_v48 = vunpack.i.l.bf16 %v6699_v47  ;;  %v6701_v49 = vunpack.i.h.bf16 %v6699_v47  ;;  %v6329_v47 = vld [vmem:[%s8911_s7 + $0x80] sm:$0xff] }
 0x269   : > { %1383 = vmatpush.msra.mxu1 %v6700_v48  ;;  %v6322_v48 = vld [vmem:[%s8911_s7 + $0x68] sm:$0xff] }
 0x26b   : > { %1384 = vmatpush.msra.mxu1 %v6701_v49  ;;  %v6326_v49 = vld [vmem:[%s8911_s7 + $0x78] sm:$0xff] }
 0x26e   : > { %v6704_v51 = vpop.permute.xlu2 %6703 }
 0x26f   : > { %v6705_v52 = vunpack.i.l.bf16 %v6704_v51  ;;  %v6706_v53 = vunpack.i.h.bf16 %v6704_v51  ;;  %v1678_v51 = vld [vmem:[#allocation17 + $0x120] sm:$0xf] }
 0x271   : > { %1475 = vmatpush.msra.mxu3 %v6705_v52  ;;  %v1679_v52 = vld [vmem:[#allocation17 + $0x128] sm:$0xf] }
 0x273   : > { %1476 = vmatpush.msra.mxu3 %v6706_v53  ;;  %v1680_v53 = vld [vmem:[#allocation17 + $0x130] sm:$0xf] }
 0x276   : > { %v6719_v2 = vpop.permute.xlu2 %6718 }
 0x277   : > { %v6720_v16 = vunpack.i.l.bf16 %v6719_v2  ;;  %v6721_v19 = vunpack.i.h.bf16 %v6719_v2  ;;  %v1663_v2 = vld [vmem:[#allocation17 + $0xa8] sm:$0xff] }
 0x27e   : > { %v6679_v55 = vpop.permute.xlu1 %6678  ;;  %v6724_v17 = vpop.permute.xlu2 %6723 }
 0x27f   : > { %v6659_v56 = vpop.permute.xlu0 %6658  ;;  %v6680_v3 = vunpack.i.l.bf16 %v6679_v55  ;;  %v6681_v4 = vunpack.i.h.bf16 %v6679_v55  ;;  %v6725_v25 = vunpack.i.l.bf16 %v6724_v17  ;;  %v6726_v28 = vunpack.i.h.bf16 %v6724_v17  ;;  %v1676_v55 = vld [vmem:[#allocation17 + $0x110] sm:$0xff]  ;;  %v1653_v17 = vld [vmem:[#allocation17 + $0x58] sm:$0xff] }
 0x280   : > { %v6660_v57 = vunpack.i.l.bf16 %v6659_v56  ;;  %v6661_v58 = vunpack.i.h.bf16 %v6659_v56  ;;  %v1677_v56 = vld [vmem:[#allocation17 + $0x118] sm:$0xff] }
 0x282   : > { %1264 = vmatpush.msrb.mxu2 %v6660_v57  ;;  %v1672_v57 = vld [vmem:[#allocation17 + $0xf0] sm:$0xff] }
 0x284   : > { %1265 = vmatpush.msrb.mxu2 %v6661_v58  ;;  %v1673_v58 = vld [vmem:[#allocation17 + $0xf8] sm:$0xff] }
 0x286   : > { %v6684_v59 = vpop.permute.xlu1 %6683 }
 0x287   : > { %v6685_v60 = vunpack.i.l.bf16 %v6684_v59  ;;  %v6664_v61 = vpop.permute.xlu0 %6663  ;;  %v6686_v63 = vunpack.i.h.bf16 %v6684_v59  ;;  %v1674_v59 = vld [vmem:[#allocation17 + $0x100] sm:$0xff] }
 0x288   : > { %v6665_v62 = vunpack.i.l.bf16 %v6664_v61  ;;  %v6666_v0 = vunpack.i.h.bf16 %v6664_v61  ;;  %v1670_v61 = vld [vmem:[#allocation17 + $0xe0] sm:$0xff] }
 0x289   : > { %1337 = vmatpush.msra.mxu0 %v6685_v60  ;;  %v1669_v60 = vld [vmem:[#allocation17 + $0xd8] sm:$0xff] }
 0x28a   : > { %1266 = vmatpush.msrb.mxu2 %v6665_v62  ;;  %v1671_v62 = vld [vmem:[#allocation17 + $0xe8] sm:$0xff] }
 0x28b   : > { %1338 = vmatpush.msra.mxu0 %v6686_v63  ;;  %v1666_v63 = vld [vmem:[#allocation17 + $0xc0] sm:$0xff] }
 0x28c   : > { %1267 = vmatpush.msrb.mxu2 %v6666_v0  ;;  %v1667_v0 = vld [vmem:[#allocation17 + $0xc8] sm:$0xff] }
 0x28d   : > { %6301 = vmatmul.msk.f32.vlgmr.msrb.gmra.mxu2 %vm653_vm0, %v6299_v1  ;;  %v1668_v1 = vld [vmem:[#allocation17 + $0xd0] sm:$0xff] }
 0x28e   : > { %1429 = vmatpush.msra.mxu2 %v6680_v3  ;;  %v6689_v5 = vpop.permute.xlu1 %6688  ;;  %v1664_v3 = vld [vmem:[#allocation17 + $0xb0] sm:$0xff] }
 0x28f   : > { %v6690_v6 = vunpack.i.l.bf16 %v6689_v5  ;;  %v6674_v7 = vpop.permute.xlu0 %6673  ;;  %v6691_v10 = vunpack.i.h.bf16 %v6689_v5  ;;  %v1660_v5 = vld [vmem:[#allocation17 + $0x90] sm:$0xff] }
 0x290   : > { %v6675_v9 = vunpack.i.l.bf16 %v6674_v7  ;;  %1430 = vmatpush.msra.mxu2 %v6681_v4  ;;  %v6676_v12 = vunpack.i.h.bf16 %v6674_v7  ;;  %v1665_v4 = vld [vmem:[#allocation17 + $0xb8] sm:$0xff]  ;;  %v1662_v7 = vld [vmem:[#allocation17 + $0xa0] sm:$0xff] }
 0x291   : > { %1385 = vmatpush.msra.mxu1 %v6690_v6  ;;  %v1661_v6 = vld [vmem:[#allocation17 + $0x98] sm:$0xff] }
 0x292   : > { %1431 = vmatpush.msra.mxu2 %v6670_v8  ;;  %1339 = vmatpush.msra.mxu0 %v6675_v9  ;;  %v1657_v8 = vld [vmem:[#allocation17 + $0x78] sm:$0xff]  ;;  %v1658_v9 = vld [vmem:[#allocation17 + $0x80] sm:$0xff] }
 0x293   : > { %1386 = vmatpush.msra.mxu1 %v6691_v10  ;;  %v1659_v10 = vld [vmem:[#allocation17 + $0x88] sm:$0xff] }
 0x294   : > { %1432 = vmatpush.msra.mxu2 %v6671_v11  ;;  %1340 = vmatpush.msra.mxu0 %v6676_v12  ;;  %v1654_v11 = vld [vmem:[#allocation17 + $0x60] sm:$0xff]  ;;  %v1655_v12 = vld [vmem:[#allocation17 + $0x68] sm:$0xff] }
 0x295   : > { %6302 = vmatmul.msk.f32.gmra.mxu2 %vm653_vm0, %v6300_v13  ;;  %6307 = vmatmul.msk.f32.vlgmr.msra.gmra.mxu0 %vm653_vm0, %v6305_v14  ;;  %v1656_v13 = vld [vmem:[#allocation17 + $0x70] sm:$0xff]  ;;  %v1298_v18 = vpop.f32.mrf.mxu3 }
 0x296   : > { %1521 = vmatpush.msrb.mxu0 %v6720_v16  ;;  %v6709_v20 = vpop.permute.xlu1 %6708  ;;  %6311 = vmatmul.msk.f32.vlgmr.msra.gmra.mxu1 %vm653_vm0, %v6309_v15  ;;  %v1651_v15 = vld [vmem:[#allocation17 + $0x48] sm:$0xff]  ;;  %v1652_v16 = vld [vmem:[#allocation17 + $0x50] sm:$0xff] }
 0x297   : > { %v6710_v22 = vunpack.i.l.bf16 %v6709_v20  ;;  %v6694_v23 = vpop.permute.xlu0 %6693  ;;  %v6711_v27 = vunpack.i.h.bf16 %v6709_v20  ;;  %v1649_v20 = vld [vmem:[#allocation17 + $0x38] sm:$0xff] }
 0x298   : > { %v6695_v26 = vunpack.i.l.bf16 %v6694_v23  ;;  %1522 = vmatpush.msrb.mxu0 %v6721_v19  ;;  %v6696_v29 = vunpack.i.h.bf16 %v6694_v23  ;;  %v1648_v19 = vld [vmem:[#allocation17 + $0x30] sm:$0xff]  ;;  %v1646_v23 = vld [vmem:[#allocation17 + $0x20] sm:$0xff] }
 0x299   : > { %1613 = vmatpush.msrb.mxu2 %v6710_v22  ;;  %v1645_v22 = vld [vmem:[#allocation17 + $0x18] sm:$0xff] }
 0x29a   : > { %1523 = vmatpush.msrb.mxu0 %v6725_v25  ;;  %1477 = vmatpush.msra.mxu3 %v6695_v26  ;;  %v1642_v25 = vld [vmem:[#allocation17] sm:$0xff]  ;;  %v1643_v26 = vld [vmem:[#allocation17 + $0x8] sm:$0xff] }
 0x29b   : > { %1614 = vmatpush.msrb.mxu2 %v6711_v27  ;;  %v1644_v27 = vld [vmem:[#allocation17 + $0x10] sm:$0xff] }
 0x29c   : > { %1524 = vmatpush.msrb.mxu0 %v6726_v28  ;;  %1478 = vmatpush.msra.mxu3 %v6696_v29 }
 0x29d   : > { %6308 = vmatmul.msk.f32.gmra.mxu0 %vm653_vm0, %v6306_v30  ;;  %6315 = vmatmul.msk.f32.vlgmr.msra.gmra.mxu2 %vm653_vm0, %v6313_v31 }
 0x29e   : > { %v6714_v34 = vpop.permute.xlu1 %6713  ;;  %6312 = vmatmul.msk.f32.gmra.mxu1 %vm653_vm0, %v6310_v32  ;;  %6319 = vmatmul.msk.f32.vlgmr.msra.gmra.mxu3 %vm653_vm0, %v6317_v33  ;;  %v1301_v32 = vpop.f32.mrf.mxu3 }
 0x29f   : > { %v6715_v35 = vunpack.i.l.bf16 %v6714_v34  ;;  %v6729_v36 = vpop.permute.xlu0 %6728  ;;  %v6716_v38 = vunpack.i.h.bf16 %v6714_v34  ;;  %6333 = vmatpush.msk.msrb.mxu3 %vm1688_vm1, %v1678_v51  ;;  %6336 = vmatpush.msk.msra.mxu0 %vm1688_vm1, %v1679_v52 }
 0x2a0   : > { %v6730_v37 = vunpack.i.l.bf16 %v6729_v36  ;;  %v6731_v39 = vunpack.i.h.bf16 %v6729_v36 }
 0x2a1   : > { %1615 = vmatpush.msrb.mxu2 %v6715_v35  ;;  %1702 = vmatpush.msrb.mxu3 %v1675_v54 }
 0x2a2   : > { %1567 = vmatpush.msrb.mxu1 %v6730_v37  ;;  %1725 = vmatpush.msra.mxu0 %v1676_v55 }
 0x2a3   : > { %1616 = vmatpush.msrb.mxu2 %v6716_v38  ;;  %1703 = vmatpush.msrb.mxu3 %v1672_v57 }
 0x2a4   : > { %1568 = vmatpush.msrb.mxu1 %v6731_v39  ;;  %1726 = vmatpush.msra.mxu0 %v1673_v58 }
 0x2a5   : > { %6316 = vmatmul.msk.f32.gmra.mxu2 %vm653_vm0, %v6314_v40  ;;  %6323 = vmatmul.msk.f32.vlgmr.msrb.gmra.mxu0 %vm653_vm0, %v6321_v41 }
 0x2a6   : > { %6320 = vmatmul.msk.f32.gmra.mxu3 %vm653_vm0, %v6318_v42  ;;  %1727 = vmatpush.msra.mxu0 %v1670_v61 }
 0x2a7   : > { %v6734_v43 = vpop.permute.xlu0 %6733  ;;  %1704 = vmatpush.msrb.mxu3 %v1669_v60 }
 0x2a8   : > { %v6735_v44 = vunpack.i.l.bf16 %v6734_v43  ;;  %v6736_v45 = vunpack.i.h.bf16 %v6734_v43  ;;  %1728 = vmatpush.msra.mxu0 %v1667_v0 }
 0x2a9   : > { %1705 = vmatpush.msrb.mxu3 %v1666_v63 }
 0x2aa   : > { %1569 = vmatpush.msrb.mxu1 %v6735_v44  ;;  %1729 = vmatpush.msra.mxu0 %v1664_v3 }
 0x2ab   : > { %1706 = vmatpush.msrb.mxu3 %v1663_v2 }
 0x2ac   : > { %1570 = vmatpush.msrb.mxu1 %v6736_v45  ;;  %1730 = vmatpush.msra.mxu0 %v1661_v6 }
 0x2ad   : > { %6327 = vmatmul.msk.f32.vlgmr.msrb.gmra.mxu1 %vm653_vm0, %v6325_v46  ;;  %6331 = vmatmul.msk.f32.vlgmr.msrb.gmra.mxu2 %vm653_vm0, %v6329_v47 }
 0x2ae   : > { %6324 = vmatmul.msk.f32.gmra.mxu0 %vm653_vm0, %v6322_v48  ;;  %6339 = vmatpush.msk.msra.mxu1 %vm1688_vm1, %v1680_v53  ;;  %v1631_v52 = vpop.permute.xlu1 %1630 }
 0x2af   : > { %1707 = vmatpush.msrb.mxu3 %v1660_v5  ;;  %1731 = vmatpush.msra.mxu0 %v1658_v9 }
 0x2b0   : > { %1748 = vmatpush.msra.mxu1 %v1677_v56 }
 0x2b1   : > { %1708 = vmatpush.msrb.mxu3 %v1657_v8  ;;  %1732 = vmatpush.msra.mxu0 %v1655_v12 }
 0x2b2   : > { %1749 = vmatpush.msra.mxu1 %v1674_v59 }
 0x2b3   : > { %1709 = vmatpush.msrb.mxu3 %v1654_v11  ;;  %1733 = vmatpush.msra.mxu0 %v1652_v16 }
 0x2b4   : > { %1750 = vmatpush.msra.mxu1 %v1671_v62  ;;  %v1636_v62 = vpop.permute.xlu2 %1635 }
 0x2b5   : > { %6328 = vmatmul.msk.f32.gmra.mxu1 %vm653_vm0, %v6326_v49  ;;  %6332 = vmatmul.msk.f32.gmra.mxu2 %vm653_vm0, %v6330_v50  ;;  %vm5150_vm0 = vcmask 490496  }
 0x2b6   : > { %1751 = vmatpush.msra.mxu1 %v1668_v1  ;;  %1710 = vmatpush.msrb.mxu3 %v1651_v15 }
 0x2b7   : > { %1734 = vmatpush.msra.mxu0 %v1649_v20 }
 0x2b8   : > { %1752 = vmatpush.msra.mxu1 %v1665_v4  ;;  %1711 = vmatpush.msrb.mxu3 %v1648_v19 }
 0x2b9   : > { %1735 = vmatpush.msra.mxu0 %v1646_v23  ;;  %v7806_v23 = vld [vmem:[%s8937_s15 + $0x10] sm:$0xff] }
 0x2ba   : > { %1753 = vmatpush.msra.mxu1 %v1662_v7  ;;  %1712 = vmatpush.msrb.mxu3 %v1645_v22 }
 0x2bb   : > { %1736 = vmatpush.msra.mxu0 %v1643_v26 }
 0x2bc   : > { %1754 = vmatpush.msra.mxu1 %v1659_v10  ;;  %1713 = vmatpush.msrb.mxu3 %v1642_v25 }
 0x2be   : > { %1755 = vmatpush.msra.mxu1 %v1656_v13 }
 0x2c0   : > { %1756 = vmatpush.msra.mxu1 %v1653_v17  ;;  %v6342_v17 = vld [vmem:[%s8937_s15 + $0x8] sm:$0xff] }
 0x2c2   : > { %1757 = vmatpush.msra.mxu1 %v1650_v21  ;;  %v7797_v21 = vld [vmem:[%s8937_s15] sm:$0xff] }
 0x2c4   : > { %1758 = vmatpush.msra.mxu1 %v1647_v24 }
 0x2c6   : > { %1759 = vmatpush.msra.mxu1 %v1644_v27 }
 0x310   : > { %v1269_v14 = vpop.f32.mrf.mxu2 }
 0x311   : > { %v1299_v31 = vadd.f32 %v1298_v18, %v1269_v14 }
 0x312   : > { %v1342_v28 = vpop.f32.mrf.mxu0 }
 0x313   : > { %v1388_v29 = vpop.f32.mrf.mxu1  ;;  %v1348_v33 = vadd.f32 %v1342_v28, %v1299_v31 }
 0x315   : > { %v1394_v37 = vadd.f32 %v1388_v29, %v1348_v33 }
 0x318   : > { %v1272_v30 = vpop.f32.mrf.mxu2 }
 0x319   : > { %v1302_v38 = vadd.f32 %v1301_v32, %v1272_v30 }
 0x31a   : > { %v1345_v34 = vpop.f32.mrf.mxu0 }
 0x31b   : > { %v1391_v36 = vpop.f32.mrf.mxu1  ;;  %v1349_v41 = vadd.f32 %v1345_v34, %v1302_v38 }
 0x31d   : > { %v1395_v46 = vadd.f32 %v1391_v36, %v1349_v41 }
 0x320   : > { %v1434_v35 = vpop.f32.mrf.mxu2 }
 0x321   : > { %v1480_v39 = vpop.f32.mrf.mxu3  ;;  %v1440_v40 = vadd.f32 %v1434_v35, %v1394_v37 }
 0x322   : > { %v1526_v42 = vpop.f32.mrf.mxu0 }
 0x323   : > { %v1486_v44 = vadd.f32 %v1480_v39, %v1440_v40 }
 0x325   : > { %v1532_v47 = vadd.f32 %v1526_v42, %v1486_v44 }
 0x328   : > { %v1437_v43 = vpop.f32.mrf.mxu2 }
 0x329   : > { %v1441_v48 = vadd.f32 %v1437_v43, %v1395_v46  ;;  %v1483_v49 = vpop.f32.mrf.mxu3 }
 0x32a   : > { %v1572_v45 = vpop.f32.mrf.mxu1 }
 0x32b   : > { %v1578_v50 = vadd.f32 %v1572_v45, %v1532_v47  ;;  %v1487_v53 = vadd.f32 %v1483_v49, %v1441_v48  ;;  %v1529_v55 = vpop.f32.mrf.mxu0 }
 0x32d   : > { %v1533_v58 = vadd.f32 %v1529_v55, %v1487_v53 }
 0x330   : > { %v1618_v51 = vpop.f32.mrf.mxu2 }
 0x331   : > { %v1624_v54 = vadd.f32 %v1618_v51, %v1578_v50 }
 0x332   : > { %v1575_v57 = vpop.f32.mrf.mxu1 }
 0x333   : > { %v1638_v56 = vadd.f32 %v1631_v52, %v1624_v54  ;;  %v1579_v60 = vadd.f32 %v1575_v57, %v1533_v58 }
 0x335   : > { %v1640_v59 = vmax.f32 %v1638_v56, 0.0 }
 0x337   : > { %6334 = vmatmul.msk.f32.vlgmr.msrb.gmra.mxu3 %vm1681_vm2, %v1640_v59  ;;  %6337 = vmatmul.msk.f32.vlgmr.msra.gmra.mxu0 %vm1681_vm2, %v1640_v59 }
 0x338   : > { %6340 = vmatmul.msk.f32.vlgmr.msra.gmra.mxu1 %vm1681_vm2, %v1640_v59  ;;  %v1621_v61 = vpop.f32.mrf.mxu2 }
 0x339   : > { %v1625_v63 = vadd.f32 %v1621_v61, %v1579_v60  ;;  %v6353_v60 = vld [vmem:[%s8937_s15 + $0x18] sm:$0xff] }
 0x33b   : > { %v1639_v0 = vadd.f32 %v1636_v62, %v1625_v63 }
 0x33d   : > { %v1641_v1 = vmax.f32 %v1639_v0, 0.0 }
 0x33f   : > { %6335 = vmatmul.msk.f32.gmra.mxu3 %vm1681_vm2, %v1641_v1  ;;  %6338 = vmatmul.msk.f32.gmra.mxu0 %vm1681_vm2, %v1641_v1 }
 0x340   : > { %6341 = vmatmul.msk.f32.gmra.mxu1 %vm1681_vm2, %v1641_v1  ;;  %vm5405_vm2 = vcmask 482304  }
 0x3b4   : > { %v1738_v2 = vpop.f32.mrf.mxu0 }
 0x3b5   : > { %v1761_v3 = vpop.f32.mrf.mxu1 }
 0x3b6   : > { %v6774_v11 = vpack.i.bf16 %v1761_v3, %v1738_v2 }
 0x3ba   : > { %v7770_v4 = vpop.f32.mrf.mxu3 }
 0x3bb   : > { %v6744_v5 = vpack.i.bf16 %v1738_v2, %v7770_v4 }
 0x3bc   : > { %v1741_v6 = vpop.f32.mrf.mxu0 }
 0x3bd   : > { %v1764_v7 = vpop.f32.mrf.mxu1  ;;  %1912 = vmatpush.msrb.mxu0 %v1741_v6  ;;  %6745 = vrot.lane.b32.xlu1 %v6744_v5, %s7437_s14 }
 0x3be   : > { %1932 = vmatpush.msrb.mxu1 %v1764_v7  ;;  %v6749_v8 = vpack.i.bf16 %v1761_v3, %v1764_v7  ;;  %v6769_v13 = vpack.i.bf16 %v1764_v7, %v1741_v6 }
 0x3bf   : > { %1913 = vmatpush.msrb.mxu0 %v1738_v2 }
 0x3c0   : > { %6750 = vrot.lane.b32.xlu2 %v6749_v8, %s7437_s14  ;;  %1933 = vmatpush.msrb.mxu1 %v1761_v3 }
 0x3c1   : > { %6347 = vmatmul.msk.f32.vlgmr.msrb.gmra.mxu0 %vm1811_vm3, %v7797_v21  ;;  %6348 = vmatmul.msk.f32.vlgmr.msrb.gmra.mxu1 %vm1811_vm3, %v7797_v21 }
 0x3c2   : > { %v7775_v9 = vpop.f32.mrf.mxu3 }
 0x3c3   : > { %v6739_v10 = vpack.i.bf16 %v1741_v6, %v7775_v9  ;;  %v6799_v12 = vpack.i.bf16 %v7770_v4, %v7775_v9 }
 0x3c5   : > { %6755 = vrot.lane.b32.xlu1 %v6744_v5, %s7439_s24  ;;  %6740 = vrot.lane.b32.xlu0 %v6739_v10, %s7437_s14 }
 0x3c8   : > { %6760 = vrot.lane.b32.xlu2 %v6749_v8, %s7439_s24 }
 0x3cd   : > { %6775 = vrot.lane.b32.xlu1 %v6774_v11, %s7444_s3  ;;  %6765 = vrot.lane.b32.xlu0 %v6739_v10, %s7439_s24 }
 0x3d0   : > { %6780 = vrot.lane.b32.xlu2 %v6749_v8, %s7445_s20 }
 0x3d5   : > { %6800 = vrot.lane.b32.xlu1 %v6799_v12, %s7444_s3  ;;  %6770 = vrot.lane.b32.xlu0 %v6769_v13, %s7444_s3  ;;  %s7450_s3 = smov 93  }
 0x3d8   : > { %6785 = vrot.lane.b32.xlu2 %v6744_v5, %s7440_s13 }
 0x3dd   : > { %6815 = vrot.lane.b32.xlu1 %v6749_v8, %s7446_s10  ;;  %6795 = vrot.lane.b32.xlu0 %v6739_v10, %s7440_s13 }
 0x3e0   : > { %6790 = vrot.lane.b32.xlu2 %v6744_v5, %s7446_s10 }
 0x3e5   : > { %6830 = vrot.lane.b32.xlu1 %v6739_v10, %s7445_s20  ;;  %6805 = vrot.lane.b32.xlu0 %v6739_v10, %s7446_s10 }
 0x3e8   : > { %6820 = vrot.lane.b32.xlu2 %v6769_v13, %s7447_s16 }
 0x3ed   : > { %6835 = vrot.lane.b32.xlu1 %v6774_v11, %s7447_s16  ;;  %6810 = vrot.lane.b32.xlu0 %v6744_v5, %s7445_s20 }
 0x3f0   : > { %6840 = vrot.lane.b32.xlu2 %v6749_v8, %s7448_s23 }
 0x3f5   : > { %6850 = vrot.lane.b32.xlu1 %v6739_v10, %s7448_s23  ;;  %6825 = vrot.lane.b32.xlu0 %v6749_v8, %s7440_s13 }
 0x3f8   : > { %6855 = vrot.lane.b32.xlu2 %v6744_v5, %s7448_s23  ;;  %s7452_s23 = smov 59  }
 0x3fd   : > { %6845 = vrot.lane.b32.xlu0 %v6799_v12, %s7447_s16  ;;  %s8939_s16 = sld [smem:[#allocation30_spill]] }
 0x41a   : > { %v6751_v14 = vpop.permute.xlu2 %6750 }
 0x41b   : > { %v6752_v15 = vunpack.i.l.bf16 %v6751_v14  ;;  %v6753_v16 = vunpack.i.h.bf16 %v6751_v14 }
 0x41d   : > { %1869 = vmatpush.msra.mxu3 %v6752_v15 }
 0x41f   : > { %1870 = vmatpush.msra.mxu3 %v6753_v16 }
 0x420   : > { %6345 = vmatmul.msk.f32.vlgmr.msra.gmra.mxu3 %vm1811_vm3, %v6342_v17 }
 0x422   : > { %v6761_v18 = vpop.permute.xlu2 %6760 }
 0x423   : > { %v6762_v19 = vunpack.i.l.bf16 %v6761_v18  ;;  %v6763_v20 = vunpack.i.h.bf16 %v6761_v18 }
 0x425   : > { %2020 = vmatpush.msra.mxu0 %v6762_v19 }
 0x427   : > { %2021 = vmatpush.msra.mxu0 %v6763_v20 }
 0x428   : > { %6352 = vmatmul.msk.f32.vlgmr.msra.gmra.mxu0 %vm1811_vm3, %v7806_v23 }
 0x42a   : > { %v7810_v26 = vpop.permute.xlu2 %6780 }
 0x42b   : > { %v6782_v56 = vunpack.i.l.bf16 %v7810_v26  ;;  %v6783_v61 = vunpack.i.h.bf16 %v7810_v26  ;;  %v6369_v26 = vld [vmem:[%s8937_s15 + $0x38] sm:$0xff] }
 0x42f   : > { %v6746_v22 = vpop.permute.xlu1 %6745 }
 0x430   : > { %v6748_v27 = vunpack.i.h.bf16 %v6746_v22  ;;  %v6747_v28 = vunpack.i.l.bf16 %v6746_v22 }
 0x432   : > { %v1801_v32 = vsel %vm1800_vm4, %v6747_v28, %v6748_v27  ;;  %v1802_v36 = vsel %vm1800_vm4, %v6748_v27, %v6753_v16  ;;  %v7817_v41 = vpop.permute.xlu2 %6785  ;;  %v2575_v28 = vld [vmem:[%s8938_s1] sm:$0xff]  ;;  %s7453_s1 = smov 58  }
 0x433   : > { %v6788_v2 = vunpack.i.h.bf16 %v7817_v41  ;;  %v6787_v3 = vunpack.i.l.bf16 %v7817_v41  ;;  %2578 = vperm.xlu0 %6859, %v2575_v28   ;;  %v2797_v28 = vld [vmem:[#allocation19 + $0x690] sm:$0xff] }
 0x437   : > { %v6756_v24 = vpop.permute.xlu1 %6755  ;;  %v6741_v25 = vpop.permute.xlu0 %6740 }
 0x438   : > { %v6743_v29 = vunpack.i.h.bf16 %v6741_v25  ;;  %v6742_v30 = vunpack.i.l.bf16 %v6741_v25  ;;  %v6758_v37 = vunpack.i.h.bf16 %v6756_v24  ;;  %v6757_v38 = vunpack.i.l.bf16 %v6756_v24  ;;  %v7876_v24 = vld [vmem:[%s8937_s15 + $0x30] sm:$0xff] }
 0x43a   : > { %v1803_v31 = vsel %vm1800_vm4, %v6742_v30, %v6743_v29  ;;  %v1804_v33 = vsel %vm1800_vm4, %v6743_v29, %v6752_v15  ;;  %v1953_v43 = vsel %vm1952_vm5, %v6757_v38, %v6758_v37  ;;  %v1954_v49 = vsel %vm1952_vm5, %v6758_v37, %v6763_v20  ;;  %v7829_v57 = vpop.permute.xlu2 %6790 }
 0x43b   : > { %1829 = vmatpush.msra.mxu2 %v1803_v31  ;;  %v6793_v14 = vunpack.i.h.bf16 %v7829_v57  ;;  %v6792_v15 = vunpack.i.l.bf16 %v7829_v57 }
 0x43d   : > { %1830 = vmatpush.msra.mxu2 %v1801_v32 }
 0x43e   : > { %6343 = vmatmul.msk.f32.vlgmr.msra.gmra.mxu2 %vm1811_vm3, %v6342_v17 }
 0x43f   : > { %1849 = vmatpush.msrb.mxu2 %v1804_v33  ;;  %v6776_v34 = vpop.permute.xlu1 %6775  ;;  %v6766_v35 = vpop.permute.xlu0 %6765 }
 0x440   : > { %v6768_v39 = vunpack.i.h.bf16 %v6766_v35  ;;  %v6767_v40 = vunpack.i.l.bf16 %v6766_v35  ;;  %v6778_v45 = vunpack.i.h.bf16 %v6776_v34  ;;  %v6777_v46 = vunpack.i.l.bf16 %v6776_v34 }
 0x441   : > { %1850 = vmatpush.msrb.mxu2 %v1802_v36 }
 0x442   : > { %v1955_v42 = vsel %vm1952_vm5, %v6767_v40, %v6768_v39  ;;  %v1956_v44 = vsel %vm1952_vm5, %v6768_v39, %v6762_v19  ;;  %v2045_v59 = vsel %vm2043_vm6, %v6777_v46, %v6778_v45  ;;  %v7852_v5 = vpop.permute.xlu2 %6820 }
 0x443   : > { %1892 = vmatpush.msra.mxu2 %v7775_v9  ;;  %1980 = vmatpush.msrb.mxu3 %v1955_v42  ;;  %v2226_v9 = vsel %vm2225_vm7, %v6787_v3, %v6788_v2  ;;  %v6823_v16 = vunpack.i.h.bf16 %v7852_v5  ;;  %v6361_v42 = vld [vmem:[%s8937_s15 + $0x28] sm:$0xff] }
 0x444   : > { %v2728_v3 = vld [vmem:[#allocation19 + $0x468] sm:$0xff] }
 0x445   : > { %1893 = vmatpush.msra.mxu2 %v7770_v4  ;;  %1981 = vmatpush.msrb.mxu3 %v1953_v43  ;;  %v6357_v4 = vld [vmem:[%s8937_s15 + $0x20] sm:$0xff] }
 0x446   : > { %6344 = vmatmul.msk.f32.vlgmr.msrb.gmra.mxu2 %vm1811_vm3, %v6342_v17  ;;  %6350 = vmatmul.msk.f32.vlgmr.msrb.gmra.mxu3 %vm1811_vm3, %v7806_v23  ;;  %v6822_v17 = vunpack.i.l.bf16 %v7852_v5  ;;  %v2718_v5 = vld [vmem:[#allocation19 + $0x418] sm:$0xff] }
 0x447   : > { %2000 = vmatpush.msrb.mxu2 %v1956_v44  ;;  %v6801_v47 = vpop.permute.xlu1 %6800  ;;  %v6771_v48 = vpop.permute.xlu0 %6770 }
 0x448   : > { %v6803_v50 = vunpack.i.h.bf16 %v6801_v47  ;;  %v6802_v51 = vunpack.i.l.bf16 %v6801_v47  ;;  %v6773_v52 = vunpack.i.h.bf16 %v6771_v48  ;;  %v6772_v53 = vunpack.i.l.bf16 %v6771_v48 }
 0x449   : > { %2001 = vmatpush.msrb.mxu2 %v1954_v49  ;;  %v2411_v27 = vsel %vm2407_vm10, %v6822_v17, %v6823_v16 }
 0x44a   : > { %v2046_v54 = vsel %vm2043_vm6, %v6802_v51, %v6772_v53  ;;  %v2047_v55 = vsel %vm2043_vm6, %v6772_v53, %v6773_v52  ;;  %v2044_v58 = vsel %vm2043_vm6, %v6803_v50, %v6777_v46  ;;  %v7891_v32 = vpop.permute.xlu2 %6840  ;;  %v6373_v53 = vld [vmem:[%s8937_s15 + $0x40] sm:$0xff] }
 0x44b   : > { %2071 = vmatpush.msra.mxu1 %v2046_v54  ;;  %2091 = vmatpush.msra.mxu3 %v2047_v55  ;;  %v6842_v40 = vunpack.i.l.bf16 %v7891_v32  ;;  %v6843_v43 = vunpack.i.h.bf16 %v7891_v32  ;;  %v2787_v32 = vld [vmem:[#allocation19 + $0x640] sm:$0xff] }
 0x44d   : > { %2072 = vmatpush.msra.mxu1 %v2044_v58  ;;  %2092 = vmatpush.msra.mxu3 %v2045_v59 }
 0x44e   : > { %6346 = vmatmul.msk.f32.vlgmr.msra.gmra.mxu2 %vm1811_vm3, %v7797_v21  ;;  %6355 = vmatmul.msk.f32.vlgmr.msra.gmra.mxu3 %vm1811_vm3, %v6353_v60 }
 0x44f   : > { %2202 = vmatpush.msrb.mxu3 %v6782_v56  ;;  %2111 = vmatpush.msra.mxu2 %v6773_v52  ;;  %v7837_v62 = vpop.permute.xlu1 %6815  ;;  %v7839_v63 = vpop.permute.xlu0 %6795 }
 0x450   : > { %6354 = vmatmul.msk.f32.vlgmr.msra.gmra.mxu1 %vm1811_vm3, %v6353_v60  ;;  %v6798_v0 = vunpack.i.h.bf16 %v7839_v63  ;;  %v6797_v1 = vunpack.i.l.bf16 %v7839_v63  ;;  %v6818_v21 = vunpack.i.h.bf16 %v7837_v62  ;;  %v6817_v22 = vunpack.i.l.bf16 %v7837_v62 }
 0x451   : > { %2203 = vmatpush.msrb.mxu3 %v6783_v61  ;;  %2112 = vmatpush.msra.mxu2 %v6778_v45 }
 0x452   : > { %v2228_v6 = vsel %vm2225_vm7, %v6797_v1, %v6798_v0  ;;  %v2318_v31 = vsel %vm2316_vm9, %v6793_v14, %v6818_v21  ;;  %v6856_v49 = vpop.permute.xlu2 %6855  ;;  %v2738_v1 = vld [vmem:[#allocation19 + $0x4b8] sm:$0xff] }
 0x453   : > { %v6858_v54 = vunpack.i.h.bf16 %v6856_v49  ;;  %v6857_v55 = vunpack.i.l.bf16 %v6856_v49  ;;  %v2657_v49 = vld [vmem:[#allocation19 + $0x230] sm:$0xff] }
 0x455   : > { %v2500_v63 = vsel %vm2498_vm11, %v6858_v54, %v6843_v43 }
 0x456   : > { %6351 = vmatmul.msk.f32.vlgmr.msrb.gmra.mxu2 %vm1811_vm3, %v7806_v23  ;;  %6360 = vmatmul.msk.f32.vlgmr.msrb.gmra.mxu3 %vm1811_vm3, %v6357_v4  ;;  %v2317_v23 = vsel %vm2316_vm9, %v6792_v15, %v6793_v14  ;;  %v2737_v14 = vld [vmem:[#allocation19 + $0x4b0] sm:$0xff]  ;;  %v2827_v15 = vld [vmem:[#allocation19 + $0x780] sm:$0xff] }
 0x457   : > { %2253 = vmatpush.msrb.mxu2 %v2228_v6  ;;  %v6831_v7 = vpop.permute.xlu1 %6830  ;;  %v6806_v8 = vpop.permute.xlu0 %6805  ;;  %v2867_v6 = vld [vmem:[#allocation19 + $0x8c0] sm:$0xff] }
 0x458   : > { %v6833_v10 = vunpack.i.h.bf16 %v6831_v7  ;;  %v6832_v11 = vunpack.i.l.bf16 %v6831_v7  ;;  %v6808_v12 = vunpack.i.h.bf16 %v6806_v8  ;;  %v6807_v13 = vunpack.i.l.bf16 %v6806_v8  ;;  %v2708_v7 = vld [vmem:[#allocation19 + $0x3c8] sm:$0xff]  ;;  %v2857_v8 = vld [vmem:[#allocation19 + $0x870] sm:$0xff] }
 0x459   : > { %2254 = vmatpush.msrb.mxu2 %v2226_v9  ;;  %v2698_v9 = vld [vmem:[#allocation19 + $0x378] sm:$0xff] }
 0x45a   : > { %v2137_v18 = vsel %vm2134_vm8, %v6832_v11, %v6833_v10  ;;  %v2138_v19 = vsel %vm2134_vm8, %v6833_v10, %v6782_v56  ;;  %v2319_v20 = vsel %vm2316_vm9, %v6807_v13, %v6808_v12  ;;  %v2320_v25 = vsel %vm2316_vm9, %v6808_v12, %v6817_v22  ;;  %v2847_v10 = vld [vmem:[#allocation19 + $0x820] sm:$0xff]  ;;  %v2688_v11 = vld [vmem:[#allocation19 + $0x328] sm:$0xff]  ;;  %v2837_v12 = vld [vmem:[#allocation19 + $0x7d0] sm:$0xff] }
 0x45b   : > { %2162 = vmatpush.msrb.mxu0 %v2137_v18  ;;  %2182 = vmatpush.msrb.mxu1 %v2138_v19  ;;  %v2678_v13 = vld [vmem:[#allocation19 + $0x2d8] sm:$0xff]  ;;  %v2727_v18 = vld [vmem:[#allocation19 + $0x460] sm:$0xff]  ;;  %v2817_v19 = vld [vmem:[#allocation19 + $0x730] sm:$0xff] }
 0x45c   : > { %2344 = vmatpush.msra.mxu3 %v2319_v20  ;;  %v2977_v20 = vld [vmem:[#allocation19 + $0xc30] sm:$0xff] }
 0x45e   : > { %2345 = vmatpush.msra.mxu3 %v2317_v23  ;;  %6356 = vmatmul.msk.f32.vlgmr.msra.gmra.mxu2 %vm1811_vm3, %v6353_v60  ;;  %v2499_v60 = vsel %vm2498_vm11, %v6857_v55, %v6858_v54  ;;  %v2807_v23 = vld [vmem:[#allocation19 + $0x6e0] sm:$0xff] }
 0x45f   : > { %2364 = vmatpush.msra.mxu2 %v2320_v25  ;;  %v7886_v29 = vpop.permute.xlu1 %6835  ;;  %v6811_v30 = vpop.permute.xlu0 %6810  ;;  %6366 = vmatmul.msk.f32.vlgmr.msra.gmra.mxu3 %vm1811_vm3, %v7876_v24  ;;  %v2648_v25 = vld [vmem:[#allocation19 + $0x1e8] sm:$0xff]  ;;  %v2739_v54 = vld [vmem:[#allocation19 + $0x4c0] sm:$0xff] }
 0x460   : > { %2455 = vmatpush.msrb.mxu3 %v2411_v27  ;;  %v6838_v33 = vunpack.i.h.bf16 %v7886_v29  ;;  %v6837_v34 = vunpack.i.l.bf16 %v7886_v29  ;;  %v6813_v35 = vunpack.i.h.bf16 %v6811_v30  ;;  %v6812_v36 = vunpack.i.l.bf16 %v6811_v30  ;;  %v2707_v27 = vld [vmem:[#allocation19 + $0x3c0] sm:$0xff]  ;;  %v2957_v29 = vld [vmem:[#allocation19 + $0xb90] sm:$0xff]  ;;  %v2638_v30 = vld [vmem:[#allocation19 + $0x198] sm:$0xff] }
 0x461   : > { %2365 = vmatpush.msra.mxu2 %v2318_v31  ;;  %v2697_v31 = vld [vmem:[#allocation19 + $0x370] sm:$0xff]  ;;  %v2899_v55 = vld [vmem:[#allocation19 + $0x9c0] sm:$0xff] }
 0x462   : > { %v2135_v37 = vsel %vm2134_vm8, %v6812_v36, %v6813_v35  ;;  %v2136_v38 = vsel %vm2134_vm8, %v6813_v35, %v6783_v61  ;;  %v2409_v39 = vsel %vm2407_vm10, %v6837_v34, %v6838_v33  ;;  %v2687_v35 = vld [vmem:[#allocation19 + $0x320] sm:$0xff]  ;;  %v2777_v36 = vld [vmem:[#allocation19 + $0x5f0] sm:$0xff]  ;;  %vm6118_vm8 = vcmask 1040384  }
 0x463   : > { %2163 = vmatpush.msrb.mxu0 %v2135_v37  ;;  %2183 = vmatpush.msrb.mxu1 %v2136_v38  ;;  %v2937_v37 = vld [vmem:[#allocation19 + $0xaf0] sm:$0xff]  ;;  %v2618_v38 = vld [vmem:[#allocation19 + $0xf8] sm:$0xff] }
 0x464   : > { %2456 = vmatpush.msrb.mxu3 %v2409_v39  ;;  %6358 = vmatmul.msk.f32.vlgmr.msrb.gmra.mxu0 %vm1811_vm3, %v6357_v4  ;;  %v2677_v39 = vld [vmem:[#allocation19 + $0x2d0] sm:$0xff] }
 0x465   : > { %6359 = vmatmul.msk.f32.vlgmr.msrb.gmra.mxu1 %vm1811_vm3, %v6357_v4  ;;  %v2877_v4 = vld [vmem:[#allocation19 + $0x910] sm:$0xff] }
 0x466   : > { %2566 = vmatpush.msra.mxu3 %v6842_v40  ;;  %6362 = vmatmul.msk.f32.vlgmr.msrb.gmra.mxu2 %vm1811_vm3, %v6361_v42 }
 0x467   : > { %2475 = vmatpush.msrb.mxu2 %v6823_v16  ;;  %v6826_v44 = vpop.permute.xlu0 %6825  ;;  %6371 = vmatmul.msk.f32.vlgmr.msrb.gmra.mxu3 %vm1811_vm3, %v6369_v26  ;;  %v6851_v47 = vpop.permute.xlu1 %6850  ;;  %v2987_v16 = vld [vmem:[#allocation19 + $0xc80] sm:$0xf] }
 0x468   : > { %2567 = vmatpush.msra.mxu3 %v6843_v43  ;;  %v6828_v45 = vunpack.i.h.bf16 %v6826_v44  ;;  %v6827_v46 = vunpack.i.l.bf16 %v6826_v44  ;;  %v6853_v51 = vunpack.i.h.bf16 %v6851_v47  ;;  %v6852_v52 = vunpack.i.l.bf16 %v6851_v47  ;;  %v2608_v43 = vld [vmem:[#allocation19 + $0xa8] sm:$0xff]  ;;  %v2598_v47 = vld [vmem:[#allocation19 + $0x58] sm:$0xff] }
 0x469   : > { %2476 = vmatpush.msrb.mxu2 %v6838_v33  ;;  %v2947_v33 = vld [vmem:[#allocation19 + $0xb40] sm:$0xff] }
 0x46a   : > { %2293 = vmatpush.msra.mxu1 %v6827_v46  ;;  %v2229_v48 = vsel %vm2225_vm7, %v6798_v0, %v6827_v46  ;;  %v2227_v50 = vsel %vm2225_vm7, %v6788_v2, %v6828_v45  ;;  %v2501_v58 = vsel %vm2498_vm11, %v6852_v52, %v6853_v51  ;;  %v2502_v62 = vsel %vm2498_vm11, %v6853_v51, %v6842_v40  ;;  %v2897_v0 = vld [vmem:[#allocation19 + $0x9b0] sm:$0xff]  ;;  %v2887_v2 = vld [vmem:[#allocation19 + $0x960] sm:$0xff]  ;;  %v2588_v52 = vld [vmem:[#allocation19 + $0x8] sm:$0xff] }
 0x46b   : > { %2273 = vmatpush.msra.mxu0 %v2229_v48  ;;  %3091 = vmatpush.msrb.mxu3 %v2738_v1  ;;  %v2767_v40 = vld [vmem:[#allocation19 + $0x5a0] sm:$0xff]  ;;  %v2917_v46 = vld [vmem:[#allocation19 + $0xa50] sm:$0xff] }
 0x46c   : > { %2294 = vmatpush.msra.mxu1 %v6828_v45  ;;  %v2757_v45 = vld [vmem:[#allocation19 + $0x550] sm:$0xff]  ;;  %v2907_v51 = vld [vmem:[#allocation19 + $0xa00] sm:$0xff] }
 0x46d   : > { %2274 = vmatpush.msra.mxu0 %v2227_v50  ;;  %6364 = vmatmul.msk.f32.vlgmr.msra.gmra.mxu1 %vm1811_vm3, %v6361_v42  ;;  %v2747_v50 = vld [vmem:[#allocation19 + $0x500] sm:$0xff] }
 0x46e   : > { %6363 = vmatmul.msk.f32.vlgmr.msra.gmra.mxu0 %vm1811_vm3, %v6361_v42  ;;  %6367 = vmatmul.msk.f32.vlgmr.msra.gmra.mxu2 %vm1811_vm3, %v7876_v24  ;;  %v2927_v42 = vld [vmem:[#allocation19 + $0xaa0] sm:$0xff] }
 0x46f   : > { %2384 = vmatpush.msrb.mxu0 %v6817_v22  ;;  %v6846_v41 = vpop.permute.xlu0 %6845  ;;  %6376 = vmatmul.msk.f32.vlgmr.msra.gmra.mxu3 %vm1811_vm3, %v6373_v53  ;;  %v2717_v22 = vld [vmem:[#allocation19 + $0x410] sm:$0xff] }
 0x470   : > { %v6848_v56 = vunpack.i.h.bf16 %v6846_v41  ;;  %v6847_v57 = vunpack.i.l.bf16 %v6846_v41  ;;  %3092 = vmatpush.msrb.mxu3 %v2728_v3  ;;  %3031 = vmatpush.msra.mxu2 %v2737_v14  ;;  %v2647_v41 = vld [vmem:[#allocation19 + $0x1e0] sm:$0xff]  ;;  %v2709_v3 = vld [vmem:[#allocation19 + $0x3d0] sm:$0xff]  ;;  %v2838_v14 = vld [vmem:[#allocation19 + $0x7d8] sm:$0xff] }
 0x471   : > { %2385 = vmatpush.msrb.mxu0 %v6818_v21  ;;  %v2658_v21 = vld [vmem:[#allocation19 + $0x238] sm:$0xff] }
 0x472   : > { %v2410_v59 = vsel %vm2407_vm10, %v6847_v57, %v6822_v17  ;;  %v2408_v61 = vsel %vm2407_vm10, %v6848_v56, %v6837_v34  ;;  %3093 = vmatpush.msrb.mxu3 %v2718_v5  ;;  %v2668_v17 = vld [vmem:[#allocation19 + $0x288] sm:$0xff]  ;;  %3032 = vmatpush.msra.mxu2 %v2727_v18  ;;  %v2729_v57 = vld [vmem:[#allocation19 + $0x470] sm:$0xff]  ;;  %v7953_v18 = vpop.f32.mrf.mxu0 }
 0x473   : > { %2526 = vmatpush.msra.mxu0 %v2501_v58  ;;  %2435 = vmatpush.msrb.mxu1 %v2410_v59  ;;  %v2628_v34 = vld [vmem:[#allocation19 + $0x148] sm:$0xff]  ;;  %v2889_v58 = vld [vmem:[#allocation19 + $0x970] sm:$0xff] }
 0x474   : > { %3094 = vmatpush.msrb.mxu3 %v2708_v7  ;;  %3033 = vmatpush.msra.mxu2 %v2717_v22  ;;  %v2888_v56 = vld [vmem:[#allocation19 + $0x968] sm:$0xff]  ;;  %v2637_v59 = vld [vmem:[#allocation19 + $0x190] sm:$0xff]  ;;  %v2699_v7 = vld [vmem:[#allocation19 + $0x380] sm:$0xff] }
 0x475   : > { %2527 = vmatpush.msra.mxu0 %v2499_v60  ;;  %2436 = vmatpush.msrb.mxu1 %v2408_v61  ;;  %v2878_v60 = vld [vmem:[#allocation19 + $0x918] sm:$0xff]  ;;  %v2719_v61 = vld [vmem:[#allocation19 + $0x420] sm:$0xff]  ;;  %v2617_v5 = vld [vmem:[#allocation19 + $0xf0] sm:$0xff] }
 0x476   : > { %6368 = vmatmul.msk.f32.vlgmr.msrb.gmra.mxu0 %vm1811_vm3, %v7876_v24  ;;  %6370 = vmatmul.msk.f32.vlgmr.msrb.gmra.mxu1 %vm1811_vm3, %v6369_v26  ;;  %v2967_v24 = vld [vmem:[#allocation19 + $0xbe0] sm:$0xff]  ;;  %v2828_v22 = vld [vmem:[#allocation19 + $0x788] sm:$0xff] }
 0x477   : > { %6372 = vmatmul.msk.f32.vlgmr.msrb.gmra.mxu2 %vm1811_vm3, %v6369_v26  ;;  %2546 = vmatpush.msra.mxu1 %v2502_v62  ;;  %v2667_v26 = vld [vmem:[#allocation19 + $0x280] sm:$0xff] }
 0x478   : > { %3051 = vmatpush.msrb.mxu0 %v2897_v0  ;;  %3095 = vmatpush.msrb.mxu3 %v2698_v9  ;;  %v2879_v62 = vld [vmem:[#allocation19 + $0x920] sm:$0xff] }
 0x479   : > { %2547 = vmatpush.msra.mxu1 %v2500_v63  ;;  %3034 = vmatpush.msra.mxu2 %v2707_v27  ;;  %v2627_v63 = vld [vmem:[#allocation19 + $0x140] sm:$0xff]  ;;  %v2818_v27 = vld [vmem:[#allocation19 + $0x738] sm:$0xff] }
 0x47a   : > { %3052 = vmatpush.msrb.mxu0 %v2887_v2  ;;  %3096 = vmatpush.msrb.mxu3 %v2688_v11  ;;  %v2868_v2 = vld [vmem:[#allocation19 + $0x8c8] sm:$0xff]  ;;  %v2607_v9 = vld [vmem:[#allocation19 + $0xa0] sm:$0xff]  ;;  %v2689_v11 = vld [vmem:[#allocation19 + $0x330] sm:$0xff] }
 0x47b   : > { %6377 = vmatpush.msk.msrb.mxu1 %vm1688_vm1, %v2987_v16  ;;  %3035 = vmatpush.msra.mxu2 %v2697_v31  ;;  %v2839_v16 = vld [vmem:[#allocation19 + $0x7e0] sm:$0xff]  ;;  %v2808_v31 = vld [vmem:[#allocation19 + $0x6e8] sm:$0xff] }
 0x47c   : > { %3053 = vmatpush.msrb.mxu0 %v2877_v4  ;;  %3097 = vmatpush.msrb.mxu3 %v2678_v13  ;;  %v2869_v4 = vld [vmem:[#allocation19 + $0x8d0] sm:$0xff] }
 0x47d   : > { %3079 = vmatpush.msrb.mxu1 %v2977_v20  ;;  %3036 = vmatpush.msra.mxu2 %v2687_v35  ;;  %v2597_v13 = vld [vmem:[#allocation19 + $0x50] sm:$0xff]  ;;  %v7957_v20 = vpop.f32.mrf.mxu1  ;;  %v2798_v35 = vld [vmem:[#allocation19 + $0x698] sm:$0xff] }
 0x47e   : > { %6374 = vmatmul.msk.f32.vlgmr.msra.gmra.mxu0 %vm1811_vm3, %v6373_v53  ;;  %6375 = vmatmul.msk.f32.vlgmr.msra.gmra.mxu1 %vm1811_vm3, %v6373_v53  ;;  %v2898_v53 = vld [vmem:[#allocation19 + $0x9b8] sm:$0xff]  ;;  %vm5660_vm3 = vcmask 474112  }
 0x47f   : > { %3054 = vmatpush.msrb.mxu0 %v2867_v6  ;;  %3098 = vmatpush.msrb.mxu3 %v2668_v17  ;;  %v2858_v6 = vld [vmem:[#allocation19 + $0x878] sm:$0xff]  ;;  %v2587_v17 = vld [vmem:[#allocation19] sm:$0xff] }
 0x480   : > { %3080 = vmatpush.msrb.mxu1 %v2967_v24  ;;  %3037 = vmatpush.msra.mxu2 %v2677_v39  ;;  %v2669_v24 = vld [vmem:[#allocation19 + $0x290] sm:$0xff] }
 0x481   : > { %3055 = vmatpush.msrb.mxu0 %v2857_v8  ;;  %3099 = vmatpush.msrb.mxu3 %v2658_v21  ;;  %v2859_v8 = vld [vmem:[#allocation19 + $0x880] sm:$0xff] }
 0x482   : > { %3081 = vmatpush.msrb.mxu1 %v2957_v29  ;;  %3038 = vmatpush.msra.mxu2 %v2667_v26  ;;  %v2659_v29 = vld [vmem:[#allocation19 + $0x240] sm:$0xff]  ;;  %v2629_v26 = vld [vmem:[#allocation19 + $0x150] sm:$0xff] }
 0x483   : > { %3056 = vmatpush.msrb.mxu0 %v2847_v10  ;;  %3100 = vmatpush.msrb.mxu3 %v2648_v25  ;;  %v2848_v10 = vld [vmem:[#allocation19 + $0x828] sm:$0xff]  ;;  %v2829_v25 = vld [vmem:[#allocation19 + $0x790] sm:$0xff] }
 0x484   : > { %3082 = vmatpush.msrb.mxu1 %v2947_v33  ;;  %3039 = vmatpush.msra.mxu2 %v2657_v49  ;;  %v2649_v33 = vld [vmem:[#allocation19 + $0x1f0] sm:$0xff]  ;;  %v2778_v49 = vld [vmem:[#allocation19 + $0x5f8] sm:$0xff] }
 0x485   : > { %3057 = vmatpush.msrb.mxu0 %v2837_v12  ;;  %3101 = vmatpush.msrb.mxu3 %v2638_v30  ;;  %v2849_v12 = vld [vmem:[#allocation19 + $0x830] sm:$0xff]  ;;  %v2819_v30 = vld [vmem:[#allocation19 + $0x740] sm:$0xff] }
 0x486   : > { %3083 = vmatpush.msrb.mxu1 %v2937_v37  ;;  %3040 = vmatpush.msra.mxu2 %v2647_v41  ;;  %v2639_v37 = vld [vmem:[#allocation19 + $0x1a0] sm:$0xff]  ;;  %v2769_v41 = vld [vmem:[#allocation19 + $0x5b0] sm:$0xff] }
 0x487   : > { %3058 = vmatpush.msrb.mxu0 %v2827_v15  ;;  %3102 = vmatpush.msrb.mxu3 %v2628_v34  ;;  %v2679_v15 = vld [vmem:[#allocation19 + $0x2e0] sm:$0xff]  ;;  %v2809_v34 = vld [vmem:[#allocation19 + $0x6f0] sm:$0xff] }
 0x488   : > { %3084 = vmatpush.msrb.mxu1 %v2927_v42  ;;  %3041 = vmatpush.msra.mxu2 %v2637_v59  ;;  %v2788_v42 = vld [vmem:[#allocation19 + $0x648] sm:$0xff] }
 0x489   : > { %3059 = vmatpush.msrb.mxu0 %v2817_v19  ;;  %3103 = vmatpush.msrb.mxu3 %v2618_v38  ;;  %v2799_v38 = vld [vmem:[#allocation19 + $0x6a0] sm:$0xff] }
 0x48a   : > { %3085 = vmatpush.msrb.mxu1 %v2917_v46  ;;  %3042 = vmatpush.msra.mxu2 %v2627_v63  ;;  %v2789_v46 = vld [vmem:[#allocation19 + $0x650] sm:$0xff] }
 0x48b   : > { %3060 = vmatpush.msrb.mxu0 %v2807_v23  ;;  %3104 = vmatpush.msrb.mxu3 %v2608_v43  ;;  %v2988_v23 = vld [vmem:[#allocation19 + $0xc88] sm:$0xf] }
 0x48c   : > { %3086 = vmatpush.msrb.mxu1 %v2907_v51  ;;  %3043 = vmatpush.msra.mxu2 %v2617_v5  ;;  %v2948_v43 = vld [vmem:[#allocation19 + $0xb48] sm:$0xff]  ;;  %v2619_v51 = vld [vmem:[#allocation19 + $0x100] sm:$0xff] }
 0x48d   : > { %3061 = vmatpush.msrb.mxu0 %v2797_v28  ;;  %3105 = vmatpush.msrb.mxu3 %v2598_v47  ;;  %v2978_v28 = vld [vmem:[#allocation19 + $0xc38] sm:$0xff] }
 0x48e   : > { %3111 = vmatpush.msra.mxu1 %v2898_v53  ;;  %3044 = vmatpush.msra.mxu2 %v2607_v9  ;;  %v2768_v53 = vld [vmem:[#allocation19 + $0x5a8] sm:$0xff] }
 0x48f   : > { %3062 = vmatpush.msrb.mxu0 %v2787_v32  ;;  %3106 = vmatpush.msrb.mxu3 %v2588_v52  ;;  %v2968_v32 = vld [vmem:[#allocation19 + $0xbe8] sm:$0xff]  ;;  %v2779_v52 = vld [vmem:[#allocation19 + $0x600] sm:$0xff] }
 0x490   : > { %3112 = vmatpush.msra.mxu1 %v2888_v56  ;;  %3045 = vmatpush.msra.mxu2 %v2597_v13  ;;  %v2758_v56 = vld [vmem:[#allocation19 + $0x558] sm:$0xff] }
 0x491   : > { %3063 = vmatpush.msrb.mxu0 %v2777_v36  ;;  %3171 = vmatpush.msra.mxu3 %v2899_v55  ;;  %v2958_v36 = vld [vmem:[#allocation19 + $0xb98] sm:$0xff]  ;;  %v2609_v55 = vld [vmem:[#allocation19 + $0xb0] sm:$0xff] }
 0x492   : > { %3113 = vmatpush.msra.mxu1 %v2878_v60  ;;  %3046 = vmatpush.msra.mxu2 %v2587_v17  ;;  %v2759_v60 = vld [vmem:[#allocation19 + $0x560] sm:$0xff] }
 0x493   : > { %3064 = vmatpush.msrb.mxu0 %v2767_v40  ;;  %3172 = vmatpush.msra.mxu3 %v2889_v58  ;;  %v2599_v58 = vld [vmem:[#allocation19 + $0x60] sm:$0xff] }
 0x494   : > { %3114 = vmatpush.msra.mxu1 %v2868_v2  ;;  %6379 = vmatpush.msk.msrb.mxu2 %vm1688_vm1, %v2988_v23  ;;  %v2589_v2 = vld [vmem:[#allocation19 + $0x10] sm:$0xff] }
 0x495   : > { %3065 = vmatpush.msrb.mxu0 %v2757_v45  ;;  %3173 = vmatpush.msra.mxu3 %v2879_v62  ;;  %v2908_v62 = vld [vmem:[#allocation19 + $0xa08] sm:$0xff] }
 0x496   : > { %3115 = vmatpush.msra.mxu1 %v2858_v6  ;;  %3139 = vmatpush.msrb.mxu2 %v2978_v28 }
 0x497   : > { %3066 = vmatpush.msrb.mxu0 %v2747_v50  ;;  %3174 = vmatpush.msra.mxu3 %v2869_v4  ;;  %v2938_v50 = vld [vmem:[#allocation19 + $0xaf8] sm:$0xff] }
 0x498   : > { %3116 = vmatpush.msra.mxu1 %v2848_v10  ;;  %3140 = vmatpush.msrb.mxu2 %v2968_v32 }
 0x499   : > { %3151 = vmatpush.msra.mxu0 %v2739_v54  ;;  %3175 = vmatpush.msra.mxu3 %v2859_v8  ;;  %v2928_v54 = vld [vmem:[#allocation19 + $0xaa8] sm:$0xff] }
 0x49a   : > { %3117 = vmatpush.msra.mxu1 %v2838_v14  ;;  %3141 = vmatpush.msrb.mxu2 %v2958_v36 }
 0x49b   : > { %3152 = vmatpush.msra.mxu0 %v2729_v57  ;;  %3176 = vmatpush.msra.mxu3 %v2849_v12  ;;  %v2918_v57 = vld [vmem:[#allocation19 + $0xa58] sm:$0xff] }
 0x49c   : > { %3118 = vmatpush.msra.mxu1 %v2828_v22  ;;  %3142 = vmatpush.msrb.mxu2 %v2948_v43 }
 0x49d   : > { %3153 = vmatpush.msra.mxu0 %v2719_v61  ;;  %3177 = vmatpush.msra.mxu3 %v2839_v16  ;;  %v2748_v61 = vld [vmem:[#allocation19 + $0x508] sm:$0xff] }
 0x49e   : > { %3119 = vmatpush.msra.mxu1 %v2818_v27  ;;  %3143 = vmatpush.msrb.mxu2 %v2938_v50  ;;  %v2990_v50 = vld [vmem:[#allocation19 + $0xc98] sm:$0xf] }
 0x49f   : > { %3154 = vmatpush.msra.mxu0 %v2709_v3  ;;  %3178 = vmatpush.msra.mxu3 %v2829_v25  ;;  %v2749_v3 = vld [vmem:[#allocation19 + $0x510] sm:$0xff] }
 0x4a0   : > { %3120 = vmatpush.msra.mxu1 %v2808_v31  ;;  %3144 = vmatpush.msrb.mxu2 %v2928_v54  ;;  %v2980_v54 = vld [vmem:[#allocation19 + $0xc48] sm:$0xff] }
 0x4a1   : > { %3155 = vmatpush.msra.mxu0 %v2699_v7  ;;  %3179 = vmatpush.msra.mxu3 %v2819_v30 }
 0x4a2   : > { %3121 = vmatpush.msra.mxu1 %v2798_v35  ;;  %3145 = vmatpush.msrb.mxu2 %v2918_v57  ;;  %v2970_v57 = vld [vmem:[#allocation19 + $0xbf8] sm:$0xff] }
 0x4a3   : > { %v7945_v44 = vpop.f32.mrf.mxu3  ;;  %3156 = vmatpush.msra.mxu0 %v2689_v11  ;;  %3180 = vmatpush.msra.mxu3 %v2809_v34 }
 0x4a4   : > { %3122 = vmatpush.msra.mxu1 %v2788_v42  ;;  %3146 = vmatpush.msrb.mxu2 %v2908_v62  ;;  %v1936_v10 = vadd.f32 %v7957_v20, %v7945_v44  ;;  %v2949_v62 = vld [vmem:[#allocation19 + $0xb50] sm:$0xff] }
 0x4a5   : > { %3157 = vmatpush.msra.mxu0 %v2679_v15  ;;  %v2023_v45 = vpop.f32.mrf.mxu0  ;;  %3181 = vmatpush.msra.mxu3 %v2799_v38 }
 0x4a6   : > { %3123 = vmatpush.msra.mxu1 %v2778_v49  ;;  %v2028_v14 = vadd.f32 %v2023_v45, %v1936_v10  ;;  %v2900_v49 = vld [vmem:[#allocation19 + $0x9c8] sm:$0xff] }
 0x4a7   : > { %3158 = vmatpush.msra.mxu0 %v2669_v24  ;;  %3182 = vmatpush.msra.mxu3 %v2789_v46  ;;  %v2989_v46 = vld [vmem:[#allocation19 + $0xc90] sm:$0xf]  ;;  %v2840_v10 = vld [vmem:[#allocation19 + $0x7e8] sm:$0xff] }
 0x4a8   : > { %3124 = vmatpush.msra.mxu1 %v2768_v53  ;;  %v2890_v53 = vld [vmem:[#allocation19 + $0x978] sm:$0xff] }
 0x4a9   : > { %3159 = vmatpush.msra.mxu0 %v2659_v29  ;;  %3183 = vmatpush.msra.mxu3 %v2779_v52  ;;  %v2730_v52 = vld [vmem:[#allocation19 + $0x478] sm:$0xff] }
 0x4aa   : > { %3125 = vmatpush.msra.mxu1 %v2758_v56  ;;  %v2880_v56 = vld [vmem:[#allocation19 + $0x928] sm:$0xff] }
 0x4ab   : > { %3160 = vmatpush.msra.mxu0 %v2649_v33  ;;  %3184 = vmatpush.msra.mxu3 %v2769_v41  ;;  %v2720_v41 = vld [vmem:[#allocation19 + $0x428] sm:$0xff] }
 0x4ac   : > { %3126 = vmatpush.msra.mxu1 %v2748_v61  ;;  %v2960_v61 = vld [vmem:[#allocation19 + $0xba8] sm:$0xff] }
 0x4ad   : > { %3161 = vmatpush.msra.mxu0 %v2639_v37  ;;  %3185 = vmatpush.msra.mxu3 %v2759_v60  ;;  %v2870_v60 = vld [vmem:[#allocation19 + $0x8d8] sm:$0xff] }
 0x4af   : > { %3162 = vmatpush.msra.mxu0 %v2629_v26  ;;  %3186 = vmatpush.msra.mxu3 %v2749_v3  ;;  %v2950_v3 = vld [vmem:[#allocation19 + $0xb58] sm:$0xff] }
 0x4b1   : > { %3163 = vmatpush.msra.mxu0 %v2619_v51  ;;  %v2979_v51 = vld [vmem:[#allocation19 + $0xc40] sm:$0xff] }
 0x4b3   : > { %3164 = vmatpush.msra.mxu0 %v2609_v55  ;;  %v2969_v55 = vld [vmem:[#allocation19 + $0xbf0] sm:$0xff] }
 0x4b5   : > { %3165 = vmatpush.msra.mxu0 %v2599_v58  ;;  %v2959_v58 = vld [vmem:[#allocation19 + $0xba0] sm:$0xff] }
 0x4b7   : > { %3166 = vmatpush.msra.mxu0 %v2589_v2  ;;  %v2860_v2 = vld [vmem:[#allocation19 + $0x888] sm:$0xff] }
 0x4c1   : > { %v7947_v48 = vpop.f32.mrf.mxu2 }
 0x4c9   : > { %v7949_v0 = vpop.f32.mrf.mxu2  ;;  %v7951_v1 = vpop.f32.mrf.mxu3 }
 0x4ca   : > { %v1916_v8 = vadd.f32 %v7953_v18, %v7949_v0 }
 0x4cd   : > { %v2074_v40 = vpop.f32.mrf.mxu1 }
 0x4d1   : > { %v7955_v19 = vpop.f32.mrf.mxu2  ;;  %v7959_v21 = vpop.f32.mrf.mxu3 }
 0x4d2   : > { %v1896_v6 = vadd.f32 %v7955_v19, %v7947_v48 }
 0x4d4   : > { %v2026_v12 = vadd.f32 %v7951_v1, %v1896_v6  ;;  %v2579_v1 = vpop.permute.xlu0 %2578  ;;  %v2850_v6 = vld [vmem:[#allocation19 + $0x838] sm:$0xff] }
 0x4d6   : > { %v2117_v15 = vadd.f32 %v2074_v40, %v2026_v12  ;;  %v2919_v12 = vld [vmem:[#allocation19 + $0xa60] sm:$0xff] }
 0x4d9   : > { %v2003_v39 = vpop.f32.mrf.mxu2  ;;  %v2205_v47 = vpop.f32.mrf.mxu3 }
 0x4da   : > { %v2027_v13 = vadd.f32 %v2003_v39, %v1916_v8  ;;  %v2929_v8 = vld [vmem:[#allocation19 + $0xab0] sm:$0xff] }
 0x4dc   : > { %v2118_v16 = vadd.f32 %v7959_v21, %v2027_v13  ;;  %v2670_v13 = vld [vmem:[#allocation19 + $0x298] sm:$0xff] }
 0x4e1   : > { %v2114_v59 = vpop.f32.mrf.mxu2  ;;  %v2165_v4 = vpop.f32.mrf.mxu0 }
 0x4e2   : > { %v2185_v63 = vpop.f32.mrf.mxu1  ;;  %v2347_v5 = vpop.f32.mrf.mxu3  ;;  %v2119_v22 = vadd.f32 %v2114_v59, %v2028_v14  ;;  %v2208_v48 = vadd.f32 %v2165_v4, %v2117_v15  ;;  %v2710_v59 = vld [vmem:[#allocation19 + $0x3d8] sm:$0xff]  ;;  %v2939_v4 = vld [vmem:[#allocation19 + $0xb00] sm:$0xff]  ;;  %v2920_v15 = vld [vmem:[#allocation19 + $0xa68] sm:$0xff] }
 0x4e3   : > { %v2209_v19 = vadd.f32 %v2185_v63, %v2118_v16  ;;  %v2700_v63 = vld [vmem:[#allocation19 + $0x388] sm:$0xff]  ;;  %v2830_v14 = vld [vmem:[#allocation19 + $0x798] sm:$0xff]  ;;  %v2909_v16 = vld [vmem:[#allocation19 + $0xa10] sm:$0xff] }
 0x4e4   : > { %v2210_v27 = vadd.f32 %v2205_v47, %v2119_v22  ;;  %v2740_v47 = vld [vmem:[#allocation19 + $0x4c8] sm:$0xff] }
 0x4e5   : > { %v2820_v22 = vld [vmem:[#allocation19 + $0x748] sm:$0xff] }
 0x4e9   : > { %v2256_v7 = vpop.f32.mrf.mxu2 }
 0x4ea   : > { %v2296_v9 = vpop.f32.mrf.mxu1  ;;  %v2458_v17 = vpop.f32.mrf.mxu3  ;;  %v2299_v0 = vadd.f32 %v2256_v7, %v2208_v48  ;;  %v2940_v7 = vld [vmem:[#allocation19 + $0xb08] sm:$0xff]  ;;  %v2741_v48 = vld [vmem:[#allocation19 + $0x4d0] sm:$0xff] }
 0x4eb   : > { %v2276_v11 = vpop.f32.mrf.mxu0  ;;  %v2301_v44 = vadd.f32 %v2296_v9, %v2210_v27  ;;  %v2680_v9 = vld [vmem:[#allocation19 + $0x2e8] sm:$0xff] }
 0x4ec   : > { %v2300_v18 = vadd.f32 %v2276_v11, %v2209_v19  ;;  %v2390_v20 = vadd.f32 %v2347_v5, %v2299_v0  ;;  %v2690_v5 = vld [vmem:[#allocation19 + $0x338] sm:$0xff]  ;;  %v2991_v19 = vld [vmem:[#allocation19 + $0xca0] sm:$0xf]  ;;  %v2640_v27 = vld [vmem:[#allocation19 + $0x1a8] sm:$0xff] }
 0x4ed   : > { %v2930_v11 = vld [vmem:[#allocation19 + $0xab8] sm:$0xff]  ;;  %v2731_v0 = vld [vmem:[#allocation19 + $0x480] sm:$0xff] }
 0x4f1   : > { %v2367_v23 = vpop.f32.mrf.mxu2 }
 0x4f2   : > { %v2391_v28 = vadd.f32 %v2367_v23, %v2300_v18  ;;  %v2569_v33 = vpop.f32.mrf.mxu3  ;;  %v2910_v23 = vld [vmem:[#allocation19 + $0xa18] sm:$0xff]  ;;  %v2981_v18 = vld [vmem:[#allocation19 + $0xc50] sm:$0xff] }
 0x4f3   : > { %v2387_v24 = vpop.f32.mrf.mxu0  ;;  %v2438_v25 = vpop.f32.mrf.mxu1 }
 0x4f4   : > { %v2392_v29 = vadd.f32 %v2387_v24, %v2301_v44  ;;  %v2481_v30 = vadd.f32 %v2438_v25, %v2390_v20  ;;  %v2482_v31 = vadd.f32 %v2458_v17, %v2391_v28  ;;  %v2660_v17 = vld [vmem:[#allocation19 + $0x248] sm:$0xff]  ;;  %v2650_v24 = vld [vmem:[#allocation19 + $0x1f8] sm:$0xff]  ;;  %v2721_v44 = vld [vmem:[#allocation19 + $0x430] sm:$0xff] }
 0x4f5   : > { %v2810_v25 = vld [vmem:[#allocation19 + $0x6f8] sm:$0xff]  ;;  %v2800_v28 = vld [vmem:[#allocation19 + $0x6a8] sm:$0xff]  ;;  %v2971_v20 = vld [vmem:[#allocation19 + $0xc00] sm:$0xff] }
 0x4fa   : > { %v2478_v32 = vpop.f32.mrf.mxu2 }
 0x4fb   : > { %v2483_v21 = vadd.f32 %v2478_v32, %v2392_v29  ;;  %v2529_v34 = vpop.f32.mrf.mxu0  ;;  %v2549_v35 = vpop.f32.mrf.mxu1  ;;  %v2630_v29 = vld [vmem:[#allocation19 + $0x158] sm:$0xff]  ;;  %v2620_v32 = vld [vmem:[#allocation19 + $0x108] sm:$0xff] }
 0x4fc   : > { %v2572_v36 = vadd.f32 %v2529_v34, %v2481_v30  ;;  %v2573_v37 = vadd.f32 %v2549_v35, %v2482_v31  ;;  %v2711_v30 = vld [vmem:[#allocation19 + $0x3e0] sm:$0xff]  ;;  %v2961_v31 = vld [vmem:[#allocation19 + $0xbb0] sm:$0xff]  ;;  %v2610_v35 = vld [vmem:[#allocation19 + $0xb8] sm:$0xff] }
 0x4fd   : > { %v2574_v38 = vadd.f32 %v2569_v33, %v2483_v21  ;;  %v2780_v33 = vld [vmem:[#allocation19 + $0x608] sm:$0xff]  ;;  %v2701_v21 = vld [vmem:[#allocation19 + $0x390] sm:$0xff]  ;;  %v2951_v34 = vld [vmem:[#allocation19 + $0xb60] sm:$0xff] }
 0x4fe   : > { %v2581_v39 = vadd.f32 %v2579_v1, %v2572_v36  ;;  %v2582_v40 = vadd.f32 %v2579_v1, %v2573_v37  ;;  %v2770_v36 = vld [vmem:[#allocation19 + $0x5b8] sm:$0xff]  ;;  %v2691_v37 = vld [vmem:[#allocation19 + $0x340] sm:$0xff] }
 0x4ff   : > { %v2583_v42 = vadd.f32 %v2579_v1, %v2574_v38  ;;  %v2790_v1 = vld [vmem:[#allocation19 + $0x658] sm:$0xff]  ;;  %v2941_v38 = vld [vmem:[#allocation19 + $0xb10] sm:$0xff] }
 0x500   : > { %v7970_v43 = vmax.f32 %v2581_v39, 0.0  ;;  %v7972_v26 = vmax.f32 %v2582_v40, 0.0  ;;  %v2600_v39 = vld [vmem:[#allocation19 + $0x68] sm:$0xff] }
 0x501   : > { %v7974_v45 = vmax.f32 %v2583_v42, 0.0  ;;  %v2760_v40 = vld [vmem:[#allocation19 + $0x568] sm:$0xff]  ;;  %v2681_v42 = vld [vmem:[#allocation19 + $0x2f0] sm:$0xff] }
 0x502   : > { %3047 = vmatmul.f32.vlgmr.msra.gmra.mxu2 %v7970_v43  ;;  %3067 = vmatmul.f32.vlgmr.msrb.gmra.mxu0 %v7972_v26 }
 0x503   : > { %6378 = vmatmul.msk.f32.vlgmr.msrb.gmra.mxu1 %vm2997_vm12, %v7974_v45  ;;  %3107 = vmatmul.f32.vlgmr.msrb.gmra.mxu3 %v7970_v43 }
 0x504   : > { %6381 = vmatpush.msk.msra.mxu2 %vm1688_vm1, %v2989_v46  ;;  %3211 = vmatpush.msrb.mxu1 %v2740_v47  ;;  %v2931_v46 = vld [vmem:[#allocation19 + $0xac0] sm:$0xff]  ;;  %v2590_v47 = vld [vmem:[#allocation19 + $0x18] sm:$0xff] }
 0x505   : > { %3231 = vmatpush.msrb.mxu0 %v2900_v49  ;;  %6383 = vmatpush.msk.msrb.mxu3 %vm1688_vm1, %v2990_v50  ;;  %v2750_v49 = vld [vmem:[#allocation19 + $0x518] sm:$0xff]  ;;  %v2671_v50 = vld [vmem:[#allocation19 + $0x2a0] sm:$0xff] }
 0x506   : > { %3199 = vmatpush.msra.mxu2 %v2979_v51  ;;  %3212 = vmatpush.msrb.mxu1 %v2730_v52  ;;  %v2901_v51 = vld [vmem:[#allocation19 + $0x9d0] sm:$0xff] }
 0x507   : > { %3232 = vmatpush.msrb.mxu0 %v2890_v53  ;;  %3259 = vmatpush.msrb.mxu3 %v2980_v54  ;;  %v2921_v52 = vld [vmem:[#allocation19 + $0xa70] sm:$0xff]  ;;  %v2742_v53 = vld [vmem:[#allocation19 + $0x4d8] sm:$0xff] }
 0x508   : > { %3200 = vmatpush.msra.mxu2 %v2969_v55  ;;  %3213 = vmatpush.msrb.mxu1 %v2720_v41  ;;  %v2661_v54 = vld [vmem:[#allocation19 + $0x250] sm:$0xff]  ;;  %v2891_v55 = vld [vmem:[#allocation19 + $0x980] sm:$0xff] }
 0x509   : > { %3233 = vmatpush.msrb.mxu0 %v2880_v56  ;;  %3260 = vmatpush.msrb.mxu3 %v2970_v57  ;;  %v2911_v41 = vld [vmem:[#allocation19 + $0xa20] sm:$0xff]  ;;  %v2732_v56 = vld [vmem:[#allocation19 + $0x488] sm:$0xff] }
 0x50a   : > { %3201 = vmatpush.msra.mxu2 %v2959_v58  ;;  %3214 = vmatpush.msrb.mxu1 %v2710_v59  ;;  %v2651_v57 = vld [vmem:[#allocation19 + $0x200] sm:$0xff]  ;;  %v2992_v58 = vld [vmem:[#allocation19 + $0xca8] sm:$0xf]  ;;  %v2881_v59 = vld [vmem:[#allocation19 + $0x930] sm:$0xff] }
 0x50b   : > { %3234 = vmatpush.msrb.mxu0 %v2870_v60  ;;  %3261 = vmatpush.msrb.mxu3 %v2960_v61  ;;  %v2722_v60 = vld [vmem:[#allocation19 + $0x438] sm:$0xff]  ;;  %v2641_v61 = vld [vmem:[#allocation19 + $0x1b0] sm:$0xff] }
 0x50c   : > { %3127 = vmatmul.f32.vlgmr.msra.gmra.mxu1 %v7972_v26  ;;  %6380 = vmatmul.msk.f32.vlgmr.msrb.gmra.mxu2 %vm2997_vm12, %v7974_v45 }
 0x50d   : > { %3167 = vmatmul.f32.vlgmr.msra.gmra.mxu0 %v7970_v43  ;;  %3187 = vmatmul.f32.vlgmr.msra.gmra.mxu3 %v7972_v26 }
 0x50e   : > { %3202 = vmatpush.msra.mxu2 %v2949_v62  ;;  %3215 = vmatpush.msrb.mxu1 %v2700_v63  ;;  %v2982_v62 = vld [vmem:[#allocation19 + $0xc58] sm:$0xff]  ;;  %v2871_v63 = vld [vmem:[#allocation19 + $0x8e0] sm:$0xff] }
 0x50f   : > { %3235 = vmatpush.msrb.mxu0 %v2860_v2  ;;  %3262 = vmatpush.msrb.mxu3 %v2950_v3  ;;  %v2712_v2 = vld [vmem:[#allocation19 + $0x3e8] sm:$0xff]  ;;  %v2631_v3 = vld [vmem:[#allocation19 + $0x160] sm:$0xff] }
 0x510   : > { %3203 = vmatpush.msra.mxu2 %v2939_v4  ;;  %3216 = vmatpush.msrb.mxu1 %v2690_v5  ;;  %v2972_v4 = vld [vmem:[#allocation19 + $0xc08] sm:$0xff]  ;;  %v2861_v5 = vld [vmem:[#allocation19 + $0x890] sm:$0xff] }
 0x511   : > { %3236 = vmatpush.msrb.mxu0 %v2850_v6  ;;  %3263 = vmatpush.msrb.mxu3 %v2940_v7  ;;  %v2702_v6 = vld [vmem:[#allocation19 + $0x398] sm:$0xff]  ;;  %v2621_v7 = vld [vmem:[#allocation19 + $0x110] sm:$0xff] }
 0x512   : > { %3204 = vmatpush.msra.mxu2 %v2929_v8  ;;  %3217 = vmatpush.msrb.mxu1 %v2680_v9  ;;  %v2962_v8 = vld [vmem:[#allocation19 + $0xbb8] sm:$0xff]  ;;  %v2851_v9 = vld [vmem:[#allocation19 + $0x840] sm:$0xff] }
 0x513   : > { %3237 = vmatpush.msrb.mxu0 %v2840_v10  ;;  %3264 = vmatpush.msrb.mxu3 %v2930_v11  ;;  %v2692_v10 = vld [vmem:[#allocation19 + $0x348] sm:$0xff]  ;;  %v2611_v11 = vld [vmem:[#allocation19 + $0xc0] sm:$0xff] }
 0x514   : > { %3205 = vmatpush.msra.mxu2 %v2919_v12  ;;  %3218 = vmatpush.msrb.mxu1 %v2670_v13  ;;  %v2952_v12 = vld [vmem:[#allocation19 + $0xb68] sm:$0xff]  ;;  %v2841_v13 = vld [vmem:[#allocation19 + $0x7f0] sm:$0xff] }
 0x515   : > { %3238 = vmatpush.msrb.mxu0 %v2830_v14  ;;  %3265 = vmatpush.msrb.mxu3 %v2920_v15  ;;  %v2682_v14 = vld [vmem:[#allocation19 + $0x2f8] sm:$0xff]  ;;  %v2601_v15 = vld [vmem:[#allocation19 + $0x70] sm:$0xff] }
 0x516   : > { %3206 = vmatpush.msra.mxu2 %v2909_v16  ;;  %3219 = vmatpush.msrb.mxu1 %v2660_v17  ;;  %v2942_v16 = vld [vmem:[#allocation19 + $0xb18] sm:$0xff]  ;;  %v2831_v17 = vld [vmem:[#allocation19 + $0x7a0] sm:$0xff] }
 0x517   : > { %3239 = vmatpush.msrb.mxu0 %v2820_v22  ;;  %3266 = vmatpush.msrb.mxu3 %v2910_v23  ;;  %v2672_v22 = vld [vmem:[#allocation19 + $0x2a8] sm:$0xff]  ;;  %v2591_v23 = vld [vmem:[#allocation19 + $0x20] sm:$0xff] }
 0x518   : > { %6382 = vmatmul.msk.f32.vlgmr.msra.gmra.mxu2 %vm2997_vm12, %v7974_v45  ;;  %6384 = vmatmul.msk.f32.vlgmr.msrb.gmra.mxu3 %vm2997_vm12, %v7974_v45 }
 0x519   : > { %3271 = vmatpush.msrb.mxu2 %v2741_v48  ;;  %6385 = vmatpush.msk.msra.mxu3 %vm1688_vm1, %v2991_v19  ;;  %v2932_v48 = vld [vmem:[#allocation19 + $0xac8] sm:$0xff]  ;;  %v2821_v19 = vld [vmem:[#allocation19 + $0x750] sm:$0xff] }
 0x51a   : > { %3220 = vmatpush.msrb.mxu1 %v2650_v24  ;;  %3240 = vmatpush.msrb.mxu0 %v2810_v25  ;;  %v2662_v24 = vld [vmem:[#allocation19 + $0x258] sm:$0xff] }
 0x51b   : > { %3272 = vmatpush.msrb.mxu2 %v2731_v0  ;;  %3319 = vmatpush.msra.mxu3 %v2981_v18  ;;  %v2902_v25 = vld [vmem:[#allocation19 + $0x9d8] sm:$0xff]  ;;  %v2811_v18 = vld [vmem:[#allocation19 + $0x700] sm:$0xff] }
 0x51c   : > { %3221 = vmatpush.msrb.mxu1 %v2640_v27  ;;  %3241 = vmatpush.msrb.mxu0 %v2800_v28  ;;  %v2922_v0 = vld [vmem:[#allocation19 + $0xa78] sm:$0xff]  ;;  %v2652_v27 = vld [vmem:[#allocation19 + $0x208] sm:$0xff] }
 0x51d   : > { %3273 = vmatpush.msrb.mxu2 %v2721_v44  ;;  %3320 = vmatpush.msra.mxu3 %v2971_v20  ;;  %v2892_v28 = vld [vmem:[#allocation19 + $0x988] sm:$0xff]  ;;  %v2801_v20 = vld [vmem:[#allocation19 + $0x6b0] sm:$0xff] }
 0x51e   : > { %3222 = vmatpush.msrb.mxu1 %v2630_v29  ;;  %3242 = vmatpush.msrb.mxu0 %v2790_v1  ;;  %v2912_v44 = vld [vmem:[#allocation19 + $0xa28] sm:$0xff]  ;;  %v2642_v29 = vld [vmem:[#allocation19 + $0x1b8] sm:$0xff] }
 0x51f   : > { %3274 = vmatpush.msrb.mxu2 %v2711_v30  ;;  %3321 = vmatpush.msra.mxu3 %v2961_v31  ;;  %v2882_v1 = vld [vmem:[#allocation19 + $0x938] sm:$0xff]  ;;  %v2903_v30 = vld [vmem:[#allocation19 + $0x9e0] sm:$0xff] }
 0x520   : > { %3223 = vmatpush.msrb.mxu1 %v2620_v32  ;;  %3243 = vmatpush.msrb.mxu0 %v2780_v33  ;;  %v2791_v31 = vld [vmem:[#allocation19 + $0x660] sm:$0xff]  ;;  %v2632_v32 = vld [vmem:[#allocation19 + $0x168] sm:$0xff] }
 0x521   : > { %3275 = vmatpush.msrb.mxu2 %v2701_v21  ;;  %3322 = vmatpush.msra.mxu3 %v2951_v34  ;;  %v2872_v33 = vld [vmem:[#allocation19 + $0x8e8] sm:$0xff]  ;;  %v2893_v21 = vld [vmem:[#allocation19 + $0x990] sm:$0xff] }
 0x522   : > { %3224 = vmatpush.msrb.mxu1 %v2610_v35  ;;  %3244 = vmatpush.msrb.mxu0 %v2770_v36  ;;  %v2781_v34 = vld [vmem:[#allocation19 + $0x610] sm:$0xff]  ;;  %v2622_v35 = vld [vmem:[#allocation19 + $0x118] sm:$0xff] }
 0x523   : > { %3276 = vmatpush.msrb.mxu2 %v2691_v37  ;;  %3323 = vmatpush.msra.mxu3 %v2941_v38  ;;  %v2862_v36 = vld [vmem:[#allocation19 + $0x898] sm:$0xff]  ;;  %v2883_v37 = vld [vmem:[#allocation19 + $0x940] sm:$0xff] }
 0x524   : > { %3225 = vmatpush.msrb.mxu1 %v2600_v39  ;;  %3245 = vmatpush.msrb.mxu0 %v2760_v40  ;;  %v2771_v38 = vld [vmem:[#allocation19 + $0x5c0] sm:$0xff]  ;;  %v2612_v39 = vld [vmem:[#allocation19 + $0xc8] sm:$0xff] }
 0x525   : > { %3277 = vmatpush.msrb.mxu2 %v2681_v42  ;;  %3324 = vmatpush.msra.mxu3 %v2931_v46  ;;  %v2852_v40 = vld [vmem:[#allocation19 + $0x848] sm:$0xff]  ;;  %v2873_v42 = vld [vmem:[#allocation19 + $0x8f0] sm:$0xff] }
 0x526   : > { %3226 = vmatpush.msrb.mxu1 %v2590_v47  ;;  %3246 = vmatpush.msrb.mxu0 %v2750_v49  ;;  %v2761_v46 = vld [vmem:[#allocation19 + $0x570] sm:$0xff]  ;;  %v2602_v47 = vld [vmem:[#allocation19 + $0x78] sm:$0xff] }
 0x527   : > { %3227 = vmatmul.f32.vlgmr.msrb.gmra.mxu1 %v7970_v43  ;;  %3247 = vmatmul.f32.vlgmr.msrb.gmra.mxu0 %v7972_v26  ;;  %v2842_v49 = vld [vmem:[#allocation19 + $0x7f8] sm:$0xff] }
 0x528   : > { %3278 = vmatpush.msrb.mxu2 %v2671_v50  ;;  %3291 = vmatpush.msra.mxu1 %v2901_v51  ;;  %v2863_v50 = vld [vmem:[#allocation19 + $0x8a0] sm:$0xff] }
 0x529   : > { %3325 = vmatpush.msra.mxu3 %v2921_v52  ;;  %3331 = vmatpush.msra.mxu0 %v2742_v53  ;;  %v2751_v51 = vld [vmem:[#allocation19 + $0x520] sm:$0xff]  ;;  %v2592_v52 = vld [vmem:[#allocation19 + $0x28] sm:$0xff]  ;;  %v2853_v53 = vld [vmem:[#allocation19 + $0x850] sm:$0xff] }
 0x52a   : > { %3279 = vmatpush.msrb.mxu2 %v2661_v54  ;;  %3292 = vmatpush.msra.mxu1 %v2891_v55  ;;  %v2832_v54 = vld [vmem:[#allocation19 + $0x7a8] sm:$0xff]  ;;  %v2743_v55 = vld [vmem:[#allocation19 + $0x4e0] sm:$0xff] }
 0x52b   : > { %3326 = vmatpush.msra.mxu3 %v2911_v41  ;;  %3332 = vmatpush.msra.mxu0 %v2732_v56  ;;  %v2993_v41 = vld [vmem:[#allocation19 + $0xcb0] sm:$0xf]  ;;  %v2843_v56 = vld [vmem:[#allocation19 + $0x800] sm:$0xff] }
 0x52c   : > { %6386 = vmatmul.msk.f32.vlgmr.msra.gmra.mxu3 %vm2997_vm12, %v7974_v45  ;;  %3280 = vmatpush.msrb.mxu2 %v2651_v57  ;;  %v2822_v57 = vld [vmem:[#allocation19 + $0x758] sm:$0xff] }
 0x52d   : > { %6387 = vmatpush.msk.msrb.mxu3 %vm1688_vm1, %v2992_v58  ;;  %3293 = vmatpush.msra.mxu1 %v2881_v59  ;;  %v2733_v58 = vld [vmem:[#allocation19 + $0x490] sm:$0xff]  ;;  %v2983_v59 = vld [vmem:[#allocation19 + $0xc60] sm:$0xff] }
 0x52e   : > { %3333 = vmatpush.msra.mxu0 %v2722_v60  ;;  %3281 = vmatpush.msrb.mxu2 %v2641_v61  ;;  %v2833_v60 = vld [vmem:[#allocation19 + $0x7b0] sm:$0xff]  ;;  %v2812_v61 = vld [vmem:[#allocation19 + $0x708] sm:$0xff] }
 0x52f   : > { %3379 = vmatpush.msrb.mxu3 %v2982_v62  ;;  %3294 = vmatpush.msra.mxu1 %v2871_v63  ;;  %v2723_v62 = vld [vmem:[#allocation19 + $0x440] sm:$0xff]  ;;  %v2973_v63 = vld [vmem:[#allocation19 + $0xc10] sm:$0xff] }
 0x530   : > { %3334 = vmatpush.msra.mxu0 %v2712_v2  ;;  %3282 = vmatpush.msrb.mxu2 %v2631_v3  ;;  %v2823_v2 = vld [vmem:[#allocation19 + $0x760] sm:$0xff]  ;;  %v2802_v3 = vld [vmem:[#allocation19 + $0x6b8] sm:$0xff] }
 0x531   : > { %3380 = vmatpush.msrb.mxu3 %v2972_v4  ;;  %3295 = vmatpush.msra.mxu1 %v2861_v5  ;;  %v2713_v4 = vld [vmem:[#allocation19 + $0x3f0] sm:$0xff]  ;;  %v2963_v5 = vld [vmem:[#allocation19 + $0xbc0] sm:$0xff] }
 0x532   : > { %3335 = vmatpush.msra.mxu0 %v2702_v6  ;;  %3283 = vmatpush.msrb.mxu2 %v2621_v7  ;;  %v2813_v6 = vld [vmem:[#allocation19 + $0x710] sm:$0xff]  ;;  %v2792_v7 = vld [vmem:[#allocation19 + $0x668] sm:$0xff] }
 0x533   : > { %3381 = vmatpush.msrb.mxu3 %v2962_v8  ;;  %3296 = vmatpush.msra.mxu1 %v2851_v9  ;;  %v2703_v8 = vld [vmem:[#allocation19 + $0x3a0] sm:$0xff]  ;;  %v2953_v9 = vld [vmem:[#allocation19 + $0xb70] sm:$0xff] }
 0x534   : > { %3336 = vmatpush.msra.mxu0 %v2692_v10  ;;  %3284 = vmatpush.msrb.mxu2 %v2611_v11  ;;  %v2803_v10 = vld [vmem:[#allocation19 + $0x6c0] sm:$0xff]  ;;  %v2782_v11 = vld [vmem:[#allocation19 + $0x618] sm:$0xff] }
 0x535   : > { %3382 = vmatpush.msrb.mxu3 %v2952_v12  ;;  %3297 = vmatpush.msra.mxu1 %v2841_v13  ;;  %v2693_v12 = vld [vmem:[#allocation19 + $0x350] sm:$0xff]  ;;  %v2943_v13 = vld [vmem:[#allocation19 + $0xb20] sm:$0xff] }
 0x536   : > { %3337 = vmatpush.msra.mxu0 %v2682_v14  ;;  %3285 = vmatpush.msrb.mxu2 %v2601_v15  ;;  %v2793_v14 = vld [vmem:[#allocation19 + $0x670] sm:$0xff]  ;;  %v2772_v15 = vld [vmem:[#allocation19 + $0x5c8] sm:$0xff] }
 0x537   : > { %3383 = vmatpush.msrb.mxu3 %v2942_v16  ;;  %3298 = vmatpush.msra.mxu1 %v2831_v17  ;;  %v2683_v16 = vld [vmem:[#allocation19 + $0x300] sm:$0xff]  ;;  %v2933_v17 = vld [vmem:[#allocation19 + $0xad0] sm:$0xff] }
 0x538   : > { %3338 = vmatpush.msra.mxu0 %v2672_v22  ;;  %3286 = vmatpush.msrb.mxu2 %v2591_v23  ;;  %v2783_v22 = vld [vmem:[#allocation19 + $0x620] sm:$0xff]  ;;  %v2762_v23 = vld [vmem:[#allocation19 + $0x578] sm:$0xff] }
 0x539   : > { %3384 = vmatpush.msrb.mxu3 %v2932_v48  ;;  %3299 = vmatpush.msra.mxu1 %v2821_v19  ;;  %v2673_v48 = vld [vmem:[#allocation19 + $0x2b0] sm:$0xff]  ;;  %v2923_v19 = vld [vmem:[#allocation19 + $0xa80] sm:$0xff] }
 0x53a   : > { %3339 = vmatpush.msra.mxu0 %v2662_v24  ;;  %3287 = vmatmul.f32.vlgmr.msrb.gmra.mxu2 %v7970_v43  ;;  %v2773_v24 = vld [vmem:[#allocation19 + $0x5d0] sm:$0xff] }
 0x53b   : > { %3351 = vmatpush.msra.mxu2 %v2902_v25  ;;  %3385 = vmatpush.msrb.mxu3 %v2922_v0  ;;  %v2752_v25 = vld [vmem:[#allocation19 + $0x528] sm:$0xff]  ;;  %v2663_v0 = vld [vmem:[#allocation19 + $0x260] sm:$0xff] }
 0x53c   : > { %3300 = vmatpush.msra.mxu1 %v2811_v18  ;;  %3340 = vmatpush.msra.mxu0 %v2652_v27  ;;  %v2913_v18 = vld [vmem:[#allocation19 + $0xa30] sm:$0xff]  ;;  %v2763_v27 = vld [vmem:[#allocation19 + $0x580] sm:$0xff] }
 0x53d   : > { %3352 = vmatpush.msra.mxu2 %v2892_v28  ;;  %3386 = vmatpush.msrb.mxu3 %v2912_v44  ;;  %v2744_v28 = vld [vmem:[#allocation19 + $0x4e8] sm:$0xff] }
 0x53e   : > { %3301 = vmatpush.msra.mxu1 %v2801_v20  ;;  %3341 = vmatpush.msra.mxu0 %v2642_v29  ;;  %v2904_v44 = vld [vmem:[#allocation19 + $0x9e8] sm:$0xff]  ;;  %v2653_v20 = vld [vmem:[#allocation19 + $0x210] sm:$0xff] }
 0x53f   : > { %6388 = vmatmul.msk.f32.vlgmr.msrb.gmra.mxu3 %vm2997_vm12, %v7974_v45  ;;  %3353 = vmatpush.msra.mxu2 %v2882_v1  ;;  %v2753_v29 = vld [vmem:[#allocation19 + $0x530] sm:$0xff]  ;;  %v2734_v1 = vld [vmem:[#allocation19 + $0x498] sm:$0xff] }
 0x540   : > { %3411 = vmatpush.msra.mxu3 %v2903_v30  ;;  %3302 = vmatpush.msra.mxu1 %v2791_v31  ;;  %v2894_v30 = vld [vmem:[#allocation19 + $0x998] sm:$0xff]  ;;  %v2643_v31 = vld [vmem:[#allocation19 + $0x1c0] sm:$0xff] }
 0x541   : > { %3342 = vmatpush.msra.mxu0 %v2632_v32  ;;  %3354 = vmatpush.msra.mxu2 %v2872_v33  ;;  %v2745_v32 = vld [vmem:[#allocation19 + $0x4f0] sm:$0xff]  ;;  %v2724_v33 = vld [vmem:[#allocation19 + $0x448] sm:$0xff] }
 0x542   : > { %3412 = vmatpush.msra.mxu3 %v2893_v21  ;;  %3303 = vmatpush.msra.mxu1 %v2781_v34  ;;  %v2884_v21 = vld [vmem:[#allocation19 + $0x948] sm:$0xff]  ;;  %v2633_v34 = vld [vmem:[#allocation19 + $0x170] sm:$0xff] }
 0x543   : > { %3343 = vmatpush.msra.mxu0 %v2622_v35  ;;  %3355 = vmatpush.msra.mxu2 %v2862_v36  ;;  %v2735_v35 = vld [vmem:[#allocation19 + $0x4a0] sm:$0xff]  ;;  %v2714_v36 = vld [vmem:[#allocation19 + $0x3f8] sm:$0xff] }
 0x544   : > { %3413 = vmatpush.msra.mxu3 %v2883_v37  ;;  %3304 = vmatpush.msra.mxu1 %v2771_v38  ;;  %v2874_v37 = vld [vmem:[#allocation19 + $0x8f8] sm:$0xff]  ;;  %v2623_v38 = vld [vmem:[#allocation19 + $0x120] sm:$0xff] }
 0x545   : > { %3344 = vmatpush.msra.mxu0 %v2612_v39  ;;  %3356 = vmatpush.msra.mxu2 %v2852_v40  ;;  %v2725_v39 = vld [vmem:[#allocation19 + $0x450] sm:$0xff]  ;;  %v2704_v40 = vld [vmem:[#allocation19 + $0x3a8] sm:$0xff] }
 0x546   : > { %3414 = vmatpush.msra.mxu3 %v2873_v42  ;;  %3305 = vmatpush.msra.mxu1 %v2761_v46  ;;  %v2864_v42 = vld [vmem:[#allocation19 + $0x8a8] sm:$0xff]  ;;  %v2613_v46 = vld [vmem:[#allocation19 + $0xd0] sm:$0xff] }
 0x547   : > { %3345 = vmatpush.msra.mxu0 %v2602_v47  ;;  %3357 = vmatpush.msra.mxu2 %v2842_v49  ;;  %v2715_v47 = vld [vmem:[#allocation19 + $0x400] sm:$0xff]  ;;  %v2694_v49 = vld [vmem:[#allocation19 + $0x358] sm:$0xff] }
 0x548   : > { %3415 = vmatpush.msra.mxu3 %v2863_v50  ;;  %3306 = vmatpush.msra.mxu1 %v2751_v51  ;;  %v2854_v50 = vld [vmem:[#allocation19 + $0x858] sm:$0xff]  ;;  %v2603_v51 = vld [vmem:[#allocation19 + $0x80] sm:$0xff] }
 0x549   : > { %3346 = vmatpush.msra.mxu0 %v2592_v52  ;;  %3307 = vmatmul.f32.vlgmr.msra.gmra.mxu1 %v7972_v26  ;;  %v2705_v52 = vld [vmem:[#allocation19 + $0x3b0] sm:$0xff] }
 0x54a   : > { %3416 = vmatpush.msra.mxu3 %v2853_v53  ;;  %3347 = vmatmul.f32.vlgmr.msra.gmra.mxu0 %v7970_v43  ;;  %v2684_v53 = vld [vmem:[#allocation19 + $0x308] sm:$0xff] }
 0x54b   : > { %3358 = vmatpush.msra.mxu2 %v2832_v54  ;;  %3391 = vmatpush.msrb.mxu1 %v2743_v55  ;;  %v2844_v54 = vld [vmem:[#allocation19 + $0x808] sm:$0xff]  ;;  %v2593_v55 = vld [vmem:[#allocation19 + $0x30] sm:$0xff] }
 0x54c   : > { %6389 = vmatpush.msk.msrb.mxu0 %vm1688_vm1, %v2993_v41  ;;  %3417 = vmatpush.msra.mxu3 %v2843_v56  ;;  %v2695_v41 = vld [vmem:[#allocation19 + $0x360] sm:$0xff]  ;;  %v2674_v56 = vld [vmem:[#allocation19 + $0x2b8] sm:$0xff] }
 0x54d   : > { %3359 = vmatpush.msra.mxu2 %v2822_v57  ;;  %3392 = vmatpush.msrb.mxu1 %v2733_v58  ;;  %v2834_v57 = vld [vmem:[#allocation19 + $0x7b8] sm:$0xff] }
 0x54e   : > { %3439 = vmatpush.msrb.mxu0 %v2983_v59  ;;  %3418 = vmatpush.msra.mxu3 %v2833_v60  ;;  %v2994_v58 = vld [vmem:[#allocation19 + $0xcb8] sm:$0xf]  ;;  %v2685_v59 = vld [vmem:[#allocation19 + $0x310] sm:$0xff]  ;;  %v2664_v60 = vld [vmem:[#allocation19 + $0x268] sm:$0xff] }
 0x54f   : > { %3360 = vmatpush.msra.mxu2 %v2812_v61  ;;  %3393 = vmatpush.msrb.mxu1 %v2723_v62  ;;  %v2824_v61 = vld [vmem:[#allocation19 + $0x768] sm:$0xff] }
 0x550   : > { %3440 = vmatpush.msrb.mxu0 %v2973_v63  ;;  %3419 = vmatpush.msra.mxu3 %v2823_v2  ;;  %v2984_v62 = vld [vmem:[#allocation19 + $0xc68] sm:$0xff]  ;;  %v2675_v63 = vld [vmem:[#allocation19 + $0x2c0] sm:$0xff]  ;;  %v2654_v2 = vld [vmem:[#allocation19 + $0x218] sm:$0xff] }
 0x551   : > { %3361 = vmatpush.msra.mxu2 %v2802_v3  ;;  %3394 = vmatpush.msrb.mxu1 %v2713_v4  ;;  %v2814_v3 = vld [vmem:[#allocation19 + $0x718] sm:$0xff] }
 0x552   : > { %3441 = vmatpush.msrb.mxu0 %v2963_v5  ;;  %3420 = vmatpush.msra.mxu3 %v2813_v6  ;;  %v2974_v4 = vld [vmem:[#allocation19 + $0xc18] sm:$0xff]  ;;  %v2665_v5 = vld [vmem:[#allocation19 + $0x270] sm:$0xff]  ;;  %v2644_v6 = vld [vmem:[#allocation19 + $0x1c8] sm:$0xff] }
 0x553   : > { %3362 = vmatpush.msra.mxu2 %v2792_v7  ;;  %3395 = vmatpush.msrb.mxu1 %v2703_v8  ;;  %v2804_v7 = vld [vmem:[#allocation19 + $0x6c8] sm:$0xff] }
 0x554   : > { %3442 = vmatpush.msrb.mxu0 %v2953_v9  ;;  %3421 = vmatpush.msra.mxu3 %v2803_v10  ;;  %v2964_v8 = vld [vmem:[#allocation19 + $0xbc8] sm:$0xff]  ;;  %v2655_v9 = vld [vmem:[#allocation19 + $0x220] sm:$0xff]  ;;  %v2634_v10 = vld [vmem:[#allocation19 + $0x178] sm:$0xff] }
 0x555   : > { %3363 = vmatpush.msra.mxu2 %v2782_v11  ;;  %3396 = vmatpush.msrb.mxu1 %v2693_v12  ;;  %v2794_v11 = vld [vmem:[#allocation19 + $0x678] sm:$0xff] }
 0x556   : > { %3443 = vmatpush.msrb.mxu0 %v2943_v13  ;;  %3422 = vmatpush.msra.mxu3 %v2793_v14  ;;  %v2954_v12 = vld [vmem:[#allocation19 + $0xb78] sm:$0xff]  ;;  %v2645_v13 = vld [vmem:[#allocation19 + $0x1d0] sm:$0xff]  ;;  %v2624_v14 = vld [vmem:[#allocation19 + $0x128] sm:$0xff] }
 0x557   : > { %3364 = vmatpush.msra.mxu2 %v2772_v15  ;;  %3397 = vmatpush.msrb.mxu1 %v2683_v16  ;;  %v2784_v15 = vld [vmem:[#allocation19 + $0x628] sm:$0xff] }
 0x558   : > { %3444 = vmatpush.msrb.mxu0 %v2933_v17  ;;  %3423 = vmatpush.msra.mxu3 %v2783_v22  ;;  %v2944_v16 = vld [vmem:[#allocation19 + $0xb28] sm:$0xff]  ;;  %v2635_v17 = vld [vmem:[#allocation19 + $0x180] sm:$0xff]  ;;  %v2614_v22 = vld [vmem:[#allocation19 + $0xd8] sm:$0xff] }
 0x559   : > { %3365 = vmatpush.msra.mxu2 %v2762_v23  ;;  %3398 = vmatpush.msrb.mxu1 %v2673_v48  ;;  %v2774_v23 = vld [vmem:[#allocation19 + $0x5d8] sm:$0xff] }
 0x55a   : > { %3445 = vmatpush.msrb.mxu0 %v2923_v19  ;;  %3424 = vmatpush.msra.mxu3 %v2773_v24  ;;  %v2934_v48 = vld [vmem:[#allocation19 + $0xad8] sm:$0xff]  ;;  %v2625_v19 = vld [vmem:[#allocation19 + $0x130] sm:$0xff]  ;;  %v2604_v24 = vld [vmem:[#allocation19 + $0x88] sm:$0xff] }
 0x55b   : > { %3366 = vmatpush.msra.mxu2 %v2752_v25  ;;  %3399 = vmatpush.msrb.mxu1 %v2663_v0  ;;  %v2764_v25 = vld [vmem:[#allocation19 + $0x588] sm:$0xff] }
 0x55c   : > { %3446 = vmatpush.msrb.mxu0 %v2913_v18  ;;  %3367 = vmatmul.f32.vlgmr.msra.gmra.mxu2 %v7972_v26  ;;  %v2924_v0 = vld [vmem:[#allocation19 + $0xa88] sm:$0xff]  ;;  %v2615_v18 = vld [vmem:[#allocation19 + $0xe0] sm:$0xff] }
 0x55d   : > { %3425 = vmatpush.msra.mxu3 %v2763_v27  ;;  %6390 = vmatmul.msk.f32.vlgmr.msrb.gmra.mxu0 %vm2997_vm12, %v7974_v45  ;;  %v2594_v27 = vld [vmem:[#allocation19 + $0x38] sm:$0xff] }
 0x55e   : > { %3451 = vmatpush.msrb.mxu2 %v2744_v28  ;;  %3471 = vmatpush.msra.mxu0 %v2904_v44  ;;  %v2754_v28 = vld [vmem:[#allocation19 + $0x538] sm:$0xff] }
 0x55f   : > { %3400 = vmatpush.msrb.mxu1 %v2653_v20  ;;  %3426 = vmatpush.msra.mxu3 %v2753_v29  ;;  %v2914_v44 = vld [vmem:[#allocation19 + $0xa38] sm:$0xff]  ;;  %v2605_v20 = vld [vmem:[#allocation19 + $0x90] sm:$0xff] }
 0x560   : > { %3452 = vmatpush.msrb.mxu2 %v2734_v1  ;;  %3472 = vmatpush.msra.mxu0 %v2894_v30  ;;  %v2905_v29 = vld [vmem:[#allocation19 + $0x9f0] sm:$0xff]  ;;  %v2995_v1 = vld [vmem:[#allocation19 + $0xcc0] sm:$0xf]  ;;  %v2746_v30 = vld [vmem:[#allocation19 + $0x4f8] sm:$0xff] }
 0x561   : > { %3401 = vmatpush.msrb.mxu1 %v2643_v31  ;;  %3427 = vmatmul.f32.vlgmr.msra.gmra.mxu3 %v7972_v26  ;;  %v2595_v31 = vld [vmem:[#allocation19 + $0x40] sm:$0xff] }
 0x562   : > { %3511 = vmatpush.msrb.mxu3 %v2745_v32  ;;  %3453 = vmatpush.msrb.mxu2 %v2724_v33  ;;  %v2895_v32 = vld [vmem:[#allocation19 + $0x9a0] sm:$0xff]  ;;  %v2985_v33 = vld [vmem:[#allocation19 + $0xc70] sm:$0xff] }
 0x563   : > { %3473 = vmatpush.msra.mxu0 %v2884_v21  ;;  %3402 = vmatpush.msrb.mxu1 %v2633_v34  ;;  %v2736_v21 = vld [vmem:[#allocation19 + $0x4a8] sm:$0xff]  ;;  %v2885_v34 = vld [vmem:[#allocation19 + $0x950] sm:$0xff] }
 0x564   : > { %3512 = vmatpush.msrb.mxu3 %v2735_v35  ;;  %3454 = vmatpush.msrb.mxu2 %v2714_v36  ;;  %v2996_v35 = vld [vmem:[#allocation19 + $0xcc8] sm:$0xf]  ;;  %v2975_v36 = vld [vmem:[#allocation19 + $0xc20] sm:$0xff] }
 0x565   : > { %3474 = vmatpush.msra.mxu0 %v2874_v37  ;;  %3403 = vmatpush.msrb.mxu1 %v2623_v38  ;;  %v2726_v38 = vld [vmem:[#allocation19 + $0x458] sm:$0xff] }
 0x566   : > { %3513 = vmatpush.msrb.mxu3 %v2725_v39  ;;  %3455 = vmatpush.msrb.mxu2 %v2704_v40  ;;  %v2875_v39 = vld [vmem:[#allocation19 + $0x900] sm:$0xff]  ;;  %v2986_v40 = vld [vmem:[#allocation19 + $0xc78] sm:$0xff] }
 0x567   : > { %3475 = vmatpush.msra.mxu0 %v2864_v42  ;;  %3404 = vmatpush.msrb.mxu1 %v2613_v46  ;;  %v2965_v42 = vld [vmem:[#allocation19 + $0xbd0] sm:$0xff]  ;;  %v2716_v46 = vld [vmem:[#allocation19 + $0x408] sm:$0xff] }
 0x568   : > { %3514 = vmatpush.msrb.mxu3 %v2715_v47  ;;  %3456 = vmatpush.msrb.mxu2 %v2694_v49  ;;  %v2865_v47 = vld [vmem:[#allocation19 + $0x8b0] sm:$0xff] }
 0x569   : > { %3476 = vmatpush.msra.mxu0 %v2854_v50  ;;  %3405 = vmatpush.msrb.mxu1 %v2603_v51  ;;  %v2976_v50 = vld [vmem:[#allocation19 + $0xc28] sm:$0xff]  ;;  %v2955_v51 = vld [vmem:[#allocation19 + $0xb80] sm:$0xff] }
 0x56a   : > { %3515 = vmatpush.msrb.mxu3 %v2705_v52  ;;  %3457 = vmatpush.msrb.mxu2 %v2684_v53  ;;  %v2706_v52 = vld [vmem:[#allocation19 + $0x3b8] sm:$0xff]  ;;  %v2855_v53 = vld [vmem:[#allocation19 + $0x860] sm:$0xff] }
 0x56b   : > { %3477 = vmatpush.msra.mxu0 %v2844_v54  ;;  %3406 = vmatpush.msrb.mxu1 %v2593_v55  ;;  %v2966_v54 = vld [vmem:[#allocation19 + $0xbd8] sm:$0xff]  ;;  %v2945_v55 = vld [vmem:[#allocation19 + $0xb30] sm:$0xff] }
 0x56c   : > { %3516 = vmatpush.msrb.mxu3 %v2695_v41  ;;  %3407 = vmatmul.f32.vlgmr.msrb.gmra.mxu1 %v7970_v43  ;;  %v2696_v41 = vld [vmem:[#allocation19 + $0x368] sm:$0xff] }
 0x56d   : > { %3458 = vmatpush.msrb.mxu2 %v2674_v56  ;;  %3478 = vmatpush.msra.mxu0 %v2834_v57  ;;  %v2845_v56 = vld [vmem:[#allocation19 + $0x810] sm:$0xff]  ;;  %v2956_v57 = vld [vmem:[#allocation19 + $0xb88] sm:$0xff] }
 0x56e   : > { %6391 = vmatpush.msk.msra.mxu1 %vm1688_vm1, %v2994_v58  ;;  %3517 = vmatpush.msrb.mxu3 %v2685_v59  ;;  %v2935_v58 = vld [vmem:[#allocation19 + $0xae0] sm:$0xff]  ;;  %v2686_v59 = vld [vmem:[#allocation19 + $0x318] sm:$0xff] }
 0x56f   : > { %3459 = vmatpush.msrb.mxu2 %v2664_v60  ;;  %3479 = vmatpush.msra.mxu0 %v2824_v61  ;;  %v2835_v60 = vld [vmem:[#allocation19 + $0x7c0] sm:$0xff]  ;;  %v2946_v61 = vld [vmem:[#allocation19 + $0xb38] sm:$0xff] }
 0x570   : > { %3499 = vmatpush.msra.mxu1 %v2984_v62  ;;  %3518 = vmatpush.msrb.mxu3 %v2675_v63  ;;  %v2925_v62 = vld [vmem:[#allocation19 + $0xa90] sm:$0xff] }
 0x571   : > { %3460 = vmatpush.msrb.mxu2 %v2654_v2  ;;  %3480 = vmatpush.msra.mxu0 %v2814_v3  ;;  %v2676_v2 = vld [vmem:[#allocation19 + $0x2c8] sm:$0xff]  ;;  %v2825_v3 = vld [vmem:[#allocation19 + $0x770] sm:$0xff] }
 0x572   : > { %3500 = vmatpush.msra.mxu1 %v2974_v4  ;;  %3519 = vmatpush.msrb.mxu3 %v2665_v5  ;;  %v2936_v5 = vld [vmem:[#allocation19 + $0xae8] sm:$0xff] }
 0x573   : > { %3461 = vmatpush.msrb.mxu2 %v2644_v6  ;;  %3481 = vmatpush.msra.mxu0 %v2804_v7  ;;  %v2915_v6 = vld [vmem:[#allocation19 + $0xa40] sm:$0xff] }
 0x574   : > { %3501 = vmatpush.msra.mxu1 %v2964_v8  ;;  %3520 = vmatpush.msrb.mxu3 %v2655_v9  ;;  %v2666_v8 = vld [vmem:[#allocation19 + $0x278] sm:$0xff] }
 0x575   : > { %3462 = vmatpush.msrb.mxu2 %v2634_v10  ;;  %3482 = vmatpush.msra.mxu0 %v2794_v11 }
 0x576   : > { %3502 = vmatpush.msra.mxu1 %v2954_v12  ;;  %3521 = vmatpush.msrb.mxu3 %v2645_v13  ;;  %v2906_v12 = vld [vmem:[#allocation19 + $0x9f8] sm:$0xff] }
 0x577   : > { %3463 = vmatpush.msrb.mxu2 %v2624_v14  ;;  %3483 = vmatpush.msra.mxu0 %v2784_v15  ;;  %v2926_v13 = vld [vmem:[#allocation19 + $0xa98] sm:$0xff]  ;;  %v2815_v14 = vld [vmem:[#allocation19 + $0x720] sm:$0xff]  ;;  %v2656_v15 = vld [vmem:[#allocation19 + $0x228] sm:$0xff] }
 0x578   : > { %3503 = vmatpush.msra.mxu1 %v2944_v16  ;;  %3522 = vmatpush.msrb.mxu3 %v2635_v17  ;;  %v2896_v17 = vld [vmem:[#allocation19 + $0x9a8] sm:$0xff] }
 0x579   : > { %3464 = vmatpush.msrb.mxu2 %v2614_v22  ;;  %3484 = vmatpush.msra.mxu0 %v2774_v23  ;;  %v2916_v22 = vld [vmem:[#allocation19 + $0xa48] sm:$0xff]  ;;  %v2805_v23 = vld [vmem:[#allocation19 + $0x6d0] sm:$0xff] }
 0x57a   : > { %3504 = vmatpush.msra.mxu1 %v2934_v48  ;;  %3523 = vmatpush.msrb.mxu3 %v2625_v19  ;;  %v2646_v48 = vld [vmem:[#allocation19 + $0x1d8] sm:$0xff] }
 0x57b   : > { %3465 = vmatpush.msrb.mxu2 %v2604_v24  ;;  %3485 = vmatpush.msra.mxu0 %v2764_v25  ;;  %v2886_v24 = vld [vmem:[#allocation19 + $0x958] sm:$0xff]  ;;  %v2795_v25 = vld [vmem:[#allocation19 + $0x680] sm:$0xff] }
 0x57c   : > { %3505 = vmatpush.msra.mxu1 %v2924_v0  ;;  %3524 = vmatpush.msrb.mxu3 %v2615_v18  ;;  %v2636_v0 = vld [vmem:[#allocation19 + $0x188] sm:$0xff] }
 0x57d   : > { %3466 = vmatpush.msrb.mxu2 %v2594_v27  ;;  %3486 = vmatpush.msra.mxu0 %v2754_v28  ;;  %v2876_v27 = vld [vmem:[#allocation19 + $0x908] sm:$0xff]  ;;  %v2785_v28 = vld [vmem:[#allocation19 + $0x630] sm:$0xff] }
 0x57e   : > { %3506 = vmatpush.msra.mxu1 %v2914_v44  ;;  %3467 = vmatmul.f32.vlgmr.msrb.gmra.mxu2 %v7970_v43  ;;  %v2626_v44 = vld [vmem:[#allocation19 + $0x138] sm:$0xff] }
 0x57f   : > { %3487 = vmatmul.f32.vlgmr.msra.gmra.mxu0 %v7972_v26  ;;  %6392 = vmatmul.msk.f32.vlgmr.msra.gmra.mxu1 %vm2997_vm12, %v7974_v45  ;;  %v3068_v4 = vpop.f32.mrf.mxu0 }
 0x580   : > { %3525 = vmatpush.msrb.mxu3 %v2605_v20  ;;  %3531 = vmatpush.msra.mxu2 %v2905_v29  ;;  %v8015_v37 = vpop.f32.mrf.mxu1  ;;  %v2866_v20 = vld [vmem:[#allocation19 + $0x8b8] sm:$0xff]  ;;  %v2775_v29 = vld [vmem:[#allocation19 + $0x5e0] sm:$0xff] }
 0x581   : > { %6393 = vmatpush.msk.msrb.mxu1 %vm1688_vm1, %v2995_v1  ;;  %3571 = vmatpush.msrb.mxu0 %v2746_v30  ;;  %v2616_v1 = vld [vmem:[#allocation19 + $0xe8] sm:$0xff] }
 0x582   : > { %3526 = vmatpush.msrb.mxu3 %v2595_v31  ;;  %3532 = vmatpush.msra.mxu2 %v2895_v32  ;;  %v2856_v30 = vld [vmem:[#allocation19 + $0x868] sm:$0xff]  ;;  %v2765_v31 = vld [vmem:[#allocation19 + $0x590] sm:$0xff]  ;;  %v2606_v32 = vld [vmem:[#allocation19 + $0x98] sm:$0xff] }
 0x583   : > { %3559 = vmatpush.msrb.mxu1 %v2985_v33  ;;  %3572 = vmatpush.msrb.mxu0 %v2736_v21  ;;  %v2846_v21 = vld [vmem:[#allocation19 + $0x818] sm:$0xff] }
 0x584   : > { %3527 = vmatmul.f32.vlgmr.msrb.gmra.mxu3 %v7970_v43  ;;  %3533 = vmatpush.msra.mxu2 %v2885_v34  ;;  %v2755_v34 = vld [vmem:[#allocation19 + $0x540] sm:$0xff] }
 0x585   : > { %6395 = vmatpush.msk.msra.mxu3 %vm1688_vm1, %v2996_v35  ;;  %3560 = vmatpush.msrb.mxu1 %v2975_v36  ;;  %v3048_v49 = vpop.f32.mrf.mxu2  ;;  %v2596_v35 = vld [vmem:[#allocation19 + $0x48] sm:$0xff] }
 0x586   : > { %3573 = vmatpush.msrb.mxu0 %v2726_v38  ;;  %3534 = vmatpush.msra.mxu2 %v2875_v39  ;;  %v3108_v7 = vpop.f32.mrf.mxu3  ;;  %v3069_v9 = vadd.f32 %v3068_v4, %v3048_v49  ;;  %v2836_v36 = vld [vmem:[#allocation19 + $0x7c8] sm:$0xff] }
 0x587   : > { %3619 = vmatpush.msra.mxu3 %v2986_v40  ;;  %3561 = vmatpush.msrb.mxu1 %v2965_v42  ;;  %v2816_v38 = vld [vmem:[#allocation19 + $0x728] sm:$0xff] }
 0x588   : > { %3574 = vmatpush.msrb.mxu0 %v2716_v46  ;;  %3535 = vmatpush.msra.mxu2 %v2865_v47  ;;  %v8024_v19 = vadd.f32 %v8015_v37, %v3069_v9  ;;  %v2826_v37 = vld [vmem:[#allocation19 + $0x778] sm:$0xff] }
 0x589   : > { %3620 = vmatpush.msra.mxu3 %v2976_v50  ;;  %3562 = vmatpush.msrb.mxu1 %v2955_v51  ;;  %v3128_v63 = vpop.f32.mrf.mxu1  ;;  %v2806_v47 = vld [vmem:[#allocation19 + $0x6d8] sm:$0xff] }
 0x58a   : > { %3575 = vmatpush.msrb.mxu0 %v2706_v52  ;;  %3536 = vmatpush.msra.mxu2 %v2855_v53  ;;  %v3129_v10 = vadd.f32 %v3128_v63, %v3108_v7  ;;  %v3168_v33 = vpop.f32.mrf.mxu0  ;;  %v2796_v52 = vld [vmem:[#allocation19 + $0x688] sm:$0xff] }
 0x58b   : > { %3621 = vmatpush.msra.mxu3 %v2966_v54  ;;  %3563 = vmatpush.msrb.mxu1 %v2945_v55  ;;  %v2786_v54 = vld [vmem:[#allocation19 + $0x638] sm:$0xff]  ;;  %v2776_v55 = vld [vmem:[#allocation19 + $0x5e8] sm:$0xff] }
 0x58c   : > { %3576 = vmatpush.msrb.mxu0 %v2696_v41  ;;  %3537 = vmatpush.msra.mxu2 %v2845_v56  ;;  %v2766_v41 = vld [vmem:[#allocation19 + $0x598] sm:$0xff]  ;;  %v2756_v56 = vld [vmem:[#allocation19 + $0x548] sm:$0xff] }
 0x58d   : > { %3622 = vmatpush.msra.mxu3 %v2956_v57  ;;  %3564 = vmatpush.msrb.mxu1 %v2935_v58 }
 0x58e   : > { %3577 = vmatpush.msrb.mxu0 %v2686_v59  ;;  %3538 = vmatpush.msra.mxu2 %v2835_v60 }
 0x58f   : > { %3623 = vmatpush.msra.mxu3 %v2946_v61  ;;  %3565 = vmatpush.msrb.mxu1 %v2925_v62  ;;  %v3148_v11 = vpop.f32.mrf.mxu2 }
 0x590   : > { %3578 = vmatpush.msrb.mxu0 %v2676_v2  ;;  %3539 = vmatpush.msra.mxu2 %v2825_v3  ;;  %v8019_v16 = vadd.f32 %v3148_v11, %v3129_v10 }
 0x591   : > { %3624 = vmatpush.msra.mxu3 %v2936_v5  ;;  %3566 = vmatpush.msrb.mxu1 %v2915_v6 }
 0x592   : > { %3579 = vmatpush.msrb.mxu0 %v2666_v8  ;;  %6394 = vmatmul.msk.f32.vlgmr.msrb.gmra.mxu1 %vm2997_vm12, %v7974_v45  ;;  %v6860_v18 = vpack.i.bf16 %v8019_v16, %v8024_v19 }
 0x593   : > { %3591 = vmatpush.msra.mxu1 %v2906_v12  ;;  %3625 = vmatpush.msra.mxu3 %v2926_v13 }
 0x594   : > { %3540 = vmatpush.msra.mxu2 %v2815_v14  ;;  %3580 = vmatpush.msrb.mxu0 %v2656_v15 }
 0x595   : > { %3592 = vmatpush.msra.mxu1 %v2896_v17  ;;  %3626 = vmatpush.msra.mxu3 %v2916_v22 }
 0x596   : > { %3541 = vmatpush.msra.mxu2 %v2805_v23  ;;  %3581 = vmatpush.msrb.mxu0 %v2646_v48 }
 0x597   : > { %6396 = vmatmul.msk.f32.vlgmr.msra.gmra.mxu3 %vm2997_vm12, %v7974_v45  ;;  %3593 = vmatpush.msra.mxu1 %v2886_v24  ;;  %v3188_v45 = vpop.f32.mrf.mxu3 }
 0x598   : > { %3542 = vmatpush.msra.mxu2 %v2795_v25  ;;  %3582 = vmatpush.msrb.mxu0 %v2636_v0  ;;  %v3189_v46 = vadd.f32 %v3188_v45, %v3168_v33 }
 0x599   : > { %3594 = vmatpush.msra.mxu1 %v2876_v27  ;;  %6861 = vrot.lane.b32.xlu1 %v6860_v18, %s7437_s14 }
 0x59a   : > { %3543 = vmatpush.msra.mxu2 %v2785_v28  ;;  %3583 = vmatpush.msrb.mxu0 %v2626_v44 }
 0x59b   : > { %3595 = vmatpush.msra.mxu1 %v2866_v20  ;;  %v3208_v39 = vpop.f32.mrf.mxu2 }
 0x59c   : > { %3544 = vmatpush.msra.mxu2 %v2775_v29  ;;  %3584 = vmatpush.msrb.mxu0 %v2616_v1  ;;  %v8033_v51 = vadd.f32 %v3208_v39, %v3189_v46 }
 0x59d   : > { %3596 = vmatpush.msra.mxu1 %v2856_v30 }
 0x59e   : > { %3545 = vmatpush.msra.mxu2 %v2765_v31  ;;  %3585 = vmatpush.msrb.mxu0 %v2606_v32 }
 0x59f   : > { %3597 = vmatpush.msra.mxu1 %v2846_v21  ;;  %v3268_v50 = vpop.f32.mrf.mxu3 }
 0x5a0   : > { %3546 = vmatpush.msra.mxu2 %v2755_v34  ;;  %3586 = vmatpush.msrb.mxu0 %v2596_v35 }
 0x5a1   : > { %3547 = vmatmul.f32.vlgmr.msra.gmra.mxu2 %v7972_v26  ;;  %3587 = vmatmul.f32.vlgmr.msrb.gmra.mxu0 %v7970_v43 }
 0x5a2   : > { %3598 = vmatpush.msra.mxu1 %v2836_v36 }
 0x5a4   : > { %3599 = vmatpush.msra.mxu1 %v2826_v37  ;;  %v3228_v40 = vpop.f32.mrf.mxu1  ;;  %v3248_v42 = vpop.f32.mrf.mxu0  ;;  %v8108_v37 = vld [vmem:[%s8939_s16 + $0x1] sm:$0x1] }
 0x5a5   : > { %v3249_v49 = vadd.f32 %v3248_v42, %v3228_v40 }
 0x5a6   : > { %3600 = vmatpush.msra.mxu1 %v2816_v38 }
 0x5a7   : > { %v8035_v53 = vadd.f32 %v3268_v50, %v3249_v49 }
 0x5a8   : > { %3601 = vmatpush.msra.mxu1 %v2806_v47 }
 0x5a9   : > { %v6865_v43 = vpack.i.bf16 %v8035_v53, %v8033_v51 }
 0x5aa   : > { %3602 = vmatpush.msra.mxu1 %v2796_v52 }
 0x5ab   : > { %6866 = vrot.lane.b32.xlu2 %v6865_v43, %s7437_s14 }
 0x5ac   : > { %3603 = vmatpush.msra.mxu1 %v2786_v54 }
 0x5ae   : > { %3604 = vmatpush.msra.mxu1 %v2776_v55 }
 0x5af   : > { %v3328_v58 = vpop.f32.mrf.mxu3 }
 0x5b0   : > { %3605 = vmatpush.msra.mxu1 %v2766_v41 }
 0x5b2   : > { %3606 = vmatpush.msra.mxu1 %v2756_v56  ;;  %v8158_v56 = vld [vmem:[%s8939_s16] sm:$0x1] }
 0x5b3   : > { %3607 = vmatmul.f32.vlgmr.msra.gmra.mxu1 %v7972_v26  ;;  %v8050_v26 = vpack.i.bf16 %v8033_v51, %v8019_v16 }
 0x5bd   : > { %v3288_v57 = vpop.f32.mrf.mxu2 }
 0x5c2   : > { %v3388_v2 = vpop.f32.mrf.mxu3 }
 0x5c6   : > { %v3308_v59 = vpop.f32.mrf.mxu1 }
 0x5c7   : > { %v3309_v60 = vadd.f32 %v3308_v59, %v3288_v57  ;;  %v3348_v61 = vpop.f32.mrf.mxu0 }
 0x5c9   : > { %v8041_v3 = vadd.f32 %v3328_v58, %v3309_v60 }
 0x5cb   : > { %v8068_v18 = vpack.i.bf16 %v8041_v3, %v8035_v53 }
 0x5da   : > { %v3448_v6 = vpop.f32.mrf.mxu0 }
 0x5df   : > { %v3368_v62 = vpop.f32.mrf.mxu2 }
 0x5e0   : > { %v3369_v63 = vadd.f32 %v3368_v62, %v3348_v61 }
 0x5e2   : > { %v8043_v4 = vadd.f32 %v3388_v2, %v3369_v63  ;;  %v5893_v63 = vld [vmem:[#allocation5] sm:$0x1] }
 0x5e4   : > { %v6870_v5 = vpack.i.bf16 %v8043_v4, %v8041_v3  ;;  %v3428_v8 = vpop.f32.mrf.mxu3  ;;  %v8093_v36 = vpack.i.bf16 %v8043_v4, %v8024_v19 }
 0x5e6   : > { %6871 = vrot.lane.b32.xlu1 %v6870_v5, %s7437_s14  ;;  %v8201_v5 = vld [vmem:[%s8939_s16 + $0x2] sm:$0x1] }
 0x5e9   : > { %v3408_v7 = vpop.f32.mrf.mxu1 }
 0x5ea   : > { %v3429_v9 = vadd.f32 %v3428_v8, %v3408_v7 }
 0x5ec   : > { %v8054_v14 = vadd.f32 %v3448_v6, %v3429_v9 }
 0x5ee   : > { %6886 = vrot.lane.b32.xlu1 %v8050_v26, %s7439_s24 }
 0x5fc   : > { %v3488_v10 = vpop.f32.mrf.mxu0  ;;  %v3508_v13 = vpop.f32.mrf.mxu1 }
 0x601   : > { %v3468_v11 = vpop.f32.mrf.mxu2 }
 0x602   : > { %v3489_v12 = vadd.f32 %v3488_v10, %v3468_v11 }
 0x604   : > { %v8056_v15 = vadd.f32 %v3508_v13, %v3489_v12 }
 0x605   : > { %v6867_v22 = vpop.permute.xlu2 %6866 }
 0x606   : > { %v8060_v17 = vpack.i.bf16 %v8056_v15, %v8054_v14  ;;  %v6869_v48 = vunpack.i.h.bf16 %v6867_v22  ;;  %v6868_v24 = vunpack.i.l.bf16 %v6867_v22 }
 0x607   : > { %v3528_v29 = vpop.f32.mrf.mxu3 }
 0x608   : > { %6876 = vrot.lane.b32.xlu2 %v8060_v17, %s7437_s14  ;;  %6901 = vrot.lane.b32.xlu1 %v8060_v17, %s7439_s24  ;;  %v3686_v44 = vsel %vm1800_vm4, %v6868_v24, %v6869_v48 }
 0x60b   : > { %v6862_v23 = vpop.permute.xlu1 %6861 }
 0x60c   : > { %v6864_v25 = vunpack.i.h.bf16 %v6862_v23  ;;  %v6863_v0 = vunpack.i.l.bf16 %v6862_v23 }
 0x60e   : > { %v3684_v27 = vsel %vm1800_vm4, %v6863_v0, %v6864_v25  ;;  %v3685_v28 = vsel %vm1800_vm4, %v6864_v25, %v6868_v24 }
 0x60f   : > { %3722 = vmatpush.msrb.mxu2 %v3684_v27  ;;  %3742 = vmatpush.msrb.mxu3 %v3685_v28  ;;  %v3568_v20 = vpop.f32.mrf.mxu1  ;;  %v8252_v27 = vld [vmem:[%s8939_s16 + $0x3] sm:$0x1] }
 0x610   : > { %6891 = vrot.lane.b32.xlu2 %v8068_v18, %s7439_s24  ;;  %6916 = vrot.lane.b32.xlu1 %v8068_v18, %s7449_s25 }
 0x611   : > { %3762 = vmatpush.msra.mxu2 %v3686_v44  ;;  %6399 = vmatmul.msk.f32.vlgmr.msrb.gmra.mxu3 %vm3703_vm13, %v8108_v37 }
 0x612   : > { %6398 = vmatmul.msk.f32.vlgmr.msrb.gmra.mxu2 %vm3703_vm13, %v8108_v37 }
 0x61a   : > { %v3628_v45 = vpop.f32.mrf.mxu3  ;;  %6400 = vmatmul.msk.f32.vlgmr.msra.gmra.mxu2 %vm3703_vm13, %v8108_v37 }
 0x61e   : > { %v3588_v31 = vpop.f32.mrf.mxu0 }
 0x624   : > { %v3548_v1 = vpop.f32.mrf.mxu2 }
 0x625   : > { %v3549_v30 = vadd.f32 %v3548_v1, %v3528_v29 }
 0x627   : > { %v8077_v21 = vadd.f32 %v3568_v20, %v3549_v30 }
 0x630   : > { %v3608_v32 = vpop.f32.mrf.mxu1 }
 0x631   : > { %v3609_v33 = vadd.f32 %v3608_v32, %v3588_v31 }
 0x633   : > { %v8079_v34 = vadd.f32 %v3628_v45, %v3609_v33 }
 0x635   : > { %v8083_v35 = vpack.i.bf16 %v8079_v34, %v8077_v21 }
 0x637   : > { %6881 = vrot.lane.b32.xlu0 %v8083_v35, %s7437_s14  ;;  %6906 = vrot.lane.b32.xlu2 %v8083_v35, %s7439_s24 }
 0x638   : > { %6931 = vrot.lane.b32.xlu1 %v8083_v35, %s7449_s25 }
 0x63f   : > { %6921 = vrot.lane.b32.xlu2 %v8093_v36, %s7449_s25  ;;  %6896 = vrot.lane.b32.xlu0 %v8093_v36, %s7439_s24  ;;  %s7451_s24 = smov 60  }
 0x640   : > { %6946 = vrot.lane.b32.xlu1 %v8093_v36, %s7450_s3 }
 0x647   : > { %6936 = vrot.lane.b32.xlu2 %v8050_v26, %s7450_s3  ;;  %6911 = vrot.lane.b32.xlu0 %v8050_v26, %s7449_s25 }
 0x648   : > { %6961 = vrot.lane.b32.xlu1 %v8050_v26, %s7446_s10 }
 0x64f   : > { %6951 = vrot.lane.b32.xlu2 %v8060_v17, %s7450_s3  ;;  %6926 = vrot.lane.b32.xlu0 %v8060_v17, %s7449_s25 }
 0x650   : > { %6976 = vrot.lane.b32.xlu1 %v8060_v17, %s7446_s10 }
 0x657   : > { %6966 = vrot.lane.b32.xlu2 %v8068_v18, %s7446_s10  ;;  %6941 = vrot.lane.b32.xlu0 %v8068_v18, %s7450_s3 }
 0x658   : > { %6991 = vrot.lane.b32.xlu1 %v8068_v18, %s7451_s24  ;;  %v6872_v38 = vpop.permute.xlu1 %6871 }
 0x659   : > { %v6874_v39 = vunpack.i.h.bf16 %v6872_v38  ;;  %v6873_v40 = vunpack.i.l.bf16 %v6872_v38 }
 0x65b   : > { %v3687_v42 = vsel %vm1800_vm4, %v6869_v48, %v6873_v40  ;;  %v3688_v46 = vsel %vm1800_vm4, %v6873_v40, %v6874_v39 }
 0x65c   : > { %3782 = vmatpush.msra.mxu3 %v3687_v42  ;;  %3802 = vmatpush.msra.mxu0 %v3688_v46 }
 0x65d   : > { %6401 = vmatmul.msk.f32.vlgmr.msra.gmra.mxu3 %vm3703_vm13, %v8108_v37  ;;  %6402 = vmatmul.msk.f32.vlgmr.msra.gmra.mxu0 %vm3703_vm13, %v8108_v37 }
 0x65f   : > { %6981 = vrot.lane.b32.xlu2 %v8083_v35, %s7446_s10  ;;  %6956 = vrot.lane.b32.xlu0 %v8083_v35, %s7450_s3 }
 0x660   : > { %7006 = vrot.lane.b32.xlu1 %v8083_v35, %s7451_s24  ;;  %v6887_v57 = vpop.permute.xlu1 %6886 }
 0x661   : > { %v6889_v58 = vunpack.i.h.bf16 %v6887_v57  ;;  %v6888_v12 = vunpack.i.l.bf16 %v6887_v57 }
 0x662   : > { %v6877_v47 = vpop.permute.xlu2 %6876 }
 0x663   : > { %v6879_v49 = vunpack.i.h.bf16 %v6877_v47  ;;  %v6878_v50 = vunpack.i.l.bf16 %v6877_v47 }
 0x665   : > { %v3689_v52 = vsel %vm1800_vm4, %v6874_v39, %v6878_v50  ;;  %v3690_v54 = vsel %vm1800_vm4, %v6878_v50, %v6879_v49 }
 0x666   : > { %3822 = vmatpush.msrb.mxu2 %v3689_v52  ;;  %3842 = vmatpush.msrb.mxu1 %v3690_v54 }
 0x667   : > { %6996 = vrot.lane.b32.xlu2 %v8093_v36, %s7451_s24  ;;  %6971 = vrot.lane.b32.xlu0 %v8093_v36, %s7446_s10 }
 0x668   : > { %7021 = vrot.lane.b32.xlu1 %v8093_v36, %s7452_s23  ;;  %6404 = vmatmul.msk.f32.vlgmr.msrb.gmra.mxu1 %vm3703_vm13, %v8108_v37 }
 0x669   : > { %3925 = vmatpush.msra.mxu1 %v8024_v19  ;;  %6403 = vmatmul.msk.f32.vlgmr.msrb.gmra.mxu2 %vm3703_vm13, %v8108_v37 }
 0x66a   : > { %v8151_v43 = vpop.permute.xlu2 %6891 }
 0x66b   : > { %4005 = vmatpush.msrb.mxu1 %v8041_v3  ;;  %v6894_v55 = vunpack.i.h.bf16 %v8151_v43  ;;  %v6893_v41 = vunpack.i.l.bf16 %v8151_v43  ;;  %v7050_v3 = vpack.i.bf16 %v8077_v21, %v8056_v15 }
 0x66d   : > { %v8163_v19 = vsel %vm1952_vm5, %v6893_v41, %v6894_v55  ;;  %v4134_v59 = vsel %vm1952_vm5, %v6889_v58, %v6893_v41 }
 0x66f   : > { %7011 = vrot.lane.b32.xlu2 %v8050_v26, %s7452_s23  ;;  %6986 = vrot.lane.b32.xlu0 %v8050_v26, %s7451_s24 }
 0x670   : > { %7036 = vrot.lane.b32.xlu1 %v8050_v26, %s7453_s1  ;;  %6408 = vmatmul.msk.f32.vlgmr.msra.gmra.mxu1 %vm3703_vm13, %v8158_v56 }
 0x671   : > { %4085 = vmatpush.msra.mxu1 %v8077_v21 }
 0x677   : > { %7026 = vrot.lane.b32.xlu2 %v8060_v17, %s7452_s23  ;;  %7001 = vrot.lane.b32.xlu0 %v8060_v17, %s7451_s24 }
 0x678   : > { %5652 = vrot.lane.b32.xlu1 %v8054_v14, %s7453_s1  ;;  %6412 = vmatmul.msk.f32.vlgmr.msrb.gmra.mxu1 %vm3703_vm13, %v8158_v56 }
 0x679   : > { %4209 = vmatpush.msrb.mxu1 %v4134_v59 }
 0x67a   : > { %v8181_v60 = vpop.permute.xlu1 %6901 }
 0x67b   : > { %v6904_v61 = vunpack.i.h.bf16 %v8181_v60  ;;  %v6903_v62 = vunpack.i.l.bf16 %v8181_v60 }
 0x67d   : > { %v4138_v2 = vsel %vm1952_vm5, %v6903_v62, %v6904_v61 }
 0x67f   : > { %7041 = vrot.lane.b32.xlu2 %v8068_v18, %s7453_s1  ;;  %7016 = vrot.lane.b32.xlu0 %v8068_v18, %s7452_s23 }
 0x680   : > { %5896 = vperm.xlu1 %6737, %v5893_v63   ;;  %6416 = vmatmul.msk.f32.vlgmr.msra.gmra.mxu1 %vm3703_vm13, %v8158_v56 }
 0x681   : > { %4289 = vmatpush.msra.mxu1 %v4138_v2 }
 0x682   : > { %v8224_v17 = vpop.permute.xlu1 %6916 }
 0x683   : > { %v6919_v28 = vunpack.i.h.bf16 %v8224_v17 }
 0x687   : > { %7051 = vrot.lane.b32.xlu2 %v7050_v3, %s7453_s1  ;;  %7031 = vrot.lane.b32.xlu0 %v8083_v35, %s7452_s23  ;;  %v6918_v35 = vunpack.i.l.bf16 %v8224_v17 }
 0x688   : > { %6421 = vmatmul.msk.f32.vlgmr.msrb.gmra.mxu1 %vm3703_vm13, %v8201_v5 }
 0x689   : > { %v4390_v47 = vsel %vm4386_vm14, %v6918_v35, %v6919_v28 }
 0x68f   : > { %7046 = vrot.lane.b32.xlu0 %v8093_v36, %s7453_s1 }
 0x690   : > { %6425 = vmatmul.msk.f32.vlgmr.msra.gmra.mxu1 %vm3703_vm13, %v8201_v5 }
 0x691   : > { %v8208_v8 = vpop.permute.xlu2 %6906 }
 0x692   : > { %v6909_v31 = vunpack.i.h.bf16 %v8208_v8  ;;  %v6908_v32 = vunpack.i.l.bf16 %v8208_v8 }
 0x694   : > { %v4139_v45 = vsel %vm1952_vm5, %v6904_v61, %v6908_v32  ;;  %v4140_v21 = vsel %vm1952_vm5, %v6908_v32, %v6909_v31 }
 0x697   : > { %5658 = vrot.lane.b32.xlu0 %v8079_v34, %s7453_s1  ;;  %s6507_s1 = smul.u32 10, %s8962_s26 }
 0x699   : > { %v8227_v22 = vpop.permute.xlu2 %6921  ;;  %s8877_s18 = scalar_lea.vmem %s8956_s30, %s6507_s1 }
 0x69a   : > { %v6924_v24 = vunpack.i.h.bf16 %v8227_v22 }
 0x69c   : > { %v4391_v29 = vsel %vm4386_vm14, %v6919_v28, %v6924_v24 }
 0x6a1   : > { %v8260_v20 = vpop.permute.xlu2 %6936 }
 0x6a2   : > { %v6939_v36 = vunpack.i.h.bf16 %v8260_v20  ;;  %v6938_v61 = vunpack.i.l.bf16 %v8260_v20 }
 0x6a9   : > { %v6882_v26 = vpop.permute.xlu0 %6881 }
 0x6aa   : > { %v6884_v6 = vunpack.i.h.bf16 %v6882_v26  ;;  %v6883_v7 = vunpack.i.l.bf16 %v6882_v26  ;;  %v8238_v23 = vpop.permute.xlu1 %6931 }
 0x6ab   : > { %v6934_v25 = vunpack.i.h.bf16 %v8238_v23  ;;  %v6933_v0 = vunpack.i.l.bf16 %v8238_v23 }
 0x6ac   : > { %3902 = vmatpush.msra.mxu2 %v6884_v6  ;;  %v3691_v9 = vsel %vm1800_vm4, %v6879_v49, %v6883_v7  ;;  %v3692_v10 = vsel %vm1800_vm4, %v6883_v7, %v6884_v6  ;;  %v4643_v7 = vsel %vm4641_vm15, %v6938_v61, %v6939_v36 }
 0x6ad   : > { %3862 = vmatpush.msrb.mxu3 %v3691_v9  ;;  %3882 = vmatpush.msrb.mxu0 %v3692_v10  ;;  %v4395_v30 = vsel %vm4386_vm14, %v6933_v0, %v6934_v25 }
 0x6ae   : > { %6407 = vmatmul.msk.f32.vlgmr.msra.gmra.mxu2 %vm3703_vm13, %v8108_v37  ;;  %6405 = vmatmul.msk.f32.vlgmr.msrb.gmra.mxu3 %vm3703_vm13, %v8108_v37 }
 0x6af   : > { %3985 = vmatpush.msrb.mxu2 %v8035_v53  ;;  %6406 = vmatmul.msk.f32.vlgmr.msrb.gmra.mxu0 %vm3703_vm13, %v8108_v37  ;;  %v8291_v37 = vpop.permute.xlu2 %6951 }
 0x6b0   : > { %3945 = vmatpush.msra.mxu3 %v8019_v16  ;;  %3965 = vmatpush.msra.mxu0 %v8033_v51  ;;  %v4133_v16 = vsel %vm1952_vm5, %v6888_v12, %v6889_v58  ;;  %v6954_v42 = vunpack.i.h.bf16 %v8291_v37  ;;  %v6953_v46 = vunpack.i.l.bf16 %v8291_v37  ;;  %v3724_v37 = vpop.f32.mrf.mxu2 }
 0x6b1   : > { %4065 = vmatpush.msra.mxu2 %v8056_v15  ;;  %v6897_v11 = vpop.permute.xlu0 %6896 }
 0x6b2   : > { %4025 = vmatpush.msrb.mxu3 %v8043_v4  ;;  %4045 = vmatpush.msrb.mxu0 %v8054_v14  ;;  %v6898_v13 = vunpack.i.l.bf16 %v6897_v11  ;;  %v6923_v4 = vunpack.i.l.bf16 %v8227_v22  ;;  %v6899_v14 = vunpack.i.h.bf16 %v6897_v11  ;;  %v8277_v33 = vpop.permute.xlu1 %6946  ;;  %v4648_v54 = vsel %vm4641_vm15, %v6953_v46, %v6954_v42 }
 0x6b3   : > { %v6948_v2 = vunpack.i.l.bf16 %v8277_v33  ;;  %v6949_v10 = vunpack.i.h.bf16 %v8277_v33 }
 0x6b4   : > { %v4132_v53 = vsel %vm1952_vm5, %v6898_v13, %v6888_v12  ;;  %v4137_v18 = vsel %vm1952_vm5, %v6899_v14, %v6903_v62  ;;  %v4136_v44 = vsel %vm1952_vm5, %v6894_v55, %v6899_v14 }
 0x6b5   : > { %v4642_v8 = vsel %vm4641_vm15, %v6948_v2, %v6938_v61  ;;  %v4647_v22 = vsel %vm4641_vm15, %v6949_v10, %v6953_v46 }
 0x6b6   : > { %6411 = vmatmul.msk.f32.vlgmr.msrb.gmra.mxu2 %vm3703_vm13, %v8158_v56  ;;  %6409 = vmatmul.msk.f32.vlgmr.msra.gmra.mxu3 %vm3703_vm13, %v8158_v56 }
 0x6b7   : > { %4189 = vmatpush.msrb.mxu2 %v4133_v16  ;;  %6410 = vmatmul.msk.f32.vlgmr.msra.gmra.mxu0 %vm3703_vm13, %v8158_v56  ;;  %v8333_v59 = vpop.permute.xlu2 %6966  ;;  %v8381_v16 = vld [vmem:[%s8939_s16 + $0x5] sm:$0x1] }
 0x6b8   : > { %4105 = vmatpush.msra.mxu3 %v8079_v34  ;;  %4169 = vmatpush.msra.mxu0 %v4132_v53  ;;  %v6969_v6 = vunpack.i.h.bf16 %v8333_v59  ;;  %v6968_v20 = vunpack.i.l.bf16 %v8333_v59 }
 0x6b9   : > { %v6912_v51 = vpop.permute.xlu0 %6911 }
 0x6ba   : > { %v6913_v15 = vunpack.i.l.bf16 %v6912_v51  ;;  %v6914_v39 = vunpack.i.h.bf16 %v6912_v51  ;;  %v8308_v52 = vpop.permute.xlu1 %6961  ;;  %v4899_v33 = vsel %vm2316_vm9, %v6968_v20, %v6969_v6 }
 0x6bb   : > { %v6963_v62 = vunpack.i.l.bf16 %v8308_v52 }
 0x6bc   : > { %v4387_v48 = vsel %vm4386_vm14, %v6923_v4, %v6913_v15  ;;  %v4388_v49 = vsel %vm4386_vm14, %v6913_v15, %v6914_v39  ;;  %v4389_v50 = vsel %vm4386_vm14, %v6914_v39, %v6918_v35 }
 0x6bd   : > { %4424 = vmatpush.msrb.mxu1 %v4387_v48 }
 0x6be   : > { %6415 = vmatmul.msk.f32.vlgmr.msra.gmra.mxu2 %vm3703_vm13, %v8158_v56  ;;  %6413 = vmatmul.msk.f32.vlgmr.msrb.gmra.mxu3 %vm3703_vm13, %v8158_v56 }
 0x6bf   : > { %4269 = vmatpush.msra.mxu2 %v4137_v18  ;;  %6414 = vmatmul.msk.f32.vlgmr.msrb.gmra.mxu0 %vm3703_vm13, %v8158_v56  ;;  %v8366_v11 = vpop.permute.xlu2 %6981 }
 0x6c0   : > { %4229 = vmatpush.msrb.mxu3 %v8163_v19  ;;  %4249 = vmatpush.msrb.mxu0 %v4136_v44  ;;  %v8325_v19 = vld [vmem:[%s8939_s16 + $0x4] sm:$0x1]  ;;  %v6984_v13 = vunpack.i.h.bf16 %v8366_v11  ;;  %v6983_v17 = vunpack.i.l.bf16 %v8366_v11 }
 0x6c1   : > { %6430 = vmatmul.msk.f32.vlgmr.msrb.gmra.mxu1 %vm3703_vm13, %v8252_v27  ;;  %v6927_v1 = vpop.permute.xlu0 %6926 }
 0x6c2   : > { %4504 = vmatpush.msra.mxu1 %v4391_v29  ;;  %v6929_v55 = vunpack.i.h.bf16 %v6927_v1  ;;  %v6928_v41 = vunpack.i.l.bf16 %v6927_v1  ;;  %v8343_v3 = vpop.permute.xlu1 %6976  ;;  %v4904_v15 = vsel %vm2316_vm9, %v6983_v17, %v6984_v13 }
 0x6c3   : > { %v6978_v39 = vunpack.i.l.bf16 %v8343_v3 }
 0x6c4   : > { %4584 = vmatpush.msrb.mxu1 %v4395_v30  ;;  %v4392_v57 = vsel %vm4386_vm14, %v6924_v24, %v6928_v41  ;;  %v4393_v58 = vsel %vm4386_vm14, %v6928_v41, %v6929_v55  ;;  %v6964_v30 = vunpack.i.h.bf16 %v8308_v52 }
 0x6c6   : > { %6420 = vmatmul.msk.f32.vlgmr.msrb.gmra.mxu2 %vm3703_vm13, %v8201_v5  ;;  %6417 = vmatmul.msk.f32.vlgmr.msra.gmra.mxu3 %vm3703_vm13, %v8158_v56  ;;  %v4394_v56 = vsel %vm4386_vm14, %v6929_v55, %v6933_v0 }
 0x6c7   : > { %4349 = vmatpush.msrb.mxu2 %v6909_v31  ;;  %6419 = vmatmul.msk.f32.vlgmr.msra.gmra.mxu0 %vm3703_vm13, %v8201_v5  ;;  %v8412_v44 = vpop.permute.xlu2 %6996 }
 0x6c8   : > { %4309 = vmatpush.msra.mxu3 %v4139_v45  ;;  %4329 = vmatpush.msra.mxu0 %v4140_v21  ;;  %v4897_v45 = vsel %vm2316_vm9, %v6963_v62, %v6964_v30  ;;  %v4898_v21 = vsel %vm2316_vm9, %v6964_v30, %v6968_v20 }
 0x6c9   : > { %6434 = vmatmul.msk.f32.vlgmr.msra.gmra.mxu1 %vm3703_vm13, %v8252_v27  ;;  %v8287_v34 = vpop.permute.xlu0 %6941 }
 0x6ca   : > { %v6943_v38 = vunpack.i.l.bf16 %v8287_v34  ;;  %v6944_v12 = vunpack.i.h.bf16 %v8287_v34  ;;  %v8371_v53 = vpop.permute.xlu1 %6991 }
 0x6cc   : > { %v4644_v40 = vsel %vm4641_vm15, %v6939_v36, %v6943_v38  ;;  %v4645_v51 = vsel %vm4641_vm15, %v6943_v38, %v6944_v12  ;;  %v4646_v4 = vsel %vm4641_vm15, %v6944_v12, %v6949_v10  ;;  %v6979_v36 = vunpack.i.h.bf16 %v8343_v3 }
 0x6cd   : > { %4719 = vmatpush.msra.mxu1 %v4644_v40 }
 0x6ce   : > { %6424 = vmatmul.msk.f32.vlgmr.msra.gmra.mxu2 %vm3703_vm13, %v8201_v5  ;;  %6422 = vmatmul.msk.f32.vlgmr.msrb.gmra.mxu3 %vm3703_vm13, %v8201_v5 }
 0x6cf   : > { %4484 = vmatpush.msra.mxu2 %v4390_v47  ;;  %6423 = vmatmul.msk.f32.vlgmr.msrb.gmra.mxu0 %vm3703_vm13, %v8201_v5  ;;  %v4903_v47 = vsel %vm2316_vm9, %v6979_v36, %v6983_v17 }
 0x6d0   : > { %4444 = vmatpush.msrb.mxu3 %v4388_v49  ;;  %4464 = vmatpush.msrb.mxu0 %v4389_v50  ;;  %v8464_v49 = vld [vmem:[%s8939_s16 + $0x6] sm:$0x1] }
 0x6d1   : > { %6438 = vmatmul.msk.f32.vlgmr.msrb.gmra.mxu1 %vm3703_vm13, %v8252_v27  ;;  %v8315_v43 = vpop.permute.xlu0 %6956 }
 0x6d2   : > { %4799 = vmatpush.msrb.mxu1 %v4648_v54  ;;  %v6959_v23 = vunpack.i.h.bf16 %v8315_v43  ;;  %v6958_v48 = vunpack.i.l.bf16 %v8315_v43  ;;  %v8404_v0 = vpop.permute.xlu1 %7006  ;;  %v4902_v54 = vsel %vm2316_vm9, %v6978_v39, %v6979_v36 }
 0x6d4   : > { %v4649_v18 = vsel %vm4641_vm15, %v6954_v42, %v6958_v48  ;;  %v4650_v28 = vsel %vm4641_vm15, %v6958_v48, %v6959_v23  ;;  %v8453_v42 = vpop.permute.xlu2 %7011 }
 0x6d5   : > { %v7013_v50 = vunpack.i.l.bf16 %v8453_v42  ;;  %v7014_v48 = vunpack.i.h.bf16 %v8453_v42 }
 0x6d6   : > { %6428 = vmatmul.msk.f32.vlgmr.msrb.gmra.mxu2 %vm3703_vm13, %v8201_v5  ;;  %6426 = vmatmul.msk.f32.vlgmr.msra.gmra.mxu3 %vm3703_vm13, %v8201_v5 }
 0x6d7   : > { %4564 = vmatpush.msrb.mxu2 %v4394_v56  ;;  %6427 = vmatmul.msk.f32.vlgmr.msra.gmra.mxu0 %vm3703_vm13, %v8201_v5 }
 0x6d8   : > { %4524 = vmatpush.msra.mxu3 %v4392_v57  ;;  %4544 = vmatpush.msra.mxu0 %v4393_v58  ;;  %v6998_v58 = vunpack.i.l.bf16 %v8412_v44 }
 0x6d9   : > { %6443 = vmatmul.msk.f32.vlgmr.msra.gmra.mxu1 %vm3703_vm13, %v8325_v19  ;;  %v8337_v60 = vpop.permute.xlu0 %6971 }
 0x6da   : > { %v6973_v63 = vunpack.i.l.bf16 %v8337_v60  ;;  %v6974_v5 = vunpack.i.h.bf16 %v8337_v60  ;;  %v8440_v34 = vpop.permute.xlu1 %7021  ;;  %v3804_v56 = vpop.f32.mrf.mxu0 }
 0x6db   : > { %v7023_v46 = vunpack.i.l.bf16 %v8440_v34  ;;  %v7024_v61 = vunpack.i.h.bf16 %v8440_v34 }
 0x6dc   : > { %v4896_v26 = vsel %vm2316_vm9, %v6973_v63, %v6963_v62  ;;  %v4900_v9 = vsel %vm2316_vm9, %v6969_v6, %v6974_v5  ;;  %v4901_v52 = vsel %vm2316_vm9, %v6974_v5, %v6978_v39  ;;  %v8496_v63 = vpop.permute.xlu2 %7026  ;;  %v6994_v5 = vunpack.i.h.bf16 %v8371_v53 }
 0x6dd   : > { %4933 = vmatpush.msra.mxu1 %v4896_v26  ;;  %v5406_v55 = vsel %vm5405_vm2, %v7023_v46, %v7013_v50  ;;  %v6999_v26 = vunpack.i.h.bf16 %v8412_v44 }
 0x6de   : > { %6433 = vmatmul.msk.f32.vlgmr.msra.gmra.mxu2 %vm3703_vm13, %v8252_v27  ;;  %6431 = vmatmul.msk.f32.vlgmr.msrb.gmra.mxu3 %vm3703_vm13, %v8252_v27 }
 0x6df   : > { %4699 = vmatpush.msra.mxu2 %v4643_v7  ;;  %6432 = vmatmul.msk.f32.vlgmr.msrb.gmra.mxu0 %vm3703_vm13, %v8252_v27  ;;  %v5155_v11 = vsel %vm5150_vm0, %v6994_v5, %v6999_v26 }
 0x6e0   : > { %4604 = vmatpush.msrb.mxu3 %v6934_v25  ;;  %4679 = vmatpush.msrb.mxu0 %v4642_v8  ;;  %v6993_v25 = vunpack.i.l.bf16 %v8371_v53  ;;  %v7009_v53 = vunpack.i.h.bf16 %v8404_v0 }
 0x6e1   : > { %6447 = vmatmul.msk.f32.vlgmr.msrb.gmra.mxu1 %vm3703_vm13, %v8325_v19  ;;  %v8389_v14 = vpop.permute.xlu0 %6986 }
 0x6e2   : > { %5013 = vmatpush.msrb.mxu1 %v4900_v9  ;;  %v6989_v24 = vunpack.i.h.bf16 %v8389_v14  ;;  %v6988_v41 = vunpack.i.l.bf16 %v8389_v14  ;;  %v8521_v9 = vld [vmem:[%s8939_s16 + $0x7] sm:$0x1]  ;;  %v5154_v10 = vsel %vm5150_vm0, %v6993_v25, %v6994_v5  ;;  %v8536_v17 = vpop.permute.xlu1 %7036 }
 0x6e3   : > { %v7038_v39 = vunpack.i.l.bf16 %v8536_v17 }
 0x6e4   : > { %v5152_v60 = vsel %vm5150_vm0, %v6988_v41, %v6989_v24  ;;  %v5151_v62 = vsel %vm5150_vm0, %v6998_v58, %v6988_v41 }
 0x6e5   : > { %v8424_v1 = vpop.f32.mrf.mxu1 }
 0x6e6   : > { %6437 = vmatmul.msk.f32.vlgmr.msrb.gmra.mxu2 %vm3703_vm13, %v8252_v27  ;;  %6435 = vmatmul.msk.f32.vlgmr.msra.gmra.mxu3 %vm3703_vm13, %v8252_v27 }
 0x6e7   : > { %4779 = vmatpush.msrb.mxu2 %v4647_v22  ;;  %6436 = vmatmul.msk.f32.vlgmr.msra.gmra.mxu0 %vm3703_vm13, %v8252_v27  ;;  %v7008_v22 = vunpack.i.l.bf16 %v8404_v0  ;;  %v8561_v0 = vpop.f32.mrf.mxu3 }
 0x6e8   : > { %4739 = vmatpush.msra.mxu3 %v4645_v51  ;;  %4759 = vmatpush.msra.mxu0 %v4646_v4  ;;  %v7039_v51 = vunpack.i.h.bf16 %v8536_v17 }
 0x6e9   : > { %6452 = vmatmul.msk.f32.vlgmr.msra.gmra.mxu1 %vm3703_vm13, %v8381_v16  ;;  %v8422_v29 = vpop.permute.xlu0 %7001 }
 0x6ea   : > { %5093 = vmatpush.msra.mxu1 %v4904_v15  ;;  %v7004_v31 = vunpack.i.h.bf16 %v8422_v29  ;;  %v7003_v32 = vunpack.i.l.bf16 %v8422_v29  ;;  %v5159_v15 = vsel %vm5150_vm0, %v7008_v22, %v7009_v53  ;;  %v5662_v34 = vsel %vm5660_vm3, %v7038_v39, %v7039_v51 }
 0x6ec   : > { %v5157_v35 = vsel %vm5150_vm0, %v7003_v32, %v7004_v31  ;;  %v5156_v8 = vsel %vm5150_vm0, %v6999_v26, %v7003_v32  ;;  %v5158_v14 = vsel %vm5150_vm0, %v7004_v31, %v7008_v22  ;;  %v7029_v31 = vunpack.i.h.bf16 %v8496_v63 }
 0x6ed   : > { %v3927_v38 = vpop.f32.mrf.mxu1  ;;  %v7028_v32 = vunpack.i.l.bf16 %v8496_v63 }
 0x6ee   : > { %6442 = vmatmul.msk.f32.vlgmr.msra.gmra.mxu2 %vm3703_vm13, %v8325_v19  ;;  %6439 = vmatmul.msk.f32.vlgmr.msrb.gmra.mxu3 %vm3703_vm13, %v8252_v27  ;;  %v5153_v27 = vsel %vm5150_vm0, %v6989_v24, %v6993_v25  ;;  %v8451_v40 = vadd.f32 %v3927_v38, %v3724_v37  ;;  %v3764_v25 = vpop.f32.mrf.mxu2 }
 0x6ef   : > { %4859 = vmatpush.msra.mxu2 %v6959_v23  ;;  %6441 = vmatmul.msk.f32.vlgmr.msrb.gmra.mxu0 %vm3703_vm13, %v8325_v19  ;;  %v3784_v37 = vpop.f32.mrf.mxu3 }
 0x6f0   : > { %4819 = vmatpush.msrb.mxu3 %v4649_v18  ;;  %4839 = vmatpush.msrb.mxu0 %v4650_v28  ;;  %v5653_v18 = vpop.permute.xlu1 %5652 }
 0x6f1   : > { %6456 = vmatmul.msk.f32.vlgmr.msrb.gmra.mxu1 %vm3703_vm13, %v8381_v16  ;;  %v8473_v43 = vpop.permute.xlu0 %7016 }
 0x6f2   : > { %5228 = vmatpush.msrb.mxu1 %v5153_v27  ;;  %v7019_v59 = vunpack.i.h.bf16 %v8473_v43  ;;  %v7018_v23 = vunpack.i.l.bf16 %v8473_v43  ;;  %v5407_v27 = vsel %vm5405_vm2, %v7013_v50, %v7014_v48 }
 0x6f4   : > { %v5410_v2 = vsel %vm5405_vm2, %v7019_v59, %v7024_v61  ;;  %v5409_v28 = vsel %vm5405_vm2, %v7018_v23, %v7019_v59  ;;  %v5408_v20 = vsel %vm5405_vm2, %v7014_v48, %v7018_v23 }
 0x6f6   : > { %6446 = vmatmul.msk.f32.vlgmr.msrb.gmra.mxu2 %vm3703_vm13, %v8325_v19  ;;  %6444 = vmatmul.msk.f32.vlgmr.msra.gmra.mxu3 %vm3703_vm13, %v8325_v19  ;;  %v3824_v36 = vpop.f32.mrf.mxu2 }
 0x6f7   : > { %4993 = vmatpush.msrb.mxu2 %v4899_v33  ;;  %6445 = vmatmul.msk.f32.vlgmr.msra.gmra.mxu0 %vm3703_vm13, %v8325_v19 }
 0x6f8   : > { %4953 = vmatpush.msra.mxu3 %v4897_v45  ;;  %4973 = vmatpush.msra.mxu0 %v4898_v21  ;;  %v8590_v45 = vld [vmem:[%s8939_s16 + $0x8] sm:$0x1]  ;;  %v5411_v21 = vsel %vm5405_vm2, %v7024_v61, %v7028_v32 }
 0x6f9   : > { %6460 = vmatmul.msk.f32.vlgmr.msra.gmra.mxu1 %vm3703_vm13, %v8381_v16  ;;  %v8505_v3 = vpop.permute.xlu0 %7031 }
 0x6fa   : > { %5308 = vmatpush.msra.mxu1 %v5157_v35  ;;  %v7034_v6 = vunpack.i.h.bf16 %v8505_v3  ;;  %v7033_v7 = vunpack.i.l.bf16 %v8505_v3  ;;  %v5412_v35 = vsel %vm5405_vm2, %v7028_v32, %v7029_v31 }
 0x6fc   : > { %v5414_v12 = vsel %vm5405_vm2, %v7033_v7, %v7034_v6  ;;  %v5413_v33 = vsel %vm5405_vm2, %v7029_v31, %v7033_v7 }
 0x6fe   : > { %6450 = vmatmul.msk.f32.vlgmr.msra.gmra.mxu2 %vm3703_vm13, %v8325_v19  ;;  %6448 = vmatmul.msk.f32.vlgmr.msrb.gmra.mxu3 %vm3703_vm13, %v8325_v19 }
 0x6ff   : > { %5073 = vmatpush.msra.mxu2 %v4903_v47  ;;  %6449 = vmatmul.msk.f32.vlgmr.msrb.gmra.mxu0 %vm3703_vm13, %v8325_v19  ;;  %v4007_v19 = vpop.f32.mrf.mxu1 }
 0x700   : > { %5033 = vmatpush.msrb.mxu3 %v4901_v52  ;;  %5053 = vmatpush.msrb.mxu0 %v4902_v54  ;;  %v8481_v57 = vadd.f32 %v4007_v19, %v3804_v56 }
 0x701   : > { %6465 = vmatmul.msk.f32.vlgmr.msrb.gmra.mxu1 %vm3703_vm13, %v8464_v49  ;;  %v7047_v38 = vpop.permute.xlu0 %7046 }
 0x702   : > { %5443 = vmatpush.msrb.mxu1 %v5406_v55  ;;  %v7048_v46 = vunpack.i.l.bf16 %v7047_v38  ;;  %v7049_v43 = vunpack.i.h.bf16 %v7047_v38 }
 0x704   : > { %v5661_v50 = vsel %vm5660_vm3, %v7048_v46, %v7038_v39  ;;  %v5666_v58 = vsel %vm5660_vm3, %v7049_v43, %v5653_v18 }
 0x706   : > { %6455 = vmatmul.msk.f32.vlgmr.msrb.gmra.mxu2 %vm3703_vm13, %v8381_v16  ;;  %6453 = vmatmul.msk.f32.vlgmr.msra.gmra.mxu3 %vm3703_vm13, %v8381_v16 }
 0x707   : > { %5208 = vmatpush.msrb.mxu2 %v5152_v60  ;;  %6454 = vmatmul.msk.f32.vlgmr.msra.gmra.mxu0 %vm3703_vm13, %v8381_v16  ;;  %v4087_v29 = vpop.f32.mrf.mxu1 }
 0x708   : > { %5113 = vmatpush.msra.mxu3 %v6984_v13  ;;  %5188 = vmatpush.msra.mxu0 %v5151_v62  ;;  %v8534_v13 = vpop.permute.xlu2 %7041 }
 0x709   : > { %6469 = vmatmul.msk.f32.vlgmr.msra.gmra.mxu1 %vm3703_vm13, %v8464_v49  ;;  %v7043_v4 = vunpack.i.l.bf16 %v8534_v13  ;;  %v7044_v55 = vunpack.i.h.bf16 %v8534_v13  ;;  %v5659_v26 = vpop.permute.xlu0 %5658 }
 0x70a   : > { %5523 = vmatpush.msra.mxu1 %v5410_v2 }
 0x70b   : > { %v5664_v60 = vsel %vm5660_vm3, %v7043_v4, %v7044_v55  ;;  %v5665_v61 = vsel %vm5660_vm3, %v7044_v55, %v7049_v43 }
 0x70e   : > { %6459 = vmatmul.msk.f32.vlgmr.msra.gmra.mxu2 %vm3703_vm13, %v8381_v16  ;;  %6457 = vmatmul.msk.f32.vlgmr.msrb.gmra.mxu3 %vm3703_vm13, %v8381_v16 }
 0x70f   : > { %5288 = vmatpush.msra.mxu2 %v5156_v8  ;;  %6458 = vmatmul.msk.f32.vlgmr.msrb.gmra.mxu0 %vm3703_vm13, %v8381_v16  ;;  %v4211_v42 = vpop.f32.mrf.mxu1 }
 0x710   : > { %5248 = vmatpush.msrb.mxu3 %v5154_v10  ;;  %5268 = vmatpush.msrb.mxu0 %v5155_v11  ;;  %v8559_v24 = vpop.permute.xlu2 %7051 }
 0x711   : > { %6474 = vmatmul.msk.f32.vlgmr.msrb.gmra.mxu1 %vm3703_vm13, %v8521_v9  ;;  %v7053_v44 = vunpack.i.l.bf16 %v8559_v24  ;;  %v7054_v5 = vunpack.i.h.bf16 %v8559_v24 }
 0x712   : > { %5603 = vmatpush.msrb.mxu1 %v5414_v12 }
 0x713   : > { %v5667_v30 = vsel %vm5660_vm3, %v5653_v18, %v7053_v44  ;;  %v5669_v10 = vsel %vm5660_vm3, %v7054_v5, %v5659_v26  ;;  %v5668_v12 = vsel %vm5660_vm3, %v7053_v44, %v7054_v5 }
 0x716   : > { %6464 = vmatmul.msk.f32.vlgmr.msrb.gmra.mxu2 %vm3703_vm13, %v8464_v49  ;;  %6461 = vmatmul.msk.f32.vlgmr.msra.gmra.mxu3 %vm3703_vm13, %v8381_v16  ;;  %v5663_v16 = vsel %vm5660_vm3, %v7039_v51, %v7043_v4 }
 0x717   : > { %5368 = vmatpush.msrb.mxu2 %v7009_v53  ;;  %6463 = vmatmul.msk.f32.vlgmr.msra.gmra.mxu0 %vm3703_vm13, %v8464_v49  ;;  %v4291_v56 = vpop.f32.mrf.mxu1 }
 0x718   : > { %5328 = vmatpush.msra.mxu3 %v5158_v14  ;;  %5348 = vmatpush.msra.mxu0 %v5159_v15 }
 0x719   : > { %6478 = vmatmul.msk.f32.vlgmr.msra.gmra.mxu1 %vm3703_vm13, %v8521_v9 }
 0x71a   : > { %5738 = vmatpush.msra.mxu1 %v5663_v16 }
 0x71e   : > { %6468 = vmatmul.msk.f32.vlgmr.msra.gmra.mxu2 %vm3703_vm13, %v8464_v49  ;;  %6466 = vmatmul.msk.f32.vlgmr.msrb.gmra.mxu3 %vm3703_vm13, %v8464_v49 }
 0x71f   : > { %5503 = vmatpush.msra.mxu2 %v5409_v28  ;;  %6467 = vmatmul.msk.f32.vlgmr.msrb.gmra.mxu0 %vm3703_vm13, %v8464_v49 }
 0x720   : > { %5463 = vmatpush.msrb.mxu3 %v5407_v27  ;;  %5483 = vmatpush.msrb.mxu0 %v5408_v20 }
 0x721   : > { %6482 = vmatmul.msk.f32.vlgmr.msrb.gmra.mxu1 %vm3703_vm13, %v8521_v9 }
 0x722   : > { %5818 = vmatpush.msrb.mxu1 %v5667_v30 }
 0x726   : > { %6472 = vmatmul.msk.f32.vlgmr.msrb.gmra.mxu2 %vm3703_vm13, %v8464_v49  ;;  %6470 = vmatmul.msk.f32.vlgmr.msra.gmra.mxu3 %vm3703_vm13, %v8464_v49 }
 0x727   : > { %5583 = vmatpush.msrb.mxu2 %v5413_v33  ;;  %6471 = vmatmul.msk.f32.vlgmr.msra.gmra.mxu0 %vm3703_vm13, %v8464_v49 }
 0x728   : > { %5543 = vmatpush.msra.mxu3 %v5411_v21  ;;  %5563 = vmatpush.msra.mxu0 %v5412_v35 }
 0x729   : > { %6487 = vmatmul.msk.f32.vlgmr.msra.gmra.mxu1 %vm3703_vm13, %v8590_v45 }
 0x72c   : > { %v3884_v47 = vpop.f32.mrf.mxu0 }
 0x72d   : > { %v8601_v49 = vadd.f32 %v4087_v29, %v3884_v47 }
 0x72e   : > { %6477 = vmatmul.msk.f32.vlgmr.msra.gmra.mxu2 %vm3703_vm13, %v8521_v9  ;;  %6475 = vmatmul.msk.f32.vlgmr.msrb.gmra.mxu3 %vm3703_vm13, %v8521_v9 }
 0x72f   : > { %5718 = vmatpush.msra.mxu2 %v5662_v34  ;;  %6476 = vmatmul.msk.f32.vlgmr.msrb.gmra.mxu0 %vm3703_vm13, %v8521_v9 }
 0x730   : > { %5623 = vmatpush.msrb.mxu3 %v7034_v6  ;;  %5698 = vmatpush.msrb.mxu0 %v5661_v50 }
 0x731   : > { %v3904_v52 = vpop.f32.mrf.mxu2  ;;  %v3864_v54 = vpop.f32.mrf.mxu3  ;;  %6491 = vmatmul.msk.f32.vlgmr.msrb.gmra.mxu1 %vm3703_vm13, %v8590_v45 }
 0x734   : > { %v3967_v41 = vpop.f32.mrf.mxu0 }
 0x735   : > { %v3968_v19 = vadd.f32 %v3967_v41, %v3764_v25 }
 0x736   : > { %6481 = vmatmul.msk.f32.vlgmr.msrb.gmra.mxu2 %vm3703_vm13, %v8521_v9  ;;  %6479 = vmatmul.msk.f32.vlgmr.msra.gmra.mxu3 %vm3703_vm13, %v8521_v9 }
 0x737   : > { %v4356_v59 = vadd.f32 %v4211_v42, %v3968_v19  ;;  %5798 = vmatpush.msrb.mxu2 %v5666_v58  ;;  %6480 = vmatmul.msk.f32.vlgmr.msra.gmra.mxu0 %vm3703_vm13, %v8521_v9 }
 0x738   : > { %5758 = vmatpush.msra.mxu3 %v5664_v60  ;;  %5778 = vmatpush.msra.mxu0 %v5665_v61 }
 0x739   : > { %v3987_v62 = vpop.f32.mrf.mxu2  ;;  %v3947_v63 = vpop.f32.mrf.mxu3 }
 0x73a   : > { %v3988_v2 = vadd.f32 %v3987_v62, %v3784_v37  ;;  %v3948_v3 = vadd.f32 %v3947_v63, %v8561_v0 }
 0x73c   : > { %v4047_v6 = vpop.f32.mrf.mxu0 }
 0x73d   : > { %v4048_v7 = vadd.f32 %v4047_v6, %v8424_v1 }
 0x73e   : > { %6486 = vmatmul.msk.f32.vlgmr.msra.gmra.mxu2 %vm3703_vm13, %v8590_v45  ;;  %6483 = vmatmul.msk.f32.vlgmr.msrb.gmra.mxu3 %vm3703_vm13, %v8521_v9  ;;  %v4426_v8 = vpop.f32.mrf.mxu1 }
 0x73f   : > { %v4360_v11 = vadd.f32 %v4291_v56, %v4048_v7  ;;  %5878 = vmatpush.msra.mxu2 %v5659_v26  ;;  %6485 = vmatmul.msk.f32.vlgmr.msrb.gmra.mxu0 %vm3703_vm13, %v8590_v45 }
 0x740   : > { %5838 = vmatpush.msrb.mxu3 %v5668_v12  ;;  %5858 = vmatpush.msrb.mxu0 %v5669_v10 }
 0x741   : > { %v4067_v1 = vpop.f32.mrf.mxu2  ;;  %v4027_v13 = vpop.f32.mrf.mxu3 }
 0x742   : > { %v4068_v17 = vadd.f32 %v4067_v1, %v3864_v54  ;;  %v4028_v53 = vadd.f32 %v4027_v13, %v3824_v36 }
 0x744   : > { %v4171_v22 = vpop.f32.mrf.mxu0 }
 0x745   : > { %v4354_v9 = vadd.f32 %v4171_v22, %v8451_v40 }
 0x746   : > { %6490 = vmatmul.msk.f32.vlgmr.msrb.gmra.mxu2 %vm3703_vm13, %v8590_v45  ;;  %6488 = vmatmul.msk.f32.vlgmr.msra.gmra.mxu3 %vm3703_vm13, %v8590_v45  ;;  %v4506_v51 = vpop.f32.mrf.mxu1 }
 0x747   : > { %v4609_v4 = vadd.f32 %v4426_v8, %v4354_v9  ;;  %6489 = vmatmul.msk.f32.vlgmr.msra.gmra.mxu0 %vm3703_vm13, %v8590_v45 }
 0x749   : > { %v4191_v14 = vpop.f32.mrf.mxu2  ;;  %v4107_v15 = vpop.f32.mrf.mxu3 }
 0x74a   : > { %v4355_v16 = vadd.f32 %v4191_v14, %v3948_v3  ;;  %v4108_v23 = vadd.f32 %v4107_v15, %v3904_v52 }
 0x74c   : > { %v4251_v48 = vpop.f32.mrf.mxu0 }
 0x74d   : > { %v4358_v24 = vadd.f32 %v4251_v48, %v8481_v57 }
 0x74e   : > { %6494 = vmatmul.msk.f32.vlgmr.msra.gmra.mxu2 %vm3703_vm13, %v8590_v45  ;;  %6492 = vmatmul.msk.f32.vlgmr.msrb.gmra.mxu3 %vm3703_vm13, %v8590_v45  ;;  %v4586_v40 = vpop.f32.mrf.mxu1 }
 0x74f   : > { %v4613_v25 = vadd.f32 %v4506_v51, %v4358_v24  ;;  %6493 = vmatmul.msk.f32.vlgmr.msrb.gmra.mxu0 %vm3703_vm13, %v8590_v45 }
 0x751   : > { %v4271_v0 = vpop.f32.mrf.mxu2  ;;  %v4231_v18 = vpop.f32.mrf.mxu3 }
 0x752   : > { %v4359_v28 = vadd.f32 %v4271_v0, %v4028_v53  ;;  %v4357_v44 = vadd.f32 %v4231_v18, %v3988_v2 }
 0x754   : > { %v4331_v27 = vpop.f32.mrf.mxu0 }
 0x755   : > { %v4362_v20 = vadd.f32 %v4331_v27, %v8601_v49 }
 0x756   : > { %v4721_v29 = vpop.f32.mrf.mxu1 }
 0x757   : > { %v4617_v57 = vadd.f32 %v4586_v40, %v4362_v20 }
 0x759   : > { %v4351_v30 = vpop.f32.mrf.mxu2  ;;  %v4311_v31 = vpop.f32.mrf.mxu3 }
 0x75a   : > { %v4363_v32 = vadd.f32 %v4351_v30, %v4108_v23  ;;  %v4361_v33 = vadd.f32 %v4311_v31, %v4068_v17 }
 0x75c   : > { %v4466_v21 = vpop.f32.mrf.mxu0 }
 0x75d   : > { %v4611_v35 = vadd.f32 %v4466_v21, %v4356_v59 }
 0x75e   : > { %v4801_v36 = vpop.f32.mrf.mxu1 }
 0x75f   : > { %v4866_v37 = vadd.f32 %v4721_v29, %v4611_v35 }
 0x761   : > { %v4486_v38 = vpop.f32.mrf.mxu2  ;;  %v4446_v39 = vpop.f32.mrf.mxu3 }
 0x762   : > { %v4612_v45 = vadd.f32 %v4486_v38, %v4357_v44  ;;  %v4610_v42 = vadd.f32 %v4446_v39, %v4355_v16 }
 0x764   : > { %v4546_v46 = vpop.f32.mrf.mxu0 }
 0x765   : > { %v4615_v47 = vadd.f32 %v4546_v46, %v4360_v11 }
 0x766   : > { %v4935_v34 = vpop.f32.mrf.mxu1 }
 0x767   : > { %v4870_v50 = vadd.f32 %v4801_v36, %v4615_v47 }
 0x769   : > { %v4566_v52 = vpop.f32.mrf.mxu2  ;;  %v4526_v49 = vpop.f32.mrf.mxu3 }
 0x76a   : > { %v4616_v54 = vadd.f32 %v4566_v52, %v4361_v33  ;;  %v4614_v43 = vadd.f32 %v4526_v49, %v4359_v28 }
 0x76c   : > { %v4681_v55 = vpop.f32.mrf.mxu0 }
 0x76d   : > { %v4864_v41 = vadd.f32 %v4681_v55, %v4609_v4 }
 0x76e   : > { %v8655_v56 = vpop.f32.mrf.mxu1 }
 0x76f   : > { %v5118_v19 = vadd.f32 %v4935_v34, %v4864_v41 }
 0x771   : > { %v4701_v58 = vpop.f32.mrf.mxu2  ;;  %v4606_v59 = vpop.f32.mrf.mxu3 }
 0x772   : > { %v4865_v60 = vadd.f32 %v4701_v58, %v4610_v42  ;;  %v4618_v61 = vadd.f32 %v4606_v59, %v4363_v32  ;;  %v5897_v32 = vpop.permute.xlu1 %5896 }
 0x774   : > { %v4761_v62 = vpop.f32.mrf.mxu0 }
 0x775   : > { %v4868_v63 = vadd.f32 %v4761_v62, %v4613_v25 }
 0x776   : > { %v8657_v2 = vpop.f32.mrf.mxu1 }
 0x779   : > { %v4781_v3 = vpop.f32.mrf.mxu2  ;;  %v4741_v5 = vpop.f32.mrf.mxu3 }
 0x77a   : > { %v8659_v26 = vadd.f32 %v4781_v3, %v4614_v43  ;;  %v4867_v6 = vadd.f32 %v4741_v5, %v4612_v45 }
 0x77c   : > { %v4841_v7 = vpop.f32.mrf.mxu0 }
 0x77d   : > { %v8661_v8 = vadd.f32 %v4841_v7, %v4617_v57 }
 0x77e   : > { %v5230_v10 = vpop.f32.mrf.mxu1 }
 0x781   : > { %v4861_v11 = vpop.f32.mrf.mxu2  ;;  %v4821_v12 = vpop.f32.mrf.mxu3 }
 0x782   : > { %v8663_v1 = vadd.f32 %v4861_v11, %v4618_v61  ;;  %v4871_v13 = vadd.f32 %v4821_v12, %v4616_v54 }
 0x784   : > { %v4975_v17 = vpop.f32.mrf.mxu0 }
 0x785   : > { %v5120_v53 = vadd.f32 %v4975_v17, %v4866_v37  ;;  %v8677_v37 = vperm.slane %v5897_v32, 0 }
 0x786   : > { %v5310_v22 = vpop.f32.mrf.mxu1 }
 0x787   : > { %v5375_v33 = vadd.f32 %v5230_v10, %v5120_v53 }
 0x789   : > { %v4995_v9 = vpop.f32.mrf.mxu2  ;;  %v4955_v51 = vpop.f32.mrf.mxu3 }
 0x78a   : > { %v8665_v4 = vadd.f32 %v4995_v9, %v4867_v6  ;;  %v5119_v14 = vadd.f32 %v4955_v51, %v4865_v60  ;;  %v5122_v60 = vadd.f32 %v8655_v56, %v4868_v63 }
 0x78c   : > { %v5055_v15 = vpop.f32.mrf.mxu0 }
 0x78d   : > { %v5124_v16 = vadd.f32 %v5055_v15, %v4870_v50 }
 0x78e   : > { %v5445_v23 = vpop.f32.mrf.mxu1 }
 0x78f   : > { %v5379_v34 = vadd.f32 %v5310_v22, %v5124_v16  ;;  %v5126_v16 = vadd.f32 %v8657_v2, %v8661_v8 }
 0x791   : > { %v5075_v48 = vpop.f32.mrf.mxu2  ;;  %v5035_v24 = vpop.f32.mrf.mxu3 }
 0x792   : > { %v8667_v40 = vadd.f32 %v5075_v48, %v4871_v13  ;;  %v5123_v56 = vadd.f32 %v5035_v24, %v8659_v26 }
 0x794   : > { %v5190_v25 = vpop.f32.mrf.mxu0 }
 0x795   : > { %v5373_v50 = vadd.f32 %v5190_v25, %v5118_v19 }
 0x796   : > { %v5525_v0 = vpop.f32.mrf.mxu1 }
 0x797   : > { %v5628_v41 = vadd.f32 %v5445_v23, %v5373_v50 }
 0x799   : > { %v5210_v18 = vpop.f32.mrf.mxu2  ;;  %v8669_v28 = vpop.f32.mrf.mxu3 }
 0x79a   : > { %v5374_v3 = vadd.f32 %v5210_v18, %v5119_v14 }
 0x79c   : > { %v5270_v44 = vpop.f32.mrf.mxu0 }
 0x79d   : > { %v5377_v5 = vadd.f32 %v5270_v44, %v5122_v60 }
 0x79e   : > { %v8671_v29 = vpop.f32.mrf.mxu1 }
 0x79f   : > { %v5632_v17 = vadd.f32 %v5525_v0, %v5377_v5 }
 0x7a1   : > { %v5290_v27 = vpop.f32.mrf.mxu2  ;;  %v5250_v20 = vpop.f32.mrf.mxu3 }
 0x7a2   : > { %v5378_v51 = vadd.f32 %v5290_v27, %v5123_v56  ;;  %v5376_v14 = vadd.f32 %v5250_v20, %v8665_v4 }
 0x7a4   : > { %v5350_v57 = vpop.f32.mrf.mxu0 }
 0x7a5   : > { %v5381_v24 = vadd.f32 %v5350_v57, %v5126_v16 }
 0x7a6   : > { %v5740_v35 = vpop.f32.mrf.mxu1 }
 0x7a7   : > { %v5636_v57 = vadd.f32 %v8671_v29, %v5381_v24 }
 0x7a9   : > { %v8673_v30 = vpop.f32.mrf.mxu2  ;;  %v8675_v31 = vpop.f32.mrf.mxu3 }
 0x7ac   : > { %v5485_v21 = vpop.f32.mrf.mxu0 }
 0x7ad   : > { %v5630_v36 = vadd.f32 %v5485_v21, %v5375_v33 }
 0x7ae   : > { %v5820_v49 = vpop.f32.mrf.mxu1 }
 0x7af   : > { %v5885_v38 = vadd.f32 %v5740_v35, %v5630_v36 }
 0x7b1   : > { %v5902_v39 = vadd.f32 %v8677_v37, %v5885_v38  ;;  %v5505_v45 = vpop.f32.mrf.mxu2  ;;  %v5465_v42 = vpop.f32.mrf.mxu3 }
 0x7b2   : > { %v5629_v7 = vadd.f32 %v5465_v42, %v5374_v3  ;;  %v5631_v25 = vadd.f32 %v5505_v45, %v5376_v14 }
 0x7b3   : > { %v6497_v46 = vmul.f32 -1.442695, %v5902_v39 }
 0x7b4   : > { %v5565_v47 = vpop.f32.mrf.mxu0 }
 0x7b5   : > { %7055 = vpow2.f32 %v6497_v46  ;;  %v5634_v52 = vadd.f32 %v5565_v47, %v5379_v34  ;;  %v5127_v34 = vadd.f32 %v8669_v28, %v8663_v1 }
 0x7b7   : > { %v5889_v58 = vadd.f32 %v5820_v49, %v5634_v52  ;;  %v5382_v29 = vadd.f32 %v8673_v30, %v5127_v34 }
 0x7b9   : > { %v8680_v54 = vpop.f32.mrf.mxu2  ;;  %v5545_v43 = vpop.f32.mrf.mxu3  ;;  %v5906_v19 = vadd.f32 %v8677_v37, %v5889_v58 }
 0x7ba   : > { %v5633_v0 = vadd.f32 %v5545_v43, %v5378_v51 }
 0x7bb   : > { %v7056_v55 = vpop.eup %7055  ;;  %v6501_v63 = vmul.f32 -1.442695, %v5906_v19 }
 0x7bc   : > { %v5700_v59 = vpop.f32.mrf.mxu0  ;;  %v8683_v61 = vadd.f32 1.0, %v7056_v55  ;;  %v5380_v55 = vadd.f32 %v8675_v31, %v8667_v40 }
 0x7bd   : > { %v5883_v62 = vadd.f32 %v5700_v59, %v5628_v41 }
 0x7be   : > { %7057 = vrcp.f32 %v8683_v61  ;;  %v5991_v41 = vand.u32 2147483648, %v8683_v61  ;;  %vm5985_vm5 = vweird.f32 %v8683_v61  ;;  %v5989_v19 = vand.u32 2147483647, %v8683_v61 }
 0x7bf   : > { %v5900_v6 = vadd.f32 %v8677_v37, %v5883_v62  ;;  %v5635_v62 = vadd.f32 %v8680_v54, %v5380_v55 }
 0x7c0   : > { %v8740_v54 = vor.u32 1.1754944e-38, %v5991_v41  ;;  %vm8783_vm15 = vcmp.eq.f32.partialorder %v5989_v19, 8.507059e+37 }
 0x7c1   : > { %v6495_v10 = vmul.f32 -1.442695, %v5900_v6  ;;  %v5720_v11 = vpop.f32.mrf.mxu2  ;;  %v5625_v12 = vpop.f32.mrf.mxu3 }
 0x7c2   : > { %v5884_v13 = vadd.f32 %v5720_v11, %v5629_v7  ;;  %v5637_v60 = vadd.f32 %v5625_v12, %v5382_v29 }
 0x7c3   : > { %7059 = vpow2.f32 %v6495_v10 }
 0x7c4   : > { %v5901_v53 = vadd.f32 %v8677_v37, %v5884_v13  ;;  %v5780_v22 = vpop.f32.mrf.mxu0  ;;  %v8691_v15 = vpop.eup %7057  ;;  %7061 = vpow2.f32 %v6501_v63 }
 0x7c5   : > { %v5887_v9 = vadd.f32 %v5780_v22, %v5632_v17  ;;  %v5981_v4 = vmul.f32 %v8691_v15, %v8683_v61  ;;  %vm5986_vm4 = vweird.f32 %v8691_v15 }
 0x7c6   : > { %v6496_v23 = vmul.f32 -1.442695, %v5901_v53  ;;  %vm8736_vm6 = vmor %vm5985_vm5, %vm5986_vm4 }
 0x7c7   : > { %v5904_v48 = vadd.f32 %v8677_v37, %v5887_v9  ;;  %v5982_v35 = vsub.f32 1.0, %v5981_v4 }
 0x7c8   : > { %7063 = vpow2.f32 %v6496_v23 }
 0x7c9   : > { %v7060_v26 = vpop.eup %7059  ;;  %v6499_v18 = vmul.f32 -1.442695, %v5904_v48  ;;  %v5800_v44 = vpop.f32.mrf.mxu2  ;;  %v5983_v52 = vmul.f32 %v8691_v15, %v5982_v35 }
 0x7ca   : > { %v5760_v32 = vpop.f32.mrf.mxu3  ;;  %v8698_v27 = vadd.f32 1.0, %v7060_v26  ;;  %v5888_v20 = vadd.f32 %v5800_v44, %v5633_v0  ;;  %v7062_v21 = vpop.eup %7061 }
 0x7cb   : > { %v5886_v33 = vadd.f32 %v5760_v32, %v5631_v25  ;;  %7065 = vpow2.f32 %v6499_v18  ;;  %v8721_v58 = vadd.f32 1.0, %v7062_v21  ;;  %v8725_v30 = vadd.f32 %v8691_v15, %v5983_v52 }
 0x7cc   : > { %7067 = vrcp.f32 %v8698_v27  ;;  %v5905_v2 = vadd.f32 %v8677_v37, %v5888_v20  ;;  %v5860_v8 = vpop.f32.mrf.mxu0  ;;  %v5959_v3 = vand.u32 2147483647, %v8698_v27  ;;  %v5961_v5 = vand.u32 2147483648, %v8698_v27 }
 0x7cd   : > { %v5903_v36 = vadd.f32 %v8677_v37, %v5886_v33  ;;  %v5891_v46 = vadd.f32 %v5860_v8, %v5636_v57  ;;  %v5988_v61 = vsel %vm8736_vm6, %v8691_v15, %v8725_v30  ;;  %vm5955_vm7 = vweird.f32 %v8698_v27 }
 0x7ce   : > { %v7064_v38 = vpop.eup %7063  ;;  %v6500_v39 = vmul.f32 -1.442695, %v5905_v2  ;;  %vm8754_vm9 = vcmp.eq.f32.partialorder %v5959_v3, 8.507059e+37  ;;  %v5962_v9 = vor.u32 1.1754944e-38, %v5961_v5 }
 0x7cf   : > { %v8704_v45 = vadd.f32 1.0, %v7064_v38  ;;  %v6498_v42 = vmul.f32 -1.442695, %v5903_v36  ;;  %v5908_v1 = vadd.f32 %v8677_v37, %v5891_v46 }
 0x7d0   : > { %7069 = vpow2.f32 %v6500_v39 }
 0x7d1   : > { %v7066_v47 = vpop.eup %7065  ;;  %7071 = vrcp.f32 %v8704_v45  ;;  %v5880_v28 = vpop.f32.mrf.mxu2  ;;  %v6503_v40 = vmul.f32 -1.442695, %v5908_v1  ;;  %v5974_v63 = vand.u32 2147483647, %v8704_v45  ;;  %v5976_v25 = vand.u32 2147483648, %v8704_v45 }
 0x7d2   : > { %v8708_v50 = vpop.eup %7067  ;;  %v8715_v43 = vadd.f32 1.0, %v7066_v47  ;;  %7073 = vpow2.f32 %v6498_v42  ;;  %v5892_v6 = vadd.f32 %v5880_v28, %v5637_v60  ;;  %v5840_v23 = vpop.f32.mrf.mxu3  ;;  %vm5970_vm11 = vweird.f32 %v8704_v45 }
 0x7d3   : > { %v5951_v49 = vmul.f32 %v8708_v50, %v8698_v27  ;;  %vm5956_vm10 = vweird.f32 %v8708_v50  ;;  %vm8767_vm13 = vcmp.eq.f32.partialorder %v5974_v63, 8.507059e+37  ;;  %v5890_v32 = vadd.f32 %v5840_v23, %v5635_v62 }
 0x7d4   : > { %7075 = vrcp.f32 %v8715_v43  ;;  %v5909_v17 = vadd.f32 %v8677_v37, %v5892_v6  ;;  %vm8775_vm14 = vmor %vm5955_vm7, %vm5956_vm10  ;;  %v6019_v2 = vand.u32 2147483647, %v8715_v43  ;;  %v6021_v8 = vand.u32 2147483648, %v8715_v43 }
 0x7d5   : > { %v5952_v59 = vsub.f32 1.0, %v5951_v49  ;;  %7077 = vpow2.f32 %v6503_v40  ;;  %v5977_v36 = vor.u32 1.1754944e-38, %v5976_v25  ;;  %vm6015_vm2 = vweird.f32 %v8715_v43 }
 0x7d6   : > { %v7070_v31 = vpop.eup %7069  ;;  %7079 = vrcp.f32 %v8721_v58  ;;  %v6504_v16 = vmul.f32 -1.442695, %v5909_v17  ;;  %v5907_v34 = vadd.f32 %v8677_v37, %v5890_v32  ;;  %vm8803_vm4 = vcmp.eq.f32.partialorder %v6019_v2, 8.507059e+37 }
 0x7d7   : > { %v7072_v7 = vpop.eup %7071  ;;  %v5953_v10 = vmul.f32 %v8708_v50, %v5952_v59  ;;  %v8734_v11 = vadd.f32 1.0, %v7070_v31  ;;  %v6022_v49 = vor.u32 1.1754944e-38, %v6021_v8  ;;  %v5993_v63 = vsel %vm8783_vm15, %v8740_v54, %v5988_v61 }
 0x7d8   : > { %v5966_v13 = vmul.f32 %v7072_v7, %v8704_v45  ;;  %v7074_v56 = vpop.eup %7073  ;;  %vm5971_vm12 = vweird.f32 %v7072_v7  ;;  %v6502_v5 = vmul.f32 -1.442695, %v5907_v34  ;;  %vm6120_vm15 = vcmask 1042434  }
 0x7d9   : > { %7081 = vrcp.f32 %v8734_v11  ;;  %v8758_v14 = vadd.f32 1.0, %v7074_v56  ;;  %v5954_v48 = vadd.f32 %v8708_v50, %v5953_v10  ;;  %vm5972_vm0 = vmor %vm5970_vm11, %vm5971_vm12  ;;  %v6036_v45 = vand.u32 2147483648, %v8734_v11 }
 0x7da   : > { %v8752_v53 = vpop.eup %7075  ;;  %v5967_v51 = vsub.f32 1.0, %v5966_v13  ;;  %vm6030_vm7 = vweird.f32 %v8734_v11  ;;  %v6034_v37 = vand.u32 2147483647, %v8734_v11  ;;  %v6111_v23 = vrot.slane %v5993_v63, 6 }
 0x7db   : > { %v6011_v0 = vmul.f32 %v8752_v53, %v8715_v43  ;;  %7083 = vrcp.f32 %v8758_v14  ;;  %v7078_v24 = vpop.eup %7077  ;;  %v5958_v27 = vsel %vm8775_vm14, %v8708_v50, %v5954_v48  ;;  %vm6016_vm3 = vweird.f32 %v8752_v53 }
 0x7dc   : > { %v5968_v26 = vmul.f32 %v7072_v7, %v5967_v51  ;;  %7085 = vpow2.f32 %v6504_v16  ;;  %v8771_v4 = vpop.eup %7079  ;;  %v8781_v21 = vadd.f32 1.0, %v7078_v24  ;;  %v5963_v1 = vsel %vm8754_vm9, %v5962_v9, %v5958_v27  ;;  %vm8811_vm5 = vmor %vm6015_vm2, %vm6016_vm3 }
 0x7dd   : > { %v6012_v44 = vsub.f32 1.0, %v6011_v0  ;;  %v6037_v31 = vor.u32 1.1754944e-38, %v6036_v45  ;;  %v6004_v19 = vand.u32 2147483647, %v8758_v14  ;;  %v6006_v10 = vand.u32 2147483648, %v8758_v14 }
 0x7de   : > { %v5969_v33 = vadd.f32 %v7072_v7, %v5968_v26  ;;  %7087 = vrcp.f32 %v8781_v21  ;;  %vm6035_vm12 = vcmp.eq.f32.partialorder %v6034_v37, 8.507059e+37  ;;  %vm6000_vm14 = vweird.f32 %v8758_v14 }
 0x7df   : > { %v7082_v57 = vpop.eup %7081  ;;  %v6013_v38 = vmul.f32 %v8752_v53, %v6012_v44  ;;  %v6007_v12 = vor.u32 1.1754944e-38, %v6006_v10  ;;  %vm6005_vm6 = vcmp.eq.f32.partialorder %v6004_v19, 8.507059e+37  ;;  %vm6122_vm2 = vcmask 1041408  }
 0x7e0   : > { %v5973_v39 = vsel %vm5972_vm0, %v7072_v7, %v5969_v33  ;;  %v6026_v42 = vmul.f32 %v7082_v57, %v8734_v11  ;;  %vm6031_vm9 = vweird.f32 %v7082_v57  ;;  %v6081_v35 = vand.u32 2147483648, %v8781_v21 }
 0x7e1   : > { %v5978_v46 = vsel %vm8767_vm13, %v5977_v36, %v5973_v39  ;;  %v6014_v47 = vadd.f32 %v8752_v53, %v6013_v38  ;;  %v7084_v50 = vpop.eup %7083  ;;  %vm6032_vm11 = vmor %vm6030_vm7, %vm6031_vm9  ;;  %vm6124_vm13 = vcmask 1044484   ;;  %v6079_v36 = vand.u32 2147483647, %v8781_v21 }
 0x7e2   : > { %v6110_v52 = vrot.slane %v5978_v46, 7  ;;  %v6027_v55 = vsub.f32 1.0, %v6026_v42  ;;  %v7086_v41 = vpop.eup %7085  ;;  %v5996_v59 = vmul.f32 %v7084_v50, %v8758_v14  ;;  %vm6001_vm10 = vweird.f32 %v7084_v50 }
 0x7e3   : > { %v6018_v62 = vsel %vm8811_vm5, %v8752_v53, %v6014_v47  ;;  %v8822_v3 = vadd.f32 1.0, %v7086_v41  ;;  %vm6002_vm0 = vmor %vm6000_vm14, %vm6001_vm10  ;;  %v6041_v14 = vmul.f32 %v8771_v4, %v8721_v58  ;;  %vm6075_vm5 = vweird.f32 %v8781_v21 }
 0x7e4   : > { %v6119_v60 = vsel %vm6118_vm8, %v5963_v1, %v6110_v52  ;;  %v6028_v40 = vmul.f32 %v7082_v57, %v6027_v55  ;;  %v5997_v43 = vsub.f32 1.0, %v5996_v59  ;;  %v8824_v6 = vpop.eup %7087  ;;  %v6023_v13 = vsel %vm8803_vm4, %v6022_v49, %v6018_v62 }
 0x7e5   : > { %v6071_v56 = vmul.f32 %v8824_v6, %v8781_v21  ;;  %7089 = vrcp.f32 %v8822_v3  ;;  %v6113_v9 = vrot.slane %v6023_v13, 4  ;;  %v6042_v20 = vsub.f32 1.0, %v6041_v14 }
 0x7e6   : > { %v6029_v7 = vadd.f32 %v7082_v57, %v6028_v40  ;;  %v5998_v17 = vmul.f32 %v7084_v50, %v5997_v43  ;;  %7091 = vpow2.f32 %v6502_v5  ;;  %vm6076_vm3 = vweird.f32 %v8824_v6 }
 0x7e7   : > { %v6072_v16 = vsub.f32 1.0, %v6071_v56  ;;  %v6094_v33 = vand.u32 2147483647, %v8822_v3  ;;  %v6096_v2 = vand.u32 2147483648, %v8822_v3  ;;  %vm8863_vm7 = vmor %vm6075_vm5, %vm6076_vm3  ;;  %vm6090_vm9 = vweird.f32 %v8822_v3 }
 0x7e8   : > { %v6033_v53 = vsel %vm6032_vm11, %v7082_v57, %v6029_v7  ;;  %v5999_v22 = vadd.f32 %v7084_v50, %v5998_v17  ;;  %v6135_v39 = vlaneseq  ;;  %v6043_v42 = vmul.f32 %v8771_v4, %v6042_v20 }
 0x7e9   : > { %v6038_v11 = vsel %vm6035_vm12, %v6037_v31, %v6033_v53  ;;  %v6073_v25 = vmul.f32 %v8824_v6, %v6072_v16  ;;  %v6097_v46 = vor.u32 1.1754944e-38, %v6096_v2  ;;  %vm6095_vm11 = vcmp.eq.f32.partialorder %v6094_v33, 8.507059e+37 }
 0x7ea   : > { %v6114_v51 = vrot.slane %v6038_v11, 3  ;;  %v6003_v15 = vsel %vm6002_vm0, %v7084_v50, %v5999_v22  ;;  %v6082_v34 = vor.u32 1.1754944e-38, %v6081_v35  ;;  %vm6080_vm12 = vcmp.eq.f32.partialorder %v6079_v36, 8.507059e+37 }
 0x7eb   : > { %v6008_v54 = vsel %vm6005_vm6, %v6007_v12, %v6003_v15  ;;  %v7090_v61 = vpop.eup %7089  ;;  %v6074_v8 = vadd.f32 %v8824_v6, %v6073_v25  ;;  %v6044_v29 = vadd.f32 %v8771_v4, %v6043_v42  ;;  %vm6046_vm14 = vweird.f32 %v8771_v4 }
 0x7ec   : > { %v8845_v30 = vsel %vm6124_vm13, %v6113_v9, %v6114_v51  ;;  %v6112_v48 = vrot.slane %v6008_v54, 5  ;;  %v6086_v0 = vmul.f32 %v7090_v61, %v8822_v3  ;;  %v7092_v26 = vpop.eup %7091  ;;  %vm6091_vm4 = vweird.f32 %v7090_v61 }
 0x7ed   : > { %v5947_v32 = vadd.f32 1.0, %v7092_v26  ;;  %vm6092_vm10 = vmor %vm6090_vm9, %vm6091_vm4  ;;  %v6078_v47 = vsel %vm8863_vm7, %v8824_v6, %v6074_v8  ;;  %vm6137_vm13 = vcmp.lt.s32.totalorder %v6135_v39, 132  ;;  %v6051_v41 = vand.u32 2147483648, %v8721_v58 }
 0x7ee   : > { %v6121_v24 = vsel %vm6120_vm15, %v6111_v23, %v6112_v48  ;;  %v6087_v44 = vsub.f32 1.0, %v6086_v0  ;;  %v6083_v49 = vsel %vm6080_vm12, %v6082_v34, %v6078_v47  ;;  %vm6045_vm0 = vweird.f32 %v8721_v58 }
 0x7ef   : > { %v8852_v18 = vsel %vm6122_vm2, %v6119_v60, %v6121_v24  ;;  %7093 = vrcp.f32 %v5947_v32  ;;  %v6049_v28 = vand.u32 2147483647, %v8721_v58  ;;  %vm6047_vm6 = vmor %vm6045_vm0, %vm6046_vm14  ;;  %v6066_v59 = vand.u32 2147483648, %v5947_v32 }
 0x7f0   : > { %v6088_v57 = vmul.f32 %v7090_v61, %v6087_v44  ;;  %v6048_v60 = vsel %vm6047_vm6, %v8771_v4, %v6044_v29  ;;  %v6064_v40 = vand.u32 2147483647, %v5947_v32  ;;  %v6052_v31 = vor.u32 1.1754944e-38, %v6051_v41 }
 0x7f1   : > { %vm6050_vm2 = vcmp.eq.f32.partialorder %v6049_v28, 8.507059e+37  ;;  %vm6060_vm3 = vweird.f32 %v5947_v32  ;;  %v6067_v5 = vor.u32 1.1754944e-38, %v6066_v59  ;;  %vm6126_vm5 = vcmask 1046534  }
 0x7f2   : > { %v6089_v38 = vadd.f32 %v7090_v61, %v6088_v57  ;;  %v6053_v3 = vsel %vm6050_vm2, %v6052_v31, %v6048_v60  ;;  %vm6065_vm4 = vcmp.eq.f32.partialorder %v6064_v40, 8.507059e+37  ;;  %vm6128_vm7 = vcmask 1045508  }
 0x7f3   : > { %v6115_v7 = vrot.slane %v6053_v3, 2 }
 0x7f4   : > { %v6093_v45 = vsel %vm6092_vm10, %v7090_v61, %v6089_v38 }
 0x7f5   : > { %v6098_v50 = vsel %vm6095_vm11, %v6097_v46, %v6093_v45  ;;  %v7094_v52 = vpop.eup %7093 }
 0x7f6   : > { %v6117_v21 = vrot.slane %v6098_v50, 7  ;;  %v6056_v55 = vmul.f32 %v7094_v52, %v5947_v32  ;;  %vm6061_vm15 = vweird.f32 %v7094_v52 }
 0x7f8   : > { %v6131_v1 = vsel %vm6118_vm8, %v6083_v49, %v6117_v21  ;;  %v6057_v37 = vsub.f32 1.0, %v6056_v55  ;;  %vm6062_vm8 = vmor %vm6060_vm3, %vm6061_vm15 }
 0x7f9   : > { %6139 = vst.msk [vmem:[%s8877_s18 + $0x8] sm:$0x3] %vm6137_vm13, %v6131_v1 }
 0x7fa   : > { %v6058_v62 = vmul.f32 %v7094_v52, %v6057_v37 }
 0x7fc   : > { %v6059_v43 = vadd.f32 %v7094_v52, %v6058_v62 }
 0x7fe   : > { %v6063_v6 = vsel %vm6062_vm8, %v7094_v52, %v6059_v43 }
 0x7ff   : > { %v6068_v58 = vsel %vm6065_vm4, %v6067_v5, %v6063_v6 }
 0x800   : > { %v6116_v19 = vrot.slane %v6068_v58, 1 }
 0x802   : > { %v6127_v10 = vsel %vm6126_vm5, %v6115_v7, %v6116_v19 }
 0x803   : > { %v6129_v4 = vsel %vm6128_vm7, %v8845_v30, %v6127_v10 }
 0x804   : > { %v6130_v13 = vsel %vm1688_vm1, %v8852_v18, %v6129_v4 }
 0x805   : > { %6134 = vst [vmem:[%s8877_s18] sm:$0xff] %v6130_v13 }
 0x806 PF: > { %p31_p3 = scmp.ge.s32.totalorder %s7616_s11, 4   ;;  %s8957_s20 = smov %s7407_s21 }
 0x807   : > { %s8958_s21 = smov %s7411_s22  ;;  %s8959_s22 = smov %s7628_s8 }
 0x808   : > { %s8960_s23 = smov %s7616_s11  ;;  %33 = sbr.rel (!%p31_p3) target bundleno = 15 (0xf), region = 176 }
 0x80d   :  { %6159 = vsyncpa [#allocation7], 1 }
 0x80e   :  { %6161 = vsyncpa [#allocation7 + $0x1], 1 }
 0x80f   :  { %6162 = vsyncpa [#allocation9], 1 }
 0x810   :  { %6163 = vsyncpa [#allocation12], 1 }
 0x811   :  { %6164 = vsyncpa [#allocation15], 1 }
 0x812   :  { %6165 = vsyncpa [#allocation18], 1 }

</bundles_post_ra>
